<compile_context>
chip_gen: v7x
topology: tpu7x:2x2x1
jax: 0.10.0
libtpu: 0.0.40
codegen_flags: <defaults>
</compile_context>

<pallas_src>
import jax
import jax.numpy as jnp
from jax.experimental import pallas as pl

EPS = 1e-5


def _round_up(x, m):
    return ((x + m - 1) // m) * m


# ----------------------------- Pallas kernels ------------------------------

def _conv_mm_kernel(a_ref, b_ref, scale_ref, bias_ref, relu_ref, o_ref):
    # out = bn(a @ b), per-column relu mask (1.0 -> relu, 0.0 -> linear).
    acc = jnp.dot(a_ref[...], b_ref[...], preferred_element_type=jnp.float32)
    out = acc * scale_ref[...] + bias_ref[...]
    o_ref[...] = jnp.where(relu_ref[...] > 0.0, jnp.maximum(out, 0.0), out)


def _conv_mm_res_kernel(a_ref, b_ref, scale_ref, bias_ref, res_ref, o_ref):
    # out = relu(bn(a @ b) + residual)  -- fused block epilogue.
    acc = jnp.dot(a_ref[...], b_ref[...], preferred_element_type=jnp.float32)
    o_ref[...] = jnp.maximum(acc * scale_ref[...] + bias_ref[...] + res_ref[...],
                             0.0)


def _max4_kernel(a_ref, b_ref, c_ref, d_ref, o_ref):
    o_ref[...] = jnp.maximum(jnp.maximum(a_ref[...], b_ref[...]),
                             jnp.maximum(c_ref[...], d_ref[...]))


def _gmax_fc_kernel(x_ref, w_ref, b_ref, o_ref):
    # Global max over the spatial axis (XLU) fused with the FC matmul (MXU).
    m = jnp.max(x_ref[...], axis=1)                        # (N, C) f32
    acc = jnp.dot(m.astype(jnp.bfloat16), w_ref[...],
                  preferred_element_type=jnp.float32)
    o_ref[...] = acc + b_ref[...]


# ----------------------------- kernel wrappers ------------------------------

def conv_mm(patches, w, scale, bias, relu_mask):
    M, K = patches.shape
    Kp, Nc = w.shape
    if K != Kp:
        patches = jnp.pad(patches, ((0, 0), (0, Kp - K)))
    return pl.pallas_call(
        _conv_mm_kernel,
        out_shape=jax.ShapeDtypeStruct((M, Nc), jnp.float32),
    )(patches, w, scale, bias, relu_mask)


def conv_mm_res(patches, w, scale, bias, res):
    M, K = patches.shape
    Kp, Nc = w.shape
    if K != Kp:
        patches = jnp.pad(patches, ((0, 0), (0, Kp - K)))
    return pl.pallas_call(
        _conv_mm_res_kernel,
        out_shape=jax.ShapeDtypeStruct((M, Nc), jnp.float32),
    )(patches, w, scale, bias, res)


def maxpool_2x2_s2_p1(x):
    # nn.MaxPool2d(kernel_size=2, stride=2, padding=1); pad value never wins.
    N, H, W, C = x.shape
    neg = jnp.finfo(x.dtype).min
    xp = jnp.pad(x, ((0, 0), (1, 1), (1, 1), (0, 0)), constant_values=neg)
    Ho = (H + 2 - 2) // 2 + 1
    Wo = (W + 2 - 2) // 2 + 1
    wins = [xp[:, di:di + 2 * Ho:2, dj:dj + 2 * Wo:2, :].reshape(-1, C)
            for di in (0, 1) for dj in (0, 1)]
    out = pl.pallas_call(
        _max4_kernel,
        out_shape=jax.ShapeDtypeStruct((N * Ho * Wo, C), jnp.float32),
    )(*wins)
    return out.reshape(N, Ho, Wo, C)


def gmax_fc(x, w_fc, b_fc, num_classes):
    # AdaptiveMaxPool2d((1,1)) + flatten + Linear, in one kernel.
    N, H, W, C = x.shape
    x3 = x.reshape(N, H * W, C)
    out = pl.pallas_call(
        _gmax_fc_kernel,
        out_shape=jax.ShapeDtypeStruct((N, w_fc.shape[1]), jnp.float32),
    )(x3, w_fc, b_fc)
    return out[:, :num_classes]


# ------------------------------ conv glue -----------------------------------

def im2col(x, k, stride, pad):
    """x: NHWC f32 -> ((N*Ho*Wo, k*k*C) bf16 patches, Ho, Wo)."""
    N, H, W, C = x.shape
    xb = x.astype(jnp.bfloat16)
    if pad:
        xb = jnp.pad(xb, ((0, 0), (pad, pad), (pad, pad), (0, 0)))
    Ho = (H + 2 * pad - k) // stride + 1
    Wo = (W + 2 * pad - k) // stride + 1
    taps = [xb[:, i:i + stride * Ho:stride, j:j + stride * Wo:stride, :]
            for i in range(k) for j in range(k)]
    patches = jnp.concatenate(taps, axis=-1).reshape(N * Ho * Wo, k * k * C)
    return patches, Ho, Wo


def basic_block_fwd(x, fp):
    N = x.shape[0]
    C = fp['planes']
    patches, Ho, Wo = im2col(x, 3, fp['stride'], 1)
    y = conv_mm(patches, fp['w1'], fp['s1'], fp['b1'], fp['m1'])
    if fp['packed']:
        # One matmul produced both conv1(+bn+relu) and the downsample branch.
        identity = y[:, C:]
        y1 = y[:, :C]
    else:
        identity = x.reshape(-1, C)
        y1 = y
    patches2, _, _ = im2col(y1.reshape(N, Ho, Wo, C), 3, 1, 1)
    out = conv_mm_res(patches2, fp['w2'], fp['s2'], fp['b2'], identity)
    return out.reshape(N, Ho, Wo, C)


# ---------------------------- parameter handling ----------------------------

def init_params(key, num_classes=2, in_channels=3, inplanes=16, planes=16,
                layers=(3, 1, 3)):
    keys = iter(jax.random.split(key, 256))

    def conv_w(cout, cin, k):
        return 0.1 * jax.random.normal(next(keys), (cout, cin, k, k), jnp.float32)

    def bn(c):
        gamma = 1.0 + 0.1 * jax.random.normal(next(keys), (c,), jnp.float32)
        beta = 0.1 * jax.random.normal(next(keys), (c,), jnp.float32)
        mean = 0.1 * jax.random.normal(next(keys), (c,), jnp.float32)
        var = jnp.abs(jax.random.normal(next(keys), (c,), jnp.float32)) + 0.5
        return (gamma, beta, mean, var)

    params = {'conv1_w': conv_w(inplanes, in_channels, 7), 'bn1': bn(inplanes)}
    blocks = []
    cur = inplanes
    for mult, nblocks, stride in zip((1, 2, 4), layers, (1, 2, 2)):
        pln = planes * mult
        for b in range(nblocks):
            s = stride if b == 0 else 1
            bp = {'conv1_w': conv_w(pln, cur, 3), 'bn1': bn(pln),
                  'conv2_w': conv_w(pln, pln, 3), 'bn2': bn(pln), 'stride': s}
            if s != 1 or cur != pln:
                bp['ds_w'] = conv_w(pln, cur, 1)
                bp['ds_bn'] = bn(pln)
            blocks.append(bp)
            cur = pln
    params['blocks'] = blocks
    params['fc_w'] = 0.1 * jax.random.normal(next(keys), (num_classes, planes * 4),
                                             jnp.float32)
    params['fc_b'] = 0.1 * jax.random.normal(next(keys), (num_classes,), jnp.float32)
    return params


def _fold_conv_bn(w, bn):
    gamma, beta, mean, var = bn
    scale = gamma / jnp.sqrt(var + EPS)
    bias = beta - mean * scale
    cout, cin, kh, kw = w.shape
    w_mat = jnp.transpose(w, (2, 3, 1, 0)).reshape(kh * kw * cin, cout)
    return w_mat, scale, bias


def _pad_k(w_mat, align=128):
    k = w_mat.shape[0]
    kp = _round_up(k, align)
    if kp != k:
        w_mat = jnp.pad(w_mat, ((0, kp - k), (0, 0)))
    return w_mat


def fold_params(params, num_classes):
    """One-time folding: BN -> scale/bias, weights -> K-padded bf16 matrices,
    downsample packed into conv1's B for stride-2 blocks."""
    fp = {}
    w, s, b = _fold_conv_bn(params['conv1_w'], params['bn1'])
    fp['stem_w'] = _pad_k(w).astype(jnp.bfloat16)
    fp['stem_s'] = s.reshape(1, -1)
    fp['stem_b'] = b.reshape(1, -1)
    fp['stem_m'] = jnp.ones((1, w.shape[1]), jnp.float32)

    blocks = []
    for bp in params['blocks']:
        cout, cin = bp['conv1_w'].shape[0], bp['conv1_w'].shape[1]
        w1, s1, b1 = _fold_conv_bn(bp['conv1_w'], bp['bn1'])
        w2, s2, b2 = _fold_conv_bn(bp['conv2_w'], bp['bn2'])
        blk = {'stride': bp['stride'], 'planes': cout, 'packed': 'ds_w' in bp,
               'w2': _pad_k(w2).astype(jnp.bfloat16),
               's2': s2.reshape(1, -1), 'b2': b2.reshape(1, -1)}
        if 'ds_w' in bp:
            wd, sd, bd = _fold_conv_bn(bp['ds_w'], bp['ds_bn'])   # (cin, cout)
            w1p = jnp.zeros((9 * cin, 2 * cout), jnp.float32)
            w1p = w1p.at[:, :cout].set(w1)
            # 1x1 stride-s pad-0 conv == centre tap (i=j=1) of the 3x3 patch.
            w1p = w1p.at[4 * cin:5 * cin, cout:].set(wd)
            blk['w1'] = _pad_k(w1p).astype(jnp.bfloat16)
            blk['s1'] = jnp.concatenate([s1, sd]).reshape(1, -1)
            blk['b1'] = jnp.concatenate([b1, bd]).reshape(1, -1)
            blk['m1'] = jnp.concatenate(
                [jnp.ones((cout,), jnp.float32),
                 jnp.zeros((cout,), jnp.float32)]).reshape(1, -1)
        else:
            blk['w1'] = _pad_k(w1).astype(jnp.bfloat16)
            blk['s1'] = s1.reshape(1, -1)
            blk['b1'] = b1.reshape(1, -1)
            blk['m1'] = jnp.ones((1, cout), jnp.float32)
        blocks.append(blk)
    fp['blocks'] = blocks

    # FC: lane-dense 128-wide B (padded once, for free), f32 bias.
    fcw = params['fc_w'].T                                 # (C, num_classes)
    nc_pad = 128
    fp['fc_w'] = jnp.pad(fcw, ((0, 0), (0, nc_pad - num_classes))).astype(jnp.bfloat16)
    fp['fc_b'] = jnp.pad(params['fc_b'], (0, nc_pad - num_classes)).reshape(1, -1)
    fp['num_classes'] = num_classes
    return fp


# ------------------------------- forward ------------------------------------

def resnet15_forward(fparams, x_nchw):
    x = jnp.transpose(x_nchw, (0, 2, 3, 1))                # NCHW -> NHWC
    N = x.shape[0]
    patches, Ho, Wo = im2col(x, 7, 2, 3)
    x = conv_mm(patches, fparams['stem_w'], fparams['stem_s'],
                fparams['stem_b'], fparams['stem_m'])
    x = x.reshape(N, Ho, Wo, -1)
    x = maxpool_2x2_s2_p1(x)
    for fp in fparams['blocks']:
        x = basic_block_fwd(x, fp)
    return gmax_fc(x, fparams['fc_w'], fparams['fc_b'], fparams['num_classes'])


if __name__ == "__main__":
    key = jax.random.PRNGKey(0)
    pkey, xkey = jax.random.split(key)
    params = init_params(pkey, num_classes=2, in_channels=3, inplanes=16,
                         planes=16, layers=(3, 1, 3))
    fparams = fold_params(params, num_classes=2)
    x = jax.random.normal(xkey, (2, 3, 32, 32), jnp.float32)  # NCHW input

    fwd = jax.jit(lambda xx: resnet15_forward(fparams, xx))
    logits = fwd(x)
    jax.block_until_ready(logits)
    assert logits.shape == (2, 2), logits.shape
    print("KERNEL_OK")
</pallas_src>

<mosaic_0001>
module attributes {stable_mosaic.version = 11 : i64} {
  func.func @_max4_kernel(%arg0: memref<162x16xf32, #tpu.memory_space<vmem>>, %arg1: memref<162x16xf32, #tpu.memory_space<vmem>>, %arg2: memref<162x16xf32, #tpu.memory_space<vmem>>, %arg3: memref<162x16xf32, #tpu.memory_space<vmem>>, %arg4: memref<162x16xf32, #tpu.memory_space<vmem>>) attributes {dimension_semantics = [], scalar_prefetch = 0 : i64, scratch_operands = 0 : i64, tpu.core_type = #tpu.core_type<tc>} {
    %c0 = arith.constant 0 : index
    %c0_0 = arith.constant 0 : index
    %0 = vector.load %arg0[%c0, %c0_0] : memref<162x16xf32, #tpu.memory_space<vmem>>, vector<162x16xf32>
    %c0_1 = arith.constant 0 : index
    %c0_2 = arith.constant 0 : index
    %1 = vector.load %arg1[%c0_1, %c0_2] : memref<162x16xf32, #tpu.memory_space<vmem>>, vector<162x16xf32>
    %2 = arith.maximumf %0, %1 : vector<162x16xf32>
    %c0_3 = arith.constant 0 : index
    %c0_4 = arith.constant 0 : index
    %3 = vector.load %arg2[%c0_3, %c0_4] : memref<162x16xf32, #tpu.memory_space<vmem>>, vector<162x16xf32>
    %c0_5 = arith.constant 0 : index
    %c0_6 = arith.constant 0 : index
    %4 = vector.load %arg3[%c0_5, %c0_6] : memref<162x16xf32, #tpu.memory_space<vmem>>, vector<162x16xf32>
    %5 = arith.maximumf %3, %4 : vector<162x16xf32>
    %6 = arith.maximumf %2, %5 : vector<162x16xf32>
    %c0_7 = arith.constant 0 : index
    %c0_8 = arith.constant 0 : index
    %7 = vector.load %arg4[%c0_7, %c0_8] : memref<162x16xf32, #tpu.memory_space<vmem>>, vector<162x16xf32>
    tpu.vector_store %arg4[%c0_7, %c0_8], %6 {strides = array<i32>} : memref<162x16xf32, #tpu.memory_space<vmem>>, vector<162x16xf32>,
    return
  }
}

module attributes {stable_mosaic.version = 11 : i64} {
  func.func @_conv_mm_kernel(%arg0: memref<512x256xbf16, #tpu.memory_space<vmem>>, %arg1: memref<256x16xbf16, #tpu.memory_space<vmem>>, %arg2: memref<1x16xf32, #tpu.memory_space<vmem>>, %arg3: memref<1x16xf32, #tpu.memory_space<vmem>>, %arg4: memref<1x16xf32, #tpu.memory_space<vmem>>, %arg5: memref<512x16xf32, #tpu.memory_space<vmem>>) attributes {dimension_semantics = [], scalar_prefetch = 0 : i64, scratch_operands = 0 : i64, tpu.core_type = #tpu.core_type<tc>} {
    %c0 = arith.constant 0 : index
    %c0_0 = arith.constant 0 : index
    %0 = vector.load %arg0[%c0, %c0_0] : memref<512x256xbf16, #tpu.memory_space<vmem>>, vector<512x256xbf16>
    %c0_1 = arith.constant 0 : index
    %c0_2 = arith.constant 0 : index
    %1 = vector.load %arg1[%c0_1, %c0_2] : memref<256x16xbf16, #tpu.memory_space<vmem>>, vector<256x16xbf16>
    %cst = arith.constant dense<0.000000e+00> : vector<512x16xf32>
    %2 = tpu.matmul %0, %1, %cst {dimension_numbers = #tpu.dot_dimension_numbers<[1], [0], [0], [1], [0, 0, 1, 1], [], []>} : vector<512x256xbf16>, vector<256x16xbf16>, vector<512x16xf32> -> vector<512x16xf32>
    %c0_3 = arith.constant 0 : index
    %c0_4 = arith.constant 0 : index
    %3 = vector.load %arg2[%c0_3, %c0_4] : memref<1x16xf32, #tpu.memory_space<vmem>>, vector<1x16xf32>
    %4 = vector.broadcast %3 : vector<1x16xf32> to vector<512x16xf32>
    %5 = arith.mulf %2, %4 : vector<512x16xf32>
    %c0_5 = arith.constant 0 : index
    %c0_6 = arith.constant 0 : index
    %6 = vector.load %arg3[%c0_5, %c0_6] : memref<1x16xf32, #tpu.memory_space<vmem>>, vector<1x16xf32>
    %7 = vector.broadcast %6 : vector<1x16xf32> to vector<512x16xf32>
    %8 = arith.addf %5, %7 : vector<512x16xf32>
    %c0_7 = arith.constant 0 : index
    %c0_8 = arith.constant 0 : index
    %9 = vector.load %arg4[%c0_7, %c0_8] : memref<1x16xf32, #tpu.memory_space<vmem>>, vector<1x16xf32>
    %cst_9 = arith.constant 0.000000e+00 : f32
    %10 = vector.broadcast %cst_9 : f32 to vector<1x16xf32>
    %11 = arith.cmpf ogt, %9, %10 : vector<1x16xf32>
    %cst_10 = arith.constant 0.000000e+00 : f32
    %12 = vector.broadcast %cst_10 : f32 to vector<512x16xf32>
    %13 = arith.maximumf %8, %12 : vector<512x16xf32>
    %14 = vector.shape_cast %11 : vector<1x16xi1> to vector<1x16xi1>
    %15 = vector.broadcast %14 : vector<1x16xi1> to vector<512x16xi1>
    %16 = arith.select %15, %13, %8 : vector<512x16xi1>, vector<512x16xf32>
    %c0_11 = arith.constant 0 : index
    %c0_12 = arith.constant 0 : index
    %17 = vector.load %arg5[%c0_11, %c0_12] : memref<512x16xf32, #tpu.memory_space<vmem>>, vector<512x16xf32>
    tpu.vector_store %arg5[%c0_11, %c0_12], %16 {strides = array<i32>} : memref<512x16xf32, #tpu.memory_space<vmem>>, vector<512x16xf32>,
    return
  }
}

module attributes {stable_mosaic.version = 11 : i64} {
  func.func @_conv_mm_kernel(%arg0: memref<162x256xbf16, #tpu.memory_space<vmem>>, %arg1: memref<256x16xbf16, #tpu.memory_space<vmem>>, %arg2: memref<1x16xf32, #tpu.memory_space<vmem>>, %arg3: memref<1x16xf32, #tpu.memory_space<vmem>>, %arg4: memref<1x16xf32, #tpu.memory_space<vmem>>, %arg5: memref<162x16xf32, #tpu.memory_space<vmem>>) attributes {dimension_semantics = [], scalar_prefetch = 0 : i64, scratch_operands = 0 : i64, tpu.core_type = #tpu.core_type<tc>} {
    %c0 = arith.constant 0 : index
    %c0_0 = arith.constant 0 : index
    %0 = vector.load %arg0[%c0, %c0_0] : memref<162x256xbf16, #tpu.memory_space<vmem>>, vector<162x256xbf16>
    %c0_1 = arith.constant 0 : index
    %c0_2 = arith.constant 0 : index
    %1 = vector.load %arg1[%c0_1, %c0_2] : memref<256x16xbf16, #tpu.memory_space<vmem>>, vector<256x16xbf16>
    %cst = arith.constant dense<0.000000e+00> : vector<162x16xf32>
    %2 = tpu.matmul %0, %1, %cst {dimension_numbers = #tpu.dot_dimension_numbers<[1], [0], [0], [1], [0, 0, 1, 1], [], []>} : vector<162x256xbf16>, vector<256x16xbf16>, vector<162x16xf32> -> vector<162x16xf32>
    %c0_3 = arith.constant 0 : index
    %c0_4 = arith.constant 0 : index
    %3 = vector.load %arg2[%c0_3, %c0_4] : memref<1x16xf32, #tpu.memory_space<vmem>>, vector<1x16xf32>
    %4 = vector.broadcast %3 : vector<1x16xf32> to vector<162x16xf32>
    %5 = arith.mulf %2, %4 : vector<162x16xf32>
    %c0_5 = arith.constant 0 : index
    %c0_6 = arith.constant 0 : index
    %6 = vector.load %arg3[%c0_5, %c0_6] : memref<1x16xf32, #tpu.memory_space<vmem>>, vector<1x16xf32>
    %7 = vector.broadcast %6 : vector<1x16xf32> to vector<162x16xf32>
    %8 = arith.addf %5, %7 : vector<162x16xf32>
    %c0_7 = arith.constant 0 : index
    %c0_8 = arith.constant 0 : index
    %9 = vector.load %arg4[%c0_7, %c0_8] : memref<1x16xf32, #tpu.memory_space<vmem>>, vector<1x16xf32>
    %cst_9 = arith.constant 0.000000e+00 : f32
    %10 = vector.broadcast %cst_9 : f32 to vector<1x16xf32>
    %11 = arith.cmpf ogt, %9, %10 : vector<1x16xf32>
    %cst_10 = arith.constant 0.000000e+00 : f32
    %12 = vector.broadcast %cst_10 : f32 to vector<162x16xf32>
    %13 = arith.maximumf %8, %12 : vector<162x16xf32>
    %14 = vector.shape_cast %11 : vector<1x16xi1> to vector<1x16xi1>
    %15 = vector.broadcast %14 : vector<1x16xi1> to vector<162x16xi1>
    %16 = arith.select %15, %13, %8 : vector<162x16xi1>, vector<162x16xf32>
    %c0_11 = arith.constant 0 : index
    %c0_12 = arith.constant 0 : index
    %17 = vector.load %arg5[%c0_11, %c0_12] : memref<162x16xf32, #tpu.memory_space<vmem>>, vector<162x16xf32>
    tpu.vector_store %arg5[%c0_11, %c0_12], %16 {strides = array<i32>} : memref<162x16xf32, #tpu.memory_space<vmem>>, vector<162x16xf32>,
    return
  }
}

module attributes {stable_mosaic.version = 11 : i64} {
  func.func @_conv_mm_res_kernel(%arg0: memref<162x256xbf16, #tpu.memory_space<vmem>>, %arg1: memref<256x16xbf16, #tpu.memory_space<vmem>>, %arg2: memref<1x16xf32, #tpu.memory_space<vmem>>, %arg3: memref<1x16xf32, #tpu.memory_space<vmem>>, %arg4: memref<162x16xf32, #tpu.memory_space<vmem>>, %arg5: memref<162x16xf32, #tpu.memory_space<vmem>>) attributes {dimension_semantics = [], scalar_prefetch = 0 : i64, scratch_operands = 0 : i64, tpu.core_type = #tpu.core_type<tc>} {
    %c0 = arith.constant 0 : index
    %c0_0 = arith.constant 0 : index
    %0 = vector.load %arg0[%c0, %c0_0] : memref<162x256xbf16, #tpu.memory_space<vmem>>, vector<162x256xbf16>
    %c0_1 = arith.constant 0 : index
    %c0_2 = arith.constant 0 : index
    %1 = vector.load %arg1[%c0_1, %c0_2] : memref<256x16xbf16, #tpu.memory_space<vmem>>, vector<256x16xbf16>
    %cst = arith.constant dense<0.000000e+00> : vector<162x16xf32>
    %2 = tpu.matmul %0, %1, %cst {dimension_numbers = #tpu.dot_dimension_numbers<[1], [0], [0], [1], [0, 0, 1, 1], [], []>} : vector<162x256xbf16>, vector<256x16xbf16>, vector<162x16xf32> -> vector<162x16xf32>
    %c0_3 = arith.constant 0 : index
    %c0_4 = arith.constant 0 : index
    %3 = vector.load %arg2[%c0_3, %c0_4] : memref<1x16xf32, #tpu.memory_space<vmem>>, vector<1x16xf32>
    %4 = vector.broadcast %3 : vector<1x16xf32> to vector<162x16xf32>
    %5 = arith.mulf %2, %4 : vector<162x16xf32>
    %c0_5 = arith.constant 0 : index
    %c0_6 = arith.constant 0 : index
    %6 = vector.load %arg3[%c0_5, %c0_6] : memref<1x16xf32, #tpu.memory_space<vmem>>, vector<1x16xf32>
    %7 = vector.broadcast %6 : vector<1x16xf32> to vector<162x16xf32>
    %8 = arith.addf %5, %7 : vector<162x16xf32>
    %c0_7 = arith.constant 0 : index
    %c0_8 = arith.constant 0 : index
    %9 = vector.load %arg4[%c0_7, %c0_8] : memref<162x16xf32, #tpu.memory_space<vmem>>, vector<162x16xf32>
    %10 = arith.addf %8, %9 : vector<162x16xf32>
    %cst_9 = arith.constant 0.000000e+00 : f32
    %11 = vector.broadcast %cst_9 : f32 to vector<162x16xf32>
    %12 = arith.maximumf %10, %11 : vector<162x16xf32>
    %c0_10 = arith.constant 0 : index
    %c0_11 = arith.constant 0 : index
    %13 = vector.load %arg5[%c0_10, %c0_11] : memref<162x16xf32, #tpu.memory_space<vmem>>, vector<162x16xf32>
    tpu.vector_store %arg5[%c0_10, %c0_11], %12 {strides = array<i32>} : memref<162x16xf32, #tpu.memory_space<vmem>>, vector<162x16xf32>,
    return
  }
}

module attributes {stable_mosaic.version = 11 : i64} {
  func.func @_conv_mm_res_kernel(%arg0: memref<50x384xbf16, #tpu.memory_space<vmem>>, %arg1: memref<384x32xbf16, #tpu.memory_space<vmem>>, %arg2: memref<1x32xf32, #tpu.memory_space<vmem>>, %arg3: memref<1x32xf32, #tpu.memory_space<vmem>>, %arg4: memref<50x32xf32, #tpu.memory_space<vmem>>, %arg5: memref<50x32xf32, #tpu.memory_space<vmem>>) attributes {dimension_semantics = [], scalar_prefetch = 0 : i64, scratch_operands = 0 : i64, tpu.core_type = #tpu.core_type<tc>} {
    %c0 = arith.constant 0 : index
    %c0_0 = arith.constant 0 : index
    %0 = vector.load %arg0[%c0, %c0_0] : memref<50x384xbf16, #tpu.memory_space<vmem>>, vector<50x384xbf16>
    %c0_1 = arith.constant 0 : index
    %c0_2 = arith.constant 0 : index
    %1 = vector.load %arg1[%c0_1, %c0_2] : memref<384x32xbf16, #tpu.memory_space<vmem>>, vector<384x32xbf16>
    %cst = arith.constant dense<0.000000e+00> : vector<50x32xf32>
    %2 = tpu.matmul %0, %1, %cst {dimension_numbers = #tpu.dot_dimension_numbers<[1], [0], [0], [1], [0, 0, 1, 1], [], []>} : vector<50x384xbf16>, vector<384x32xbf16>, vector<50x32xf32> -> vector<50x32xf32>
    %c0_3 = arith.constant 0 : index
    %c0_4 = arith.constant 0 : index
    %3 = vector.load %arg2[%c0_3, %c0_4] : memref<1x32xf32, #tpu.memory_space<vmem>>, vector<1x32xf32>
    %4 = vector.broadcast %3 : vector<1x32xf32> to vector<50x32xf32>
    %5 = arith.mulf %2, %4 : vector<50x32xf32>
    %c0_5 = arith.constant 0 : index
    %c0_6 = arith.constant 0 : index
    %6 = vector.load %arg3[%c0_5, %c0_6] : memref<1x32xf32, #tpu.memory_space<vmem>>, vector<1x32xf32>
    %7 = vector.broadcast %6 : vector<1x32xf32> to vector<50x32xf32>
    %8 = arith.addf %5, %7 : vector<50x32xf32>
    %c0_7 = arith.constant 0 : index
    %c0_8 = arith.constant 0 : index
    %9 = vector.load %arg4[%c0_7, %c0_8] : memref<50x32xf32, #tpu.memory_space<vmem>>, vector<50x32xf32>
    %10 = arith.addf %8, %9 : vector<50x32xf32>
    %cst_9 = arith.constant 0.000000e+00 : f32
    %11 = vector.broadcast %cst_9 : f32 to vector<50x32xf32>
    %12 = arith.maximumf %10, %11 : vector<50x32xf32>
    %c0_10 = arith.constant 0 : index
    %c0_11 = arith.constant 0 : index
    %13 = vector.load %arg5[%c0_10, %c0_11] : memref<50x32xf32, #tpu.memory_space<vmem>>, vector<50x32xf32>
    tpu.vector_store %arg5[%c0_10, %c0_11], %12 {strides = array<i32>} : memref<50x32xf32, #tpu.memory_space<vmem>>, vector<50x32xf32>,
    return
  }
}

module attributes {stable_mosaic.version = 11 : i64} {
  func.func @_conv_mm_kernel(%arg0: memref<50x256xbf16, #tpu.memory_space<vmem>>, %arg1: memref<256x64xbf16, #tpu.memory_space<vmem>>, %arg2: memref<1x64xf32, #tpu.memory_space<vmem>>, %arg3: memref<1x64xf32, #tpu.memory_space<vmem>>, %arg4: memref<1x64xf32, #tpu.memory_space<vmem>>, %arg5: memref<50x64xf32, #tpu.memory_space<vmem>>) attributes {dimension_semantics = [], scalar_prefetch = 0 : i64, scratch_operands = 0 : i64, tpu.core_type = #tpu.core_type<tc>} {
    %c0 = arith.constant 0 : index
    %c0_0 = arith.constant 0 : index
    %0 = vector.load %arg0[%c0, %c0_0] : memref<50x256xbf16, #tpu.memory_space<vmem>>, vector<50x256xbf16>
    %c0_1 = arith.constant 0 : index
    %c0_2 = arith.constant 0 : index
    %1 = vector.load %arg1[%c0_1, %c0_2] : memref<256x64xbf16, #tpu.memory_space<vmem>>, vector<256x64xbf16>
    %cst = arith.constant dense<0.000000e+00> : vector<50x64xf32>
    %2 = tpu.matmul %0, %1, %cst {dimension_numbers = #tpu.dot_dimension_numbers<[1], [0], [0], [1], [0, 0, 1, 1], [], []>} : vector<50x256xbf16>, vector<256x64xbf16>, vector<50x64xf32> -> vector<50x64xf32>
    %c0_3 = arith.constant 0 : index
    %c0_4 = arith.constant 0 : index
    %3 = vector.load %arg2[%c0_3, %c0_4] : memref<1x64xf32, #tpu.memory_space<vmem>>, vector<1x64xf32>
    %4 = vector.broadcast %3 : vector<1x64xf32> to vector<50x64xf32>
    %5 = arith.mulf %2, %4 : vector<50x64xf32>
    %c0_5 = arith.constant 0 : index
    %c0_6 = arith.constant 0 : index
    %6 = vector.load %arg3[%c0_5, %c0_6] : memref<1x64xf32, #tpu.memory_space<vmem>>, vector<1x64xf32>
    %7 = vector.broadcast %6 : vector<1x64xf32> to vector<50x64xf32>
    %8 = arith.addf %5, %7 : vector<50x64xf32>
    %c0_7 = arith.constant 0 : index
    %c0_8 = arith.constant 0 : index
    %9 = vector.load %arg4[%c0_7, %c0_8] : memref<1x64xf32, #tpu.memory_space<vmem>>, vector<1x64xf32>
    %cst_9 = arith.constant 0.000000e+00 : f32
    %10 = vector.broadcast %cst_9 : f32 to vector<1x64xf32>
    %11 = arith.cmpf ogt, %9, %10 : vector<1x64xf32>
    %cst_10 = arith.constant 0.000000e+00 : f32
    %12 = vector.broadcast %cst_10 : f32 to vector<50x64xf32>
    %13 = arith.maximumf %8, %12 : vector<50x64xf32>
    %14 = vector.shape_cast %11 : vector<1x64xi1> to vector<1x64xi1>
    %15 = vector.broadcast %14 : vector<1x64xi1> to vector<50x64xi1>
    %16 = arith.select %15, %13, %8 : vector<50x64xi1>, vector<50x64xf32>
    %c0_11 = arith.constant 0 : index
    %c0_12 = arith.constant 0 : index
    %17 = vector.load %arg5[%c0_11, %c0_12] : memref<50x64xf32, #tpu.memory_space<vmem>>, vector<50x64xf32>
    tpu.vector_store %arg5[%c0_11, %c0_12], %16 {strides = array<i32>} : memref<50x64xf32, #tpu.memory_space<vmem>>, vector<50x64xf32>,
    return
  }
}

module attributes {stable_mosaic.version = 11 : i64} {
  func.func @_conv_mm_kernel(%arg0: memref<18x384xbf16, #tpu.memory_space<vmem>>, %arg1: memref<384x128xbf16, #tpu.memory_space<vmem>>, %arg2: memref<1x128xf32, #tpu.memory_space<vmem>>, %arg3: memref<1x128xf32, #tpu.memory_space<vmem>>, %arg4: memref<1x128xf32, #tpu.memory_space<vmem>>, %arg5: memref<18x128xf32, #tpu.memory_space<vmem>>) attributes {dimension_semantics = [], scalar_prefetch = 0 : i64, scratch_operands = 0 : i64, tpu.core_type = #tpu.core_type<tc>} {
    %c0 = arith.constant 0 : index
    %c0_0 = arith.constant 0 : index
    %0 = vector.load %arg0[%c0, %c0_0] : memref<18x384xbf16, #tpu.memory_space<vmem>>, vector<18x384xbf16>
    %c0_1 = arith.constant 0 : index
    %c0_2 = arith.constant 0 : index
    %1 = vector.load %arg1[%c0_1, %c0_2] : memref<384x128xbf16, #tpu.memory_space<vmem>>, vector<384x128xbf16>
    %cst = arith.constant dense<0.000000e+00> : vector<18x128xf32>
    %2 = tpu.matmul %0, %1, %cst {dimension_numbers = #tpu.dot_dimension_numbers<[1], [0], [0], [1], [0, 0, 1, 1], [], []>} : vector<18x384xbf16>, vector<384x128xbf16>, vector<18x128xf32> -> vector<18x128xf32>
    %c0_3 = arith.constant 0 : index
    %c0_4 = arith.constant 0 : index
    %3 = vector.load %arg2[%c0_3, %c0_4] : memref<1x128xf32, #tpu.memory_space<vmem>>, vector<1x128xf32>
    %4 = vector.broadcast %3 : vector<1x128xf32> to vector<18x128xf32>
    %5 = arith.mulf %2, %4 : vector<18x128xf32>
    %c0_5 = arith.constant 0 : index
    %c0_6 = arith.constant 0 : index
    %6 = vector.load %arg3[%c0_5, %c0_6] : memref<1x128xf32, #tpu.memory_space<vmem>>, vector<1x128xf32>
    %7 = vector.broadcast %6 : vector<1x128xf32> to vector<18x128xf32>
    %8 = arith.addf %5, %7 : vector<18x128xf32>
    %c0_7 = arith.constant 0 : index
    %c0_8 = arith.constant 0 : index
    %9 = vector.load %arg4[%c0_7, %c0_8] : memref<1x128xf32, #tpu.memory_space<vmem>>, vector<1x128xf32>
    %cst_9 = arith.constant 0.000000e+00 : f32
    %10 = vector.broadcast %cst_9 : f32 to vector<1x128xf32>
    %11 = arith.cmpf ogt, %9, %10 : vector<1x128xf32>
    %cst_10 = arith.constant 0.000000e+00 : f32
    %12 = vector.broadcast %cst_10 : f32 to vector<18x128xf32>
    %13 = arith.maximumf %8, %12 : vector<18x128xf32>
    %14 = vector.shape_cast %11 : vector<1x128xi1> to vector<1x128xi1>
    %15 = vector.broadcast %14 : vector<1x128xi1> to vector<18x128xi1>
    %16 = arith.select %15, %13, %8 : vector<18x128xi1>, vector<18x128xf32>
    %c0_11 = arith.constant 0 : index
    %c0_12 = arith.constant 0 : index
    %17 = vector.load %arg5[%c0_11, %c0_12] : memref<18x128xf32, #tpu.memory_space<vmem>>, vector<18x128xf32>
    tpu.vector_store %arg5[%c0_11, %c0_12], %16 {strides = array<i32>} : memref<18x128xf32, #tpu.memory_space<vmem>>, vector<18x128xf32>,
    return
  }
}

module attributes {stable_mosaic.version = 11 : i64} {
  func.func @_conv_mm_res_kernel(%arg0: memref<18x640xbf16, #tpu.memory_space<vmem>>, %arg1: memref<640x64xbf16, #tpu.memory_space<vmem>>, %arg2: memref<1x64xf32, #tpu.memory_space<vmem>>, %arg3: memref<1x64xf32, #tpu.memory_space<vmem>>, %arg4: memref<18x64xf32, #tpu.memory_space<vmem>>, %arg5: memref<18x64xf32, #tpu.memory_space<vmem>>) attributes {dimension_semantics = [], scalar_prefetch = 0 : i64, scratch_operands = 0 : i64, tpu.core_type = #tpu.core_type<tc>} {
    %c0 = arith.constant 0 : index
    %c0_0 = arith.constant 0 : index
    %0 = vector.load %arg0[%c0, %c0_0] : memref<18x640xbf16, #tpu.memory_space<vmem>>, vector<18x640xbf16>
    %c0_1 = arith.constant 0 : index
    %c0_2 = arith.constant 0 : index
    %1 = vector.load %arg1[%c0_1, %c0_2] : memref<640x64xbf16, #tpu.memory_space<vmem>>, vector<640x64xbf16>
    %cst = arith.constant dense<0.000000e+00> : vector<18x64xf32>
    %2 = tpu.matmul %0, %1, %cst {dimension_numbers = #tpu.dot_dimension_numbers<[1], [0], [0], [1], [0, 0, 1, 1], [], []>} : vector<18x640xbf16>, vector<640x64xbf16>, vector<18x64xf32> -> vector<18x64xf32>
    %c0_3 = arith.constant 0 : index
    %c0_4 = arith.constant 0 : index
    %3 = vector.load %arg2[%c0_3, %c0_4] : memref<1x64xf32, #tpu.memory_space<vmem>>, vector<1x64xf32>
    %4 = vector.broadcast %3 : vector<1x64xf32> to vector<18x64xf32>
    %5 = arith.mulf %2, %4 : vector<18x64xf32>
    %c0_5 = arith.constant 0 : index
    %c0_6 = arith.constant 0 : index
    %6 = vector.load %arg3[%c0_5, %c0_6] : memref<1x64xf32, #tpu.memory_space<vmem>>, vector<1x64xf32>
    %7 = vector.broadcast %6 : vector<1x64xf32> to vector<18x64xf32>
    %8 = arith.addf %5, %7 : vector<18x64xf32>
    %c0_7 = arith.constant 0 : index
    %c0_8 = arith.constant 0 : index
    %9 = vector.load %arg4[%c0_7, %c0_8] : memref<18x64xf32, #tpu.memory_space<vmem>>, vector<18x64xf32>
    %10 = arith.addf %8, %9 : vector<18x64xf32>
    %cst_9 = arith.constant 0.000000e+00 : f32
    %11 = vector.broadcast %cst_9 : f32 to vector<18x64xf32>
    %12 = arith.maximumf %10, %11 : vector<18x64xf32>
    %c0_10 = arith.constant 0 : index
    %c0_11 = arith.constant 0 : index
    %13 = vector.load %arg5[%c0_10, %c0_11] : memref<18x64xf32, #tpu.memory_space<vmem>>, vector<18x64xf32>
    tpu.vector_store %arg5[%c0_10, %c0_11], %12 {strides = array<i32>} : memref<18x64xf32, #tpu.memory_space<vmem>>, vector<18x64xf32>,
    return
  }
}

module attributes {stable_mosaic.version = 11 : i64} {
  func.func @_conv_mm_kernel(%arg0: memref<18x640xbf16, #tpu.memory_space<vmem>>, %arg1: memref<640x64xbf16, #tpu.memory_space<vmem>>, %arg2: memref<1x64xf32, #tpu.memory_space<vmem>>, %arg3: memref<1x64xf32, #tpu.memory_space<vmem>>, %arg4: memref<1x64xf32, #tpu.memory_space<vmem>>, %arg5: memref<18x64xf32, #tpu.memory_space<vmem>>) attributes {dimension_semantics = [], scalar_prefetch = 0 : i64, scratch_operands = 0 : i64, tpu.core_type = #tpu.core_type<tc>} {
    %c0 = arith.constant 0 : index
    %c0_0 = arith.constant 0 : index
    %0 = vector.load %arg0[%c0, %c0_0] : memref<18x640xbf16, #tpu.memory_space<vmem>>, vector<18x640xbf16>
    %c0_1 = arith.constant 0 : index
    %c0_2 = arith.constant 0 : index
    %1 = vector.load %arg1[%c0_1, %c0_2] : memref<640x64xbf16, #tpu.memory_space<vmem>>, vector<640x64xbf16>
    %cst = arith.constant dense<0.000000e+00> : vector<18x64xf32>
    %2 = tpu.matmul %0, %1, %cst {dimension_numbers = #tpu.dot_dimension_numbers<[1], [0], [0], [1], [0, 0, 1, 1], [], []>} : vector<18x640xbf16>, vector<640x64xbf16>, vector<18x64xf32> -> vector<18x64xf32>
    %c0_3 = arith.constant 0 : index
    %c0_4 = arith.constant 0 : index
    %3 = vector.load %arg2[%c0_3, %c0_4] : memref<1x64xf32, #tpu.memory_space<vmem>>, vector<1x64xf32>
    %4 = vector.broadcast %3 : vector<1x64xf32> to vector<18x64xf32>
    %5 = arith.mulf %2, %4 : vector<18x64xf32>
    %c0_5 = arith.constant 0 : index
    %c0_6 = arith.constant 0 : index
    %6 = vector.load %arg3[%c0_5, %c0_6] : memref<1x64xf32, #tpu.memory_space<vmem>>, vector<1x64xf32>
    %7 = vector.broadcast %6 : vector<1x64xf32> to vector<18x64xf32>
    %8 = arith.addf %5, %7 : vector<18x64xf32>
    %c0_7 = arith.constant 0 : index
    %c0_8 = arith.constant 0 : index
    %9 = vector.load %arg4[%c0_7, %c0_8] : memref<1x64xf32, #tpu.memory_space<vmem>>, vector<1x64xf32>
    %cst_9 = arith.constant 0.000000e+00 : f32
    %10 = vector.broadcast %cst_9 : f32 to vector<1x64xf32>
    %11 = arith.cmpf ogt, %9, %10 : vector<1x64xf32>
    %cst_10 = arith.constant 0.000000e+00 : f32
    %12 = vector.broadcast %cst_10 : f32 to vector<18x64xf32>
    %13 = arith.maximumf %8, %12 : vector<18x64xf32>
    %14 = vector.shape_cast %11 : vector<1x64xi1> to vector<1x64xi1>
    %15 = vector.broadcast %14 : vector<1x64xi1> to vector<18x64xi1>
    %16 = arith.select %15, %13, %8 : vector<18x64xi1>, vector<18x64xf32>
    %c0_11 = arith.constant 0 : index
    %c0_12 = arith.constant 0 : index
    %17 = vector.load %arg5[%c0_11, %c0_12] : memref<18x64xf32, #tpu.memory_space<vmem>>, vector<18x64xf32>
    tpu.vector_store %arg5[%c0_11, %c0_12], %16 {strides = array<i32>} : memref<18x64xf32, #tpu.memory_space<vmem>>, vector<18x64xf32>,
    return
  }
}

module attributes {stable_mosaic.version = 11 : i64} {
  func.func @_gmax_fc_kernel(%arg0: memref<2x9x64xf32, #tpu.memory_space<vmem>>, %arg1: memref<64x128xbf16, #tpu.memory_space<vmem>>, %arg2: memref<1x128xf32, #tpu.memory_space<vmem>>, %arg3: memref<2x128xf32, #tpu.memory_space<vmem>>) attributes {dimension_semantics = [], scalar_prefetch = 0 : i64, scratch_operands = 0 : i64, tpu.core_type = #tpu.core_type<tc>} {
    %c0 = arith.constant 0 : index
    %c0_0 = arith.constant 0 : index
    %c0_1 = arith.constant 0 : index
    %0 = vector.load %arg0[%c0, %c0_0, %c0_1] : memref<2x9x64xf32, #tpu.memory_space<vmem>>, vector<2x9x64xf32>
    %cst = arith.constant dense<0xFF800000> : vector<2x64xf32>
    %1 = vector.multi_reduction <maximumf>, %0, %cst [1] : vector<2x9x64xf32> to vector<2x64xf32>
    %2 = arith.truncf %1 : vector<2x64xf32> to vector<2x64xbf16>
    %c0_2 = arith.constant 0 : index
    %c0_3 = arith.constant 0 : index
    %3 = vector.load %arg1[%c0_2, %c0_3] : memref<64x128xbf16, #tpu.memory_space<vmem>>, vector<64x128xbf16>
    %cst_4 = arith.constant dense<0.000000e+00> : vector<2x128xf32>
    %4 = tpu.matmul %2, %3, %cst_4 {dimension_numbers = #tpu.dot_dimension_numbers<[1], [0], [0], [1], [0, 0, 1, 1], [], []>} : vector<2x64xbf16>, vector<64x128xbf16>, vector<2x128xf32> -> vector<2x128xf32>
    %c0_5 = arith.constant 0 : index
    %c0_6 = arith.constant 0 : index
    %5 = vector.load %arg2[%c0_5, %c0_6] : memref<1x128xf32, #tpu.memory_space<vmem>>, vector<1x128xf32>
    %6 = vector.broadcast %5 : vector<1x128xf32> to vector<2x128xf32>
    %7 = arith.addf %4, %6 : vector<2x128xf32>
    %c0_7 = arith.constant 0 : index
    %c0_8 = arith.constant 0 : index
    %8 = vector.load %arg3[%c0_7, %c0_8] : memref<2x128xf32, #tpu.memory_space<vmem>>, vector<2x128xf32>
    tpu.vector_store %arg3[%c0_7, %c0_8], %7 {strides = array<i32>} : memref<2x128xf32, #tpu.memory_space<vmem>>, vector<2x128xf32>,
    return
  }
}

</mosaic_0001>

<bundles_post_ra>
// kernel: _lambda_.18
= control target key start
LH: loop header
LB: loop body
LE: loop exit
PB: predicated region body
PF: predicated region fallthrough
CT: control target
= control target key end

     0   :  { %vm164_vm0 = vcmask 130048   ;;  %vm185_vm1 = vcmask 123904   ;;  %s551_s0 = inlined_call_operand.vmem [shape: f32[162,16], index: 0, kind: input, shape index: {}]   ;;  %s552_s1 = inlined_call_operand.vmem [shape: f32[162,16], index: 1, kind: input, shape index: {}]   ;;  %s553_s2 = inlined_call_operand.vmem [shape: f32[162,16], index: 2, kind: input, shape index: {}]   ;;  %s554_s3 = inlined_call_operand.vmem [shape: f32[162,16], index: 3, kind: input, shape index: {}]   ;;  %s555_s4 = inlined_call_operand.vmem [shape: f32[162,16], index: 4, kind: output, shape index: {}]  }
   0x1   :  { %v17_v0 = vld [vmem:[%s551_s0] sm:$0xff]  ;;  %v18_v5 = vld [vmem:[%s551_s0 + $0x8] sm:$0xff]  ;;  %v19_v11 = vld [vmem:[%s551_s0 + $0x10] sm:$0xff] }
   0x2   :  { %v38_v1 = vld [vmem:[%s552_s1] sm:$0xff]  ;;  %v39_v6 = vld [vmem:[%s552_s1 + $0x8] sm:$0xff]  ;;  %v40_v13 = vld [vmem:[%s552_s1 + $0x10] sm:$0xff] }
   0x3   :  { %v80_v2 = vld [vmem:[%s553_s2] sm:$0xff]  ;;  %v59_v3 = vmax.f32 %v17_v0, %v38_v1  ;;  %v60_v8 = vmax.f32 %v18_v5, %v39_v6  ;;  %v81_v9 = vld [vmem:[%s553_s2 + $0x8] sm:$0xff]  ;;  %v82_v14 = vld [vmem:[%s553_s2 + $0x10] sm:$0xff]  ;;  %v61_v17 = vmax.f32 %v19_v11, %v40_v13 }
   0x4   :  { %v101_v4 = vld [vmem:[%s554_s3] sm:$0xff]  ;;  %v102_v10 = vld [vmem:[%s554_s3 + $0x8] sm:$0xff]  ;;  %v103_v15 = vld [vmem:[%s554_s3 + $0x10] sm:$0xff] }
   0x5   :  { %v122_v7 = vmax.f32 %v80_v2, %v101_v4  ;;  %v123_v12 = vmax.f32 %v81_v9, %v102_v10  ;;  %v124_v18 = vmax.f32 %v82_v14, %v103_v15  ;;  %v20_v19 = vld [vmem:[%s551_s0 + $0x18] sm:$0xff]  ;;  %v21_v25 = vld [vmem:[%s551_s0 + $0x20] sm:$0xff]  ;;  %v22_v32 = vld [vmem:[%s551_s0 + $0x28] sm:$0xff] }
   0x6   :  { %v41_v20 = vld [vmem:[%s552_s1 + $0x18] sm:$0xff]  ;;  %v42_v26 = vld [vmem:[%s552_s1 + $0x20] sm:$0xff]  ;;  %v43_v34 = vld [vmem:[%s552_s1 + $0x28] sm:$0xff] }
   0x7   :  { %v143_v16 = vmax.f32 %v59_v3, %v122_v7  ;;  %v83_v21 = vld [vmem:[%s553_s2 + $0x18] sm:$0xff]  ;;  %v144_v22 = vmax.f32 %v60_v8, %v123_v12  ;;  %v62_v23 = vmax.f32 %v20_v19, %v41_v20  ;;  %v145_v27 = vmax.f32 %v61_v17, %v124_v18  ;;  %v84_v30 = vld [vmem:[%s553_s2 + $0x20] sm:$0xff]  ;;  %v85_v35 = vld [vmem:[%s553_s2 + $0x28] sm:$0xff] }
   0x8   :  { %v104_v24 = vld [vmem:[%s554_s3 + $0x18] sm:$0xff]  ;;  %v63_v29 = vmax.f32 %v21_v25, %v42_v26  ;;  %v105_v31 = vld [vmem:[%s554_s3 + $0x20] sm:$0xff]  ;;  %v106_v36 = vld [vmem:[%s554_s3 + $0x28] sm:$0xff]  ;;  %v64_v38 = vmax.f32 %v22_v32, %v43_v34 }
   0x9   :  { %165 = vst.msk [vmem:[%s555_s4] sm:$0xff] %vm164_vm0, %v143_v16  ;;  %v125_v28 = vmax.f32 %v83_v21, %v104_v24  ;;  %166 = vst.msk [vmem:[%s555_s4 + $0x8] sm:$0xff] %vm164_vm0, %v144_v22  ;;  %v126_v33 = vmax.f32 %v84_v30, %v105_v31  ;;  %v127_v39 = vmax.f32 %v85_v35, %v106_v36  ;;  %v23_v40 = vld [vmem:[%s551_s0 + $0x30] sm:$0xff]  ;;  %v24_v46 = vld [vmem:[%s551_s0 + $0x38] sm:$0xff] }
   0xa   :  { %167 = vst.msk [vmem:[%s555_s4 + $0x10] sm:$0xff] %vm164_vm0, %v145_v27  ;;  %v44_v41 = vld [vmem:[%s552_s1 + $0x30] sm:$0xff]  ;;  %v45_v47 = vld [vmem:[%s552_s1 + $0x38] sm:$0xff]  ;;  %v25_v53 = vld [vmem:[%s551_s0 + $0x40] sm:$0xff] }
   0xb   :  { %v146_v37 = vmax.f32 %v62_v23, %v125_v28  ;;  %v86_v42 = vld [vmem:[%s553_s2 + $0x30] sm:$0xff]  ;;  %v147_v43 = vmax.f32 %v63_v29, %v126_v33  ;;  %v65_v44 = vmax.f32 %v23_v40, %v44_v41  ;;  %v148_v48 = vmax.f32 %v64_v38, %v127_v39  ;;  %v87_v51 = vld [vmem:[%s553_s2 + $0x38] sm:$0xff]  ;;  %v46_v55 = vld [vmem:[%s552_s1 + $0x40] sm:$0xff] }
   0xc   :  { %v107_v45 = vld [vmem:[%s554_s3 + $0x30] sm:$0xff]  ;;  %v66_v50 = vmax.f32 %v24_v46, %v45_v47  ;;  %v108_v52 = vld [vmem:[%s554_s3 + $0x38] sm:$0xff]  ;;  %v88_v56 = vld [vmem:[%s553_s2 + $0x40] sm:$0xff]  ;;  %v67_v59 = vmax.f32 %v25_v53, %v46_v55 }
   0xd   :  { %168 = vst.msk [vmem:[%s555_s4 + $0x18] sm:$0xff] %vm164_vm0, %v146_v37  ;;  %v128_v49 = vmax.f32 %v86_v42, %v107_v45  ;;  %169 = vst.msk [vmem:[%s555_s4 + $0x20] sm:$0xff] %vm164_vm0, %v147_v43  ;;  %v129_v54 = vmax.f32 %v87_v51, %v108_v52  ;;  %v109_v57 = vld [vmem:[%s554_s3 + $0x40] sm:$0xff]  ;;  %v26_v61 = vld [vmem:[%s551_s0 + $0x48] sm:$0xff] }
   0xe   :  { %170 = vst.msk [vmem:[%s555_s4 + $0x28] sm:$0xff] %vm164_vm0, %v148_v48  ;;  %v130_v60 = vmax.f32 %v88_v56, %v109_v57  ;;  %v47_v62 = vld [vmem:[%s552_s1 + $0x48] sm:$0xff]  ;;  %v27_v3 = vld [vmem:[%s551_s0 + $0x50] sm:$0xff]  ;;  %v28_v10 = vld [vmem:[%s551_s0 + $0x58] sm:$0xff] }
   0xf   :  { %v149_v58 = vmax.f32 %v65_v44, %v128_v49  ;;  %v89_v63 = vld [vmem:[%s553_s2 + $0x48] sm:$0xff]  ;;  %v150_v0 = vmax.f32 %v66_v50, %v129_v54  ;;  %v68_v1 = vmax.f32 %v26_v61, %v47_v62  ;;  %v48_v4 = vld [vmem:[%s552_s1 + $0x50] sm:$0xff]  ;;  %v49_v12 = vld [vmem:[%s552_s1 + $0x58] sm:$0xff] }
  0x10   :  { %v110_v2 = vld [vmem:[%s554_s3 + $0x48] sm:$0xff]  ;;  %v151_v5 = vmax.f32 %v67_v59, %v130_v60  ;;  %v69_v7 = vmax.f32 %v27_v3, %v48_v4  ;;  %v90_v8 = vld [vmem:[%s553_s2 + $0x50] sm:$0xff]  ;;  %v91_v13 = vld [vmem:[%s553_s2 + $0x58] sm:$0xff]  ;;  %v70_v16 = vmax.f32 %v28_v10, %v49_v12 }
  0x11   :  { %171 = vst.msk [vmem:[%s555_s4 + $0x30] sm:$0xff] %vm164_vm0, %v149_v58  ;;  %v131_v6 = vmax.f32 %v89_v63, %v110_v2  ;;  %v111_v9 = vld [vmem:[%s554_s3 + $0x50] sm:$0xff]  ;;  %172 = vst.msk [vmem:[%s555_s4 + $0x38] sm:$0xff] %vm164_vm0, %v150_v0  ;;  %v112_v14 = vld [vmem:[%s554_s3 + $0x58] sm:$0xff] }
  0x12   :  { %v132_v11 = vmax.f32 %v90_v8, %v111_v9  ;;  %173 = vst.msk [vmem:[%s555_s4 + $0x40] sm:$0xff] %vm164_vm0, %v151_v5  ;;  %v133_v17 = vmax.f32 %v91_v13, %v112_v14  ;;  %v29_v18 = vld [vmem:[%s551_s0 + $0x60] sm:$0xff]  ;;  %v30_v24 = vld [vmem:[%s551_s0 + $0x68] sm:$0xff]  ;;  %v31_v31 = vld [vmem:[%s551_s0 + $0x70] sm:$0xff] }
  0x13   :  { %v152_v15 = vmax.f32 %v68_v1, %v131_v6  ;;  %v50_v19 = vld [vmem:[%s552_s1 + $0x60] sm:$0xff]  ;;  %v51_v25 = vld [vmem:[%s552_s1 + $0x68] sm:$0xff]  ;;  %v52_v33 = vld [vmem:[%s552_s1 + $0x70] sm:$0xff] }
  0x14   :  { %v92_v20 = vld [vmem:[%s553_s2 + $0x60] sm:$0xff]  ;;  %v153_v21 = vmax.f32 %v69_v7, %v132_v11  ;;  %v71_v22 = vmax.f32 %v29_v18, %v50_v19  ;;  %v154_v26 = vmax.f32 %v70_v16, %v133_v17  ;;  %v72_v28 = vmax.f32 %v30_v24, %v51_v25  ;;  %v93_v29 = vld [vmem:[%s553_s2 + $0x68] sm:$0xff]  ;;  %v94_v34 = vld [vmem:[%s553_s2 + $0x70] sm:$0xff] }
  0x15   :  { %v113_v23 = vld [vmem:[%s554_s3 + $0x60] sm:$0xff]  ;;  %174 = vst.msk [vmem:[%s555_s4 + $0x48] sm:$0xff] %vm164_vm0, %v152_v15  ;;  %v114_v30 = vld [vmem:[%s554_s3 + $0x68] sm:$0xff]  ;;  %v115_v35 = vld [vmem:[%s554_s3 + $0x70] sm:$0xff]  ;;  %v73_v37 = vmax.f32 %v31_v31, %v52_v33 }
  0x16   :  { %v134_v27 = vmax.f32 %v92_v20, %v113_v23  ;;  %175 = vst.msk [vmem:[%s555_s4 + $0x50] sm:$0xff] %vm164_vm0, %v153_v21  ;;  %v135_v32 = vmax.f32 %v93_v29, %v114_v30  ;;  %176 = vst.msk [vmem:[%s555_s4 + $0x58] sm:$0xff] %vm164_vm0, %v154_v26  ;;  %v136_v38 = vmax.f32 %v94_v34, %v115_v35  ;;  %v32_v39 = vld [vmem:[%s551_s0 + $0x78] sm:$0xff]  ;;  %v33_v45 = vld [vmem:[%s551_s0 + $0x80] sm:$0xff] }
  0x17   :  { %v53_v40 = vld [vmem:[%s552_s1 + $0x78] sm:$0xff]  ;;  %v54_v46 = vld [vmem:[%s552_s1 + $0x80] sm:$0xff]  ;;  %v34_v52 = vld [vmem:[%s551_s0 + $0x88] sm:$0xff] }
  0x18   :  { %v155_v36 = vmax.f32 %v71_v22, %v134_v27  ;;  %v95_v41 = vld [vmem:[%s553_s2 + $0x78] sm:$0xff]  ;;  %v156_v42 = vmax.f32 %v72_v28, %v135_v32  ;;  %v74_v43 = vmax.f32 %v32_v39, %v53_v40  ;;  %v157_v47 = vmax.f32 %v73_v37, %v136_v38  ;;  %v96_v50 = vld [vmem:[%s553_s2 + $0x80] sm:$0xff]  ;;  %v55_v54 = vld [vmem:[%s552_s1 + $0x88] sm:$0xff] }
  0x19   :  { %v116_v44 = vld [vmem:[%s554_s3 + $0x78] sm:$0xff]  ;;  %v75_v49 = vmax.f32 %v33_v45, %v54_v46  ;;  %v117_v51 = vld [vmem:[%s554_s3 + $0x80] sm:$0xff]  ;;  %v97_v55 = vld [vmem:[%s553_s2 + $0x88] sm:$0xff]  ;;  %v76_v58 = vmax.f32 %v34_v52, %v55_v54 }
  0x1a   :  { %177 = vst.msk [vmem:[%s555_s4 + $0x60] sm:$0xff] %vm164_vm0, %v155_v36  ;;  %v137_v48 = vmax.f32 %v95_v41, %v116_v44  ;;  %178 = vst.msk [vmem:[%s555_s4 + $0x68] sm:$0xff] %vm164_vm0, %v156_v42  ;;  %v138_v53 = vmax.f32 %v96_v50, %v117_v51  ;;  %v118_v56 = vld [vmem:[%s554_s3 + $0x88] sm:$0xff]  ;;  %v35_v60 = vld [vmem:[%s551_s0 + $0x90] sm:$0xff] }
  0x1b   :  { %179 = vst.msk [vmem:[%s555_s4 + $0x70] sm:$0xff] %vm164_vm0, %v157_v47  ;;  %v139_v59 = vmax.f32 %v97_v55, %v118_v56  ;;  %v56_v61 = vld [vmem:[%s552_s1 + $0x90] sm:$0xff]  ;;  %v36_v2 = vld [vmem:[%s551_s0 + $0x98] sm:$0xff]  ;;  %v37_v9 = vld [vmem:[%s551_s0 + $0xa0] sm:$0x3] }
  0x1c   :  { %v158_v57 = vmax.f32 %v74_v43, %v137_v48  ;;  %v98_v62 = vld [vmem:[%s553_s2 + $0x90] sm:$0xff]  ;;  %v159_v63 = vmax.f32 %v75_v49, %v138_v53  ;;  %v77_v0 = vmax.f32 %v35_v60, %v56_v61  ;;  %v57_v3 = vld [vmem:[%s552_s1 + $0x98] sm:$0xff]  ;;  %v58_v11 = vld [vmem:[%s552_s1 + $0xa0] sm:$0x3] }
  0x1d   :  { %v119_v1 = vld [vmem:[%s554_s3 + $0x90] sm:$0xff]  ;;  %v160_v4 = vmax.f32 %v76_v58, %v139_v59  ;;  %v78_v6 = vmax.f32 %v36_v2, %v57_v3  ;;  %v99_v7 = vld [vmem:[%s553_s2 + $0x98] sm:$0xff]  ;;  %v100_v12 = vld [vmem:[%s553_s2 + $0xa0] sm:$0x3]  ;;  %v79_v15 = vmax.f32 %v37_v9, %v58_v11 }
  0x1e   :  { %180 = vst.msk [vmem:[%s555_s4 + $0x78] sm:$0xff] %vm164_vm0, %v158_v57  ;;  %v140_v5 = vmax.f32 %v98_v62, %v119_v1  ;;  %v120_v8 = vld [vmem:[%s554_s3 + $0x98] sm:$0xff]  ;;  %181 = vst.msk [vmem:[%s555_s4 + $0x80] sm:$0xff] %vm164_vm0, %v159_v63  ;;  %v121_v13 = vld [vmem:[%s554_s3 + $0xa0] sm:$0x3] }
  0x1f   :  { %v141_v10 = vmax.f32 %v99_v7, %v120_v8  ;;  %182 = vst.msk [vmem:[%s555_s4 + $0x88] sm:$0xff] %vm164_vm0, %v160_v4  ;;  %v142_v16 = vmax.f32 %v100_v12, %v121_v13 }
  0x20   :  { %v161_v14 = vmax.f32 %v77_v0, %v140_v5 }
  0x21   :  { %v162_v17 = vmax.f32 %v78_v6, %v141_v10  ;;  %v163_v18 = vmax.f32 %v79_v15, %v142_v16 }
  0x22   :  { %183 = vst.msk [vmem:[%s555_s4 + $0x90] sm:$0xff] %vm164_vm0, %v161_v14 }
  0x23   :  { %184 = vst.msk [vmem:[%s555_s4 + $0x98] sm:$0xff] %vm164_vm0, %v162_v17 }
  0x24   :  { %186 = vst.msk [vmem:[%s555_s4 + $0xa0] sm:$0x3] %vm185_vm1, %v163_v18 }

// kernel: _lambda_.17
= control target key start
LH: loop header
LB: loop body
LE: loop exit
PB: predicated region body
PF: predicated region fallthrough
CT: control target
= control target key end

     0   :  { %v1396_v0 = vmov 0   ;;  %vm1100_vm2 = vcmask 130048   ;;  %s2228_s1 = inlined_call_operand.vmem [shape: bf16[256,16], index: 1, kind: input, shape index: {}]   ;;  %s2229_s0 = inlined_call_operand.vmem [shape: bf16[512,256], index: 0, kind: input, shape index: {}]   ;;  %s2230_s4 = inlined_call_operand.vmem [shape: f32[1,16], index: 4, kind: input, shape index: {}]   ;;  %s2231_s2 = inlined_call_operand.vmem [shape: f32[1,16], index: 2, kind: input, shape index: {}]   ;;  %s2232_s3 = inlined_call_operand.vmem [shape: f32[1,16], index: 3, kind: input, shape index: {}]   ;;  %s2233_s5 = inlined_call_operand.vmem [shape: f32[512,16], index: 5, kind: output, shape index: {}]  }
   0x1   :  { %533 = vmatprep.subr.bf16.mxu0 %v1396_v0  ;;  %1251 = vmatprep.subr.bf16.mxu1 %v1396_v0  ;;  %v1284_v1 = vld [vmem:[%s2228_s1] sm:$0xff]   ;;  %v1285_v2 = vld [vmem:[%s2228_s1 + $0x8] sm:$0xff]   ;;  %v1286_v3 = vld [vmem:[%s2228_s1 + $0x10] sm:$0xff]  }
   0x2   :  { %534 = vmatpush1.bf16.msra.mxu0 %v1284_v1  ;;  %1267 = vmatpush1.bf16.msra.mxu1 %v1284_v1  ;;  %v1287_v4 = vld [vmem:[%s2228_s1 + $0x18] sm:$0xff]   ;;  %v1288_v5 = vld [vmem:[%s2228_s1 + $0x20] sm:$0xff]   ;;  %v1289_v7 = vld [vmem:[%s2228_s1 + $0x28] sm:$0xff]  }
   0x3   :  { %535 = vmatprep.subr.bf16.mxu0 %v1396_v0  ;;  %1252 = vmatprep.subr.bf16.mxu1 %v1396_v0  ;;  %v1302_v6 = vld [vmem:[%s2229_s0 + $0x4] ss:$8 sps:$4 sm:$0xff]   ;;  %v1290_v9 = vld [vmem:[%s2228_s1 + $0x30] sm:$0xff]   ;;  %v1291_v10 = vld [vmem:[%s2228_s1 + $0x38] sm:$0xff]  }
   0x4   :  { %v1305_v8 = vld [vmem:[%s2229_s0 + $0x104] ss:$8 sps:$4 sm:$0xff]   ;;  %565 = vmatprep.mubr.bf16.mxu0 %v1302_v6  ;;  %v1294_v13 = vld [vmem:[%s2228_s1 + $0x50] sm:$0xff]   ;;  %v1295_v14 = vld [vmem:[%s2228_s1 + $0x58] sm:$0xff]  }
   0x5   :  { %693 = vmatprep.mubr.bf16.mxu1 %v1305_v8  ;;  %v1292_v11 = vld [vmem:[%s2228_s1 + $0x40] sm:$0xff]   ;;  %v1293_v12 = vld [vmem:[%s2228_s1 + $0x48] sm:$0xff]   ;;  %v1298_v17 = vld [vmem:[%s2228_s1 + $0x70] sm:$0xff]  }
   0x6   :  { %536 = vmatpush1.bf16.msra.mxu0 %v1285_v2  ;;  %1268 = vmatpush1.bf16.msra.mxu1 %v1285_v2  ;;  %v1296_v15 = vld [vmem:[%s2228_s1 + $0x60] sm:$0xff]   ;;  %v1297_v16 = vld [vmem:[%s2228_s1 + $0x68] sm:$0xff]   ;;  %v1299_v18 = vld [vmem:[%s2228_s1 + $0x78] sm:$0xff]  }
   0x7   :  { %537 = vmatprep.subr.bf16.mxu0 %v1396_v0  ;;  %1253 = vmatprep.subr.bf16.mxu1 %v1396_v0  ;;  %v1300_v19 = vld [vmem:[%s2229_s0] ss:$8 sps:$4 sm:$0xff]   ;;  %v1306_v21 = vld [vmem:[%s2229_s0 + $0x14] ss:$8 sps:$4 sm:$0xff]   ;;  %v1310_v23 = vld [vmem:[%s2229_s0 + $0x10] ss:$8 sps:$4 sm:$0xff]  }
   0x8   :  { %v1303_v20 = vld [vmem:[%s2229_s0 + $0x100] ss:$8 sps:$4 sm:$0xff]   ;;  %v1308_v22 = vld [vmem:[%s2229_s0 + $0x114] ss:$8 sps:$4 sm:$0xff]   ;;  %v1311_v24 = vld [vmem:[%s2229_s0 + $0x110] ss:$8 sps:$4 sm:$0xff]  }
   0x9   :  { %v1312_v25 = vld [vmem:[%s2229_s0 + $0x24] ss:$8 sps:$4 sm:$0xff]   ;;  %v1316_v27 = vld [vmem:[%s2229_s0 + $0x20] ss:$8 sps:$4 sm:$0xff]   ;;  %v1318_v29 = vld [vmem:[%s2229_s0 + $0x34] ss:$8 sps:$4 sm:$0xff]  }
   0xa   :  { %538 = vmatpush1.bf16.msra.mxu0 %v1286_v3  ;;  %1269 = vmatpush1.bf16.msra.mxu1 %v1286_v3  ;;  %v1314_v26 = vld [vmem:[%s2229_s0 + $0x124] ss:$8 sps:$4 sm:$0xff]   ;;  %v1317_v28 = vld [vmem:[%s2229_s0 + $0x120] ss:$8 sps:$4 sm:$0xff]   ;;  %v1320_v30 = vld [vmem:[%s2229_s0 + $0x134] ss:$8 sps:$4 sm:$0xff]  }
   0xb   :  { %539 = vmatprep.subr.bf16.mxu0 %v1396_v0  ;;  %1254 = vmatprep.subr.bf16.mxu1 %v1396_v0  ;;  %v1322_v31 = vld [vmem:[%s2229_s0 + $0x30] ss:$8 sps:$4 sm:$0xff]   ;;  %v1324_v33 = vld [vmem:[%s2229_s0 + $0x44] ss:$8 sps:$4 sm:$0xff]   ;;  %v1328_v35 = vld [vmem:[%s2229_s0 + $0x40] ss:$8 sps:$4 sm:$0xff]  }
   0xc   :  { %v1323_v32 = vld [vmem:[%s2229_s0 + $0x130] ss:$8 sps:$4 sm:$0xff]   ;;  %v1326_v34 = vld [vmem:[%s2229_s0 + $0x144] ss:$8 sps:$4 sm:$0xff]   ;;  %v1329_v36 = vld [vmem:[%s2229_s0 + $0x140] ss:$8 sps:$4 sm:$0xff]  }
   0xd   :  { %v1330_v37 = vld [vmem:[%s2229_s0 + $0x54] ss:$8 sps:$4 sm:$0xff]   ;;  %v1334_v39 = vld [vmem:[%s2229_s0 + $0x50] ss:$8 sps:$4 sm:$0xff]   ;;  %v1336_v41 = vld [vmem:[%s2229_s0 + $0x64] ss:$8 sps:$4 sm:$0xff]  }
   0xe   :  { %540 = vmatpush1.bf16.msra.mxu0 %v1287_v4  ;;  %1270 = vmatpush1.bf16.msra.mxu1 %v1287_v4  ;;  %v1332_v38 = vld [vmem:[%s2229_s0 + $0x154] ss:$8 sps:$4 sm:$0xff]   ;;  %v1335_v40 = vld [vmem:[%s2229_s0 + $0x150] ss:$8 sps:$4 sm:$0xff]   ;;  %v1338_v42 = vld [vmem:[%s2229_s0 + $0x164] ss:$8 sps:$4 sm:$0xff]  }
   0xf   :  { %541 = vmatprep.subr.bf16.mxu0 %v1396_v0  ;;  %1255 = vmatprep.subr.bf16.mxu1 %v1396_v0  ;;  %v1340_v43 = vld [vmem:[%s2229_s0 + $0x60] ss:$8 sps:$4 sm:$0xff]   ;;  %v1342_v45 = vld [vmem:[%s2229_s0 + $0x74] ss:$8 sps:$4 sm:$0xff]   ;;  %v1346_v47 = vld [vmem:[%s2229_s0 + $0x70] ss:$8 sps:$4 sm:$0xff]  }
  0x10   :  { %v1341_v44 = vld [vmem:[%s2229_s0 + $0x160] ss:$8 sps:$4 sm:$0xff]   ;;  %v1344_v46 = vld [vmem:[%s2229_s0 + $0x174] ss:$8 sps:$4 sm:$0xff]   ;;  %v1347_v48 = vld [vmem:[%s2229_s0 + $0x170] ss:$8 sps:$4 sm:$0xff]  }
  0x11   :  { %v1348_v49 = vld [vmem:[%s2229_s0 + $0x84] ss:$8 sps:$4 sm:$0xff]   ;;  %v1352_v51 = vld [vmem:[%s2229_s0 + $0x80] ss:$8 sps:$4 sm:$0xff]   ;;  %v1354_v53 = vld [vmem:[%s2229_s0 + $0x94] ss:$8 sps:$4 sm:$0xff]  }
  0x12   :  { %542 = vmatpush1.bf16.msra.mxu0 %v1288_v5  ;;  %1271 = vmatpush1.bf16.msra.mxu1 %v1288_v5  ;;  %v1350_v50 = vld [vmem:[%s2229_s0 + $0x184] ss:$8 sps:$4 sm:$0xff]   ;;  %v1353_v52 = vld [vmem:[%s2229_s0 + $0x180] ss:$8 sps:$4 sm:$0xff]   ;;  %v1356_v54 = vld [vmem:[%s2229_s0 + $0x194] ss:$8 sps:$4 sm:$0xff]  }
  0x13   :  { %543 = vmatprep.subr.bf16.mxu0 %v1396_v0  ;;  %1256 = vmatprep.subr.bf16.mxu1 %v1396_v0  ;;  %v1358_v55 = vld [vmem:[%s2229_s0 + $0x90] ss:$8 sps:$4 sm:$0xff]   ;;  %v1360_v57 = vld [vmem:[%s2229_s0 + $0xa4] ss:$8 sps:$4 sm:$0xff]   ;;  %v1364_v59 = vld [vmem:[%s2229_s0 + $0xa0] ss:$8 sps:$4 sm:$0xff]  }
  0x14   :  { %v1359_v56 = vld [vmem:[%s2229_s0 + $0x190] ss:$8 sps:$4 sm:$0xff]   ;;  %v1362_v58 = vld [vmem:[%s2229_s0 + $0x1a4] ss:$8 sps:$4 sm:$0xff]   ;;  %v1365_v60 = vld [vmem:[%s2229_s0 + $0x1a0] ss:$8 sps:$4 sm:$0xff]  }
  0x15   :  { %v1366_v61 = vld [vmem:[%s2229_s0 + $0xb4] ss:$8 sps:$4 sm:$0xff]   ;;  %v1370_v63 = vld [vmem:[%s2229_s0 + $0xb0] ss:$8 sps:$4 sm:$0xff]   ;;  %v1372_v2 = vld [vmem:[%s2229_s0 + $0xc4] ss:$8 sps:$4 sm:$0xff]  }
  0x16   :  { %544 = vmatpush1.bf16.msra.mxu0 %v1289_v7  ;;  %1272 = vmatpush1.bf16.msra.mxu1 %v1289_v7  ;;  %v1368_v62 = vld [vmem:[%s2229_s0 + $0x1b4] ss:$8 sps:$4 sm:$0xff]   ;;  %v1371_v1 = vld [vmem:[%s2229_s0 + $0x1b0] ss:$8 sps:$4 sm:$0xff]   ;;  %v1374_v3 = vld [vmem:[%s2229_s0 + $0x1c4] ss:$8 sps:$4 sm:$0xff]  }
  0x17   :  { %545 = vmatprep.subr.bf16.mxu0 %v1396_v0  ;;  %1257 = vmatprep.subr.bf16.mxu1 %v1396_v0  ;;  %v1376_v4 = vld [vmem:[%s2229_s0 + $0xc0] ss:$8 sps:$4 sm:$0xff]   ;;  %v1378_v6 = vld [vmem:[%s2229_s0 + $0xd4] ss:$8 sps:$4 sm:$0xff]   ;;  %v1382_v8 = vld [vmem:[%s2229_s0 + $0xd0] ss:$8 sps:$4 sm:$0xff]  }
  0x18   :  { %v1377_v5 = vld [vmem:[%s2229_s0 + $0x1c0] ss:$8 sps:$4 sm:$0xff]   ;;  %v1380_v7 = vld [vmem:[%s2229_s0 + $0x1d4] ss:$8 sps:$4 sm:$0xff]  }
  0x1a   :  { %546 = vmatpush1.bf16.msra.mxu0 %v1290_v9  ;;  %1273 = vmatpush1.bf16.msra.mxu1 %v1290_v9  ;;  %v1383_v9 = vld [vmem:[%s2229_s0 + $0x1d0] ss:$8 sps:$4 sm:$0xff]  }
  0x1b   :  { %547 = vmatprep.subr.bf16.mxu0 %v1396_v0  ;;  %1258 = vmatprep.subr.bf16.mxu1 %v1396_v0 }
  0x1e   :  { %548 = vmatpush1.bf16.msra.mxu0 %v1291_v10  ;;  %1274 = vmatpush1.bf16.msra.mxu1 %v1291_v10  ;;  %v1384_v10 = vld [vmem:[%s2229_s0 + $0xe4] ss:$8 sps:$4 sm:$0xff]  }
  0x1f   :  { %549 = vmatprep.subr.bf16.mxu0 %v1396_v0  ;;  %1259 = vmatprep.subr.bf16.mxu1 %v1396_v0 }
  0x22   :  { %550 = vmatpush1.bf16.msra.mxu0 %v1292_v11  ;;  %1275 = vmatpush1.bf16.msra.mxu1 %v1292_v11  ;;  %v1386_v11 = vld [vmem:[%s2229_s0 + $0x1e4] ss:$8 sps:$4 sm:$0xff]  }
  0x23   :  { %551 = vmatprep.subr.bf16.mxu0 %v1396_v0  ;;  %1260 = vmatprep.subr.bf16.mxu1 %v1396_v0 }
  0x26   :  { %552 = vmatpush1.bf16.msra.mxu0 %v1293_v12  ;;  %1276 = vmatpush1.bf16.msra.mxu1 %v1293_v12  ;;  %v1388_v12 = vld [vmem:[%s2229_s0 + $0xe0] ss:$8 sps:$4 sm:$0xff]  }
  0x27   :  { %553 = vmatprep.subr.bf16.mxu0 %v1396_v0  ;;  %1261 = vmatprep.subr.bf16.mxu1 %v1396_v0 }
  0x2a   :  { %554 = vmatpush1.bf16.msra.mxu0 %v1294_v13  ;;  %1277 = vmatpush1.bf16.msra.mxu1 %v1294_v13  ;;  %v1389_v13 = vld [vmem:[%s2229_s0 + $0x1e0] ss:$8 sps:$4 sm:$0xff]  }
  0x2b   :  { %555 = vmatprep.subr.bf16.mxu0 %v1396_v0  ;;  %1262 = vmatprep.subr.bf16.mxu1 %v1396_v0 }
  0x2e   :  { %556 = vmatpush1.bf16.msra.mxu0 %v1295_v14  ;;  %1278 = vmatpush1.bf16.msra.mxu1 %v1295_v14  ;;  %v1390_v14 = vld [vmem:[%s2229_s0 + $0xf4] ss:$8 sps:$4 sm:$0xff]  }
  0x2f   :  { %557 = vmatprep.subr.bf16.mxu0 %v1396_v0  ;;  %1263 = vmatprep.subr.bf16.mxu1 %v1396_v0 }
  0x32   :  { %558 = vmatpush1.bf16.msra.mxu0 %v1296_v15  ;;  %1279 = vmatpush1.bf16.msra.mxu1 %v1296_v15  ;;  %v1392_v15 = vld [vmem:[%s2229_s0 + $0x1f4] ss:$8 sps:$4 sm:$0xff]  }
  0x33   :  { %559 = vmatprep.subr.bf16.mxu0 %v1396_v0  ;;  %1264 = vmatprep.subr.bf16.mxu1 %v1396_v0 }
  0x36   :  { %560 = vmatpush1.bf16.msra.mxu0 %v1297_v16  ;;  %1280 = vmatpush1.bf16.msra.mxu1 %v1297_v16  ;;  %v1394_v16 = vld [vmem:[%s2229_s0 + $0xf0] ss:$8 sps:$4 sm:$0xff]  }
  0x37   :  { %561 = vmatprep.subr.bf16.mxu0 %v1396_v0  ;;  %1265 = vmatprep.subr.bf16.mxu1 %v1396_v0 }
  0x3a   :  { %562 = vmatpush1.bf16.msra.mxu0 %v1298_v17  ;;  %1281 = vmatpush1.bf16.msra.mxu1 %v1298_v17  ;;  %v1395_v17 = vld [vmem:[%s2229_s0 + $0x1f0] ss:$8 sps:$4 sm:$0xff]  }
  0x3b   :  { %563 = vmatprep.subr.bf16.mxu0 %v1396_v0  ;;  %1266 = vmatprep.subr.bf16.mxu1 %v1396_v0 }
  0x3e   :  { %564 = vmatpush1.bf16.msra.mxu0 %v1299_v18  ;;  %1282 = vmatpush1.bf16.msra.mxu1 %v1299_v18  ;;  %v1031_v18 = vlaneseq }
  0x41   :  { %566 = vmatmul.mubr.bf16.vlgmr.msra.gmra.mrb[0].mxu0 %v1300_v19  ;;  %694 = vmatmul.mubr.bf16.vlgmr.msra.gmra.mrb[0].mxu1 %v1303_v20  ;;  %v964_v19 = vld [vmem:[%s2230_s4] sm:$0x1]  ;;  %v1032_v20 = vshrl.u32 %v1031_v18, 7 }
  0x42   :  { %573 = vmatprep.mubr.bf16.mxu0 %v1306_v21  ;;  %701 = vmatprep.mubr.bf16.mxu1 %v1308_v22  ;;  %vm965_vm0 = vcmp.gt.f32.partialorder %v964_v19, 0.0 }
  0x43   :  { %v1033_v21 = vsub.s32 0, %v1032_v20  ;;  %v1030_v22 = vsel %vm965_vm0, 1, %v1396_v0 }
  0x49   :  { %574 = vmatmul.mubr.bf16.gmra.mrb[4].mxu0 %v1310_v23  ;;  %702 = vmatmul.mubr.bf16.gmra.mrb[4].mxu1 %v1311_v24  ;;  %v1706_v23 = vld [vmem:[%s2231_s2] ss:$0 sm:$0xff] }
  0x4a   :  { %581 = vmatprep.mubr.bf16.mxu0 %v1312_v25  ;;  %709 = vmatprep.mubr.bf16.mxu1 %v1314_v26  ;;  %v1711_v25 = vld [vmem:[%s2232_s3] ss:$0 sm:$0xff]  ;;  %v1713_v26 = vrot.slane %v1030_v22, %v1033_v21 }
  0x4c   :  { %vm1035_vm1 = vcmp.eq.s32.totalorder %v1713_v26, 1 }
  0x51   :  { %582 = vmatmul.mubr.bf16.gmra.mrb[8].mxu0 %v1316_v27  ;;  %710 = vmatmul.mubr.bf16.gmra.mrb[8].mxu1 %v1317_v28 }
  0x52   :  { %589 = vmatprep.mubr.bf16.mxu0 %v1318_v29  ;;  %717 = vmatprep.mubr.bf16.mxu1 %v1320_v30 }
  0x59   :  { %590 = vmatmul.mubr.bf16.gmra.mrb[12].mxu0 %v1322_v31  ;;  %718 = vmatmul.mubr.bf16.gmra.mrb[12].mxu1 %v1323_v32 }
  0x5a   :  { %597 = vmatprep.mubr.bf16.mxu0 %v1324_v33  ;;  %725 = vmatprep.mubr.bf16.mxu1 %v1326_v34 }
  0x61   :  { %598 = vmatmul.mubr.bf16.gmra.mrb[16].mxu0 %v1328_v35  ;;  %726 = vmatmul.mubr.bf16.gmra.mrb[16].mxu1 %v1329_v36 }
  0x62   :  { %605 = vmatprep.mubr.bf16.mxu0 %v1330_v37  ;;  %733 = vmatprep.mubr.bf16.mxu1 %v1332_v38 }
  0x69   :  { %606 = vmatmul.mubr.bf16.gmra.mrb[20].mxu0 %v1334_v39  ;;  %734 = vmatmul.mubr.bf16.gmra.mrb[20].mxu1 %v1335_v40 }
  0x6a   :  { %613 = vmatprep.mubr.bf16.mxu0 %v1336_v41  ;;  %741 = vmatprep.mubr.bf16.mxu1 %v1338_v42 }
  0x71   :  { %614 = vmatmul.mubr.bf16.gmra.mrb[24].mxu0 %v1340_v43  ;;  %742 = vmatmul.mubr.bf16.gmra.mrb[24].mxu1 %v1341_v44 }
  0x72   :  { %621 = vmatprep.mubr.bf16.mxu0 %v1342_v45  ;;  %749 = vmatprep.mubr.bf16.mxu1 %v1344_v46 }
  0x79   :  { %622 = vmatmul.mubr.bf16.gmra.mrb[28].mxu0 %v1346_v47  ;;  %750 = vmatmul.mubr.bf16.gmra.mrb[28].mxu1 %v1347_v48 }
  0x7a   :  { %629 = vmatprep.mubr.bf16.mxu0 %v1348_v49  ;;  %757 = vmatprep.mubr.bf16.mxu1 %v1350_v50 }
  0x81   :  { %630 = vmatmul.mubr.bf16.gmra.mrb[32].mxu0 %v1352_v51  ;;  %758 = vmatmul.mubr.bf16.gmra.mrb[32].mxu1 %v1353_v52 }
  0x82   :  { %637 = vmatprep.mubr.bf16.mxu0 %v1354_v53  ;;  %765 = vmatprep.mubr.bf16.mxu1 %v1356_v54 }
  0x89   :  { %638 = vmatmul.mubr.bf16.gmra.mrb[36].mxu0 %v1358_v55  ;;  %766 = vmatmul.mubr.bf16.gmra.mrb[36].mxu1 %v1359_v56 }
  0x8a   :  { %645 = vmatprep.mubr.bf16.mxu0 %v1360_v57  ;;  %773 = vmatprep.mubr.bf16.mxu1 %v1362_v58 }
  0x91   :  { %646 = vmatmul.mubr.bf16.gmra.mrb[40].mxu0 %v1364_v59  ;;  %774 = vmatmul.mubr.bf16.gmra.mrb[40].mxu1 %v1365_v60 }
  0x92   :  { %653 = vmatprep.mubr.bf16.mxu0 %v1366_v61  ;;  %781 = vmatprep.mubr.bf16.mxu1 %v1368_v62 }
  0x99   :  { %654 = vmatmul.mubr.bf16.gmra.mrb[44].mxu0 %v1370_v63  ;;  %782 = vmatmul.mubr.bf16.gmra.mrb[44].mxu1 %v1371_v1 }
  0x9a   :  { %661 = vmatprep.mubr.bf16.mxu0 %v1372_v2  ;;  %789 = vmatprep.mubr.bf16.mxu1 %v1374_v3 }
  0xa1   :  { %662 = vmatmul.mubr.bf16.gmra.mrb[48].mxu0 %v1376_v4  ;;  %790 = vmatmul.mubr.bf16.gmra.mrb[48].mxu1 %v1377_v5 }
  0xa2   :  { %669 = vmatprep.mubr.bf16.mxu0 %v1378_v6  ;;  %797 = vmatprep.mubr.bf16.mxu1 %v1380_v7 }
  0xa9   :  { %670 = vmatmul.mubr.bf16.gmra.mrb[52].mxu0 %v1382_v8  ;;  %798 = vmatmul.mubr.bf16.gmra.mrb[52].mxu1 %v1383_v9 }
  0xaa   :  { %677 = vmatprep.mubr.bf16.mxu0 %v1384_v10  ;;  %805 = vmatprep.mubr.bf16.mxu1 %v1386_v11 }
  0xb1   :  { %678 = vmatmul.mubr.bf16.gmra.mrb[56].mxu0 %v1388_v12  ;;  %806 = vmatmul.mubr.bf16.gmra.mrb[56].mxu1 %v1389_v13 }
  0xb2   :  { %685 = vmatprep.mubr.bf16.mxu0 %v1390_v14  ;;  %813 = vmatprep.mubr.bf16.mxu1 %v1392_v15 }
  0xb9   :  { %686 = vmatmul.mubr.bf16.gmra.mrb[60].mxu0 %v1394_v16  ;;  %814 = vmatmul.mubr.bf16.gmra.mrb[60].mxu1 %v1395_v17 }
 0x114   :  { %v567_v24 = vpop.f32.mrb[0].mxu0  ;;  %v695_v27 = vpop.f32.mrb[0].mxu1 }
 0x115   :  { %v829_v28 = vmul.f32 %v1706_v23, %v567_v24  ;;  %v861_v29 = vmul.f32 %v1706_v23, %v695_v27  ;;  %v569_v30 = vpop.f32.mrb[1].mxu0  ;;  %v697_v0 = vpop.f32.mrb[1].mxu1 }
 0x116   :  { %v570_v31 = vpop.f32.mrb[2].mxu0  ;;  %v698_v32 = vpop.f32.mrb[2].mxu1 }
 0x117   :  { %v900_v33 = vadd.f32 %v1711_v25, %v829_v28  ;;  %v932_v34 = vadd.f32 %v1711_v25, %v861_v29  ;;  %v830_v35 = vmul.f32 %v1706_v23, %v570_v31  ;;  %v862_v36 = vmul.f32 %v1706_v23, %v698_v32  ;;  %v572_v37 = vpop.f32.mrb[3].mxu0  ;;  %v700_v38 = vpop.f32.mrb[3].mxu1 }
 0x119   :  { %v966_v39 = vmax.f32 %v900_v33, 0.0  ;;  %v998_v40 = vmax.f32 %v932_v34, 0.0  ;;  %v901_v41 = vadd.f32 %v1711_v25, %v830_v35  ;;  %v933_v42 = vadd.f32 %v1711_v25, %v862_v36 }
 0x11b   :  { %v1036_v43 = vsel %vm1035_vm1, %v966_v39, %v900_v33  ;;  %v1068_v44 = vsel %vm1035_vm1, %v998_v40, %v932_v34  ;;  %v967_v45 = vmax.f32 %v901_v41, 0.0  ;;  %v999_v46 = vmax.f32 %v933_v42, 0.0 }
 0x11c   :  { %1101 = vst.msk [vmem:[%s2233_s5] sm:$0xff] %vm1100_vm2, %v1036_v43  ;;  %1133 = vst.msk [vmem:[%s2233_s5 + $0x100] sm:$0xff] %vm1100_vm2, %v1068_v44  ;;  %v575_v47 = vpop.f32.mrb[4].mxu0  ;;  %v703_v48 = vpop.f32.mrb[4].mxu1 }
 0x11d   :  { %v1037_v49 = vsel %vm1035_vm1, %v967_v45, %v901_v41  ;;  %v1069_v50 = vsel %vm1035_vm1, %v999_v46, %v933_v42  ;;  %v831_v51 = vmul.f32 %v1706_v23, %v575_v47  ;;  %v863_v52 = vmul.f32 %v1706_v23, %v703_v48  ;;  %v577_v53 = vpop.f32.mrb[5].mxu0  ;;  %v705_v54 = vpop.f32.mrb[5].mxu1 }
 0x11e   :  { %1102 = vst.msk [vmem:[%s2233_s5 + $0x8] sm:$0xff] %vm1100_vm2, %v1037_v49  ;;  %1134 = vst.msk [vmem:[%s2233_s5 + $0x108] sm:$0xff] %vm1100_vm2, %v1069_v50  ;;  %v578_v55 = vpop.f32.mrb[6].mxu0  ;;  %v706_v56 = vpop.f32.mrb[6].mxu1 }
 0x11f   :  { %v902_v57 = vadd.f32 %v1711_v25, %v831_v51  ;;  %v934_v58 = vadd.f32 %v1711_v25, %v863_v52  ;;  %v832_v59 = vmul.f32 %v1706_v23, %v578_v55  ;;  %v864_v60 = vmul.f32 %v1706_v23, %v706_v56  ;;  %v580_v61 = vpop.f32.mrb[7].mxu0  ;;  %v708_v62 = vpop.f32.mrb[7].mxu1 }
 0x121   :  { %v968_v63 = vmax.f32 %v902_v57, 0.0  ;;  %v1000_v1 = vmax.f32 %v934_v58, 0.0  ;;  %v903_v2 = vadd.f32 %v1711_v25, %v832_v59  ;;  %v935_v3 = vadd.f32 %v1711_v25, %v864_v60 }
 0x123   :  { %v1038_v4 = vsel %vm1035_vm1, %v968_v63, %v902_v57  ;;  %v1070_v5 = vsel %vm1035_vm1, %v1000_v1, %v934_v58  ;;  %v969_v6 = vmax.f32 %v903_v2, 0.0  ;;  %v1001_v7 = vmax.f32 %v935_v3, 0.0 }
 0x124   :  { %1103 = vst.msk [vmem:[%s2233_s5 + $0x10] sm:$0xff] %vm1100_vm2, %v1038_v4  ;;  %1135 = vst.msk [vmem:[%s2233_s5 + $0x110] sm:$0xff] %vm1100_vm2, %v1070_v5  ;;  %v583_v8 = vpop.f32.mrb[8].mxu0  ;;  %v711_v9 = vpop.f32.mrb[8].mxu1 }
 0x125   :  { %v1039_v10 = vsel %vm1035_vm1, %v969_v6, %v903_v2  ;;  %v1071_v11 = vsel %vm1035_vm1, %v1001_v7, %v935_v3  ;;  %v833_v12 = vmul.f32 %v1706_v23, %v583_v8  ;;  %v865_v13 = vmul.f32 %v1706_v23, %v711_v9  ;;  %v585_v14 = vpop.f32.mrb[9].mxu0  ;;  %v713_v15 = vpop.f32.mrb[9].mxu1 }
 0x126   :  { %1104 = vst.msk [vmem:[%s2233_s5 + $0x18] sm:$0xff] %vm1100_vm2, %v1039_v10  ;;  %1136 = vst.msk [vmem:[%s2233_s5 + $0x118] sm:$0xff] %vm1100_vm2, %v1071_v11  ;;  %v586_v16 = vpop.f32.mrb[10].mxu0  ;;  %v714_v17 = vpop.f32.mrb[10].mxu1 }
 0x127   :  { %v904_v18 = vadd.f32 %v1711_v25, %v833_v12  ;;  %v936_v19 = vadd.f32 %v1711_v25, %v865_v13  ;;  %v834_v20 = vmul.f32 %v1706_v23, %v586_v16  ;;  %v866_v21 = vmul.f32 %v1706_v23, %v714_v17  ;;  %v588_v22 = vpop.f32.mrb[11].mxu0  ;;  %v716_v24 = vpop.f32.mrb[11].mxu1 }
 0x129   :  { %v970_v27 = vmax.f32 %v904_v18, 0.0  ;;  %v1002_v28 = vmax.f32 %v936_v19, 0.0  ;;  %v905_v29 = vadd.f32 %v1711_v25, %v834_v20  ;;  %v937_v30 = vadd.f32 %v1711_v25, %v866_v21 }
 0x12b   :  { %v1040_v0 = vsel %vm1035_vm1, %v970_v27, %v904_v18  ;;  %v1072_v31 = vsel %vm1035_vm1, %v1002_v28, %v936_v19  ;;  %v971_v32 = vmax.f32 %v905_v29, 0.0  ;;  %v1003_v33 = vmax.f32 %v937_v30, 0.0 }
 0x12c   :  { %1105 = vst.msk [vmem:[%s2233_s5 + $0x20] sm:$0xff] %vm1100_vm2, %v1040_v0  ;;  %1137 = vst.msk [vmem:[%s2233_s5 + $0x120] sm:$0xff] %vm1100_vm2, %v1072_v31  ;;  %v591_v34 = vpop.f32.mrb[12].mxu0  ;;  %v719_v35 = vpop.f32.mrb[12].mxu1 }
 0x12d   :  { %v1041_v36 = vsel %vm1035_vm1, %v971_v32, %v905_v29  ;;  %v1073_v37 = vsel %vm1035_vm1, %v1003_v33, %v937_v30  ;;  %v835_v38 = vmul.f32 %v1706_v23, %v591_v34  ;;  %v867_v39 = vmul.f32 %v1706_v23, %v719_v35  ;;  %v593_v40 = vpop.f32.mrb[13].mxu0  ;;  %v721_v41 = vpop.f32.mrb[13].mxu1 }
 0x12e   :  { %1106 = vst.msk [vmem:[%s2233_s5 + $0x28] sm:$0xff] %vm1100_vm2, %v1041_v36  ;;  %1138 = vst.msk [vmem:[%s2233_s5 + $0x128] sm:$0xff] %vm1100_vm2, %v1073_v37  ;;  %v594_v42 = vpop.f32.mrb[14].mxu0  ;;  %v722_v43 = vpop.f32.mrb[14].mxu1 }
 0x12f   :  { %v906_v44 = vadd.f32 %v1711_v25, %v835_v38  ;;  %v938_v45 = vadd.f32 %v1711_v25, %v867_v39  ;;  %v836_v46 = vmul.f32 %v1706_v23, %v594_v42  ;;  %v868_v47 = vmul.f32 %v1706_v23, %v722_v43  ;;  %v596_v48 = vpop.f32.mrb[15].mxu0  ;;  %v724_v49 = vpop.f32.mrb[15].mxu1 }
 0x131   :  { %v972_v50 = vmax.f32 %v906_v44, 0.0  ;;  %v1004_v51 = vmax.f32 %v938_v45, 0.0  ;;  %v907_v52 = vadd.f32 %v1711_v25, %v836_v46  ;;  %v939_v53 = vadd.f32 %v1711_v25, %v868_v47 }
 0x133   :  { %v1042_v54 = vsel %vm1035_vm1, %v972_v50, %v906_v44  ;;  %v1074_v55 = vsel %vm1035_vm1, %v1004_v51, %v938_v45  ;;  %v973_v56 = vmax.f32 %v907_v52, 0.0  ;;  %v1005_v57 = vmax.f32 %v939_v53, 0.0 }
 0x134   :  { %1107 = vst.msk [vmem:[%s2233_s5 + $0x30] sm:$0xff] %vm1100_vm2, %v1042_v54  ;;  %1139 = vst.msk [vmem:[%s2233_s5 + $0x130] sm:$0xff] %vm1100_vm2, %v1074_v55  ;;  %v599_v58 = vpop.f32.mrb[16].mxu0  ;;  %v727_v59 = vpop.f32.mrb[16].mxu1 }
 0x135   :  { %v1043_v60 = vsel %vm1035_vm1, %v973_v56, %v907_v52  ;;  %v1075_v61 = vsel %vm1035_vm1, %v1005_v57, %v939_v53  ;;  %v837_v62 = vmul.f32 %v1706_v23, %v599_v58  ;;  %v869_v63 = vmul.f32 %v1706_v23, %v727_v59  ;;  %v601_v1 = vpop.f32.mrb[17].mxu0  ;;  %v729_v2 = vpop.f32.mrb[17].mxu1 }
 0x136   :  { %1108 = vst.msk [vmem:[%s2233_s5 + $0x38] sm:$0xff] %vm1100_vm2, %v1043_v60  ;;  %1140 = vst.msk [vmem:[%s2233_s5 + $0x138] sm:$0xff] %vm1100_vm2, %v1075_v61  ;;  %v602_v3 = vpop.f32.mrb[18].mxu0  ;;  %v730_v4 = vpop.f32.mrb[18].mxu1 }
 0x137   :  { %v908_v5 = vadd.f32 %v1711_v25, %v837_v62  ;;  %v940_v6 = vadd.f32 %v1711_v25, %v869_v63  ;;  %v838_v7 = vmul.f32 %v1706_v23, %v602_v3  ;;  %v870_v8 = vmul.f32 %v1706_v23, %v730_v4  ;;  %v604_v9 = vpop.f32.mrb[19].mxu0  ;;  %v732_v10 = vpop.f32.mrb[19].mxu1 }
 0x139   :  { %v974_v11 = vmax.f32 %v908_v5, 0.0  ;;  %v1006_v12 = vmax.f32 %v940_v6, 0.0  ;;  %v909_v13 = vadd.f32 %v1711_v25, %v838_v7  ;;  %v941_v14 = vadd.f32 %v1711_v25, %v870_v8 }
 0x13b   :  { %v1044_v15 = vsel %vm1035_vm1, %v974_v11, %v908_v5  ;;  %v1076_v16 = vsel %vm1035_vm1, %v1006_v12, %v940_v6  ;;  %v975_v17 = vmax.f32 %v909_v13, 0.0  ;;  %v1007_v18 = vmax.f32 %v941_v14, 0.0 }
 0x13c   :  { %1109 = vst.msk [vmem:[%s2233_s5 + $0x40] sm:$0xff] %vm1100_vm2, %v1044_v15  ;;  %1141 = vst.msk [vmem:[%s2233_s5 + $0x140] sm:$0xff] %vm1100_vm2, %v1076_v16  ;;  %v607_v19 = vpop.f32.mrb[20].mxu0  ;;  %v735_v20 = vpop.f32.mrb[20].mxu1 }
 0x13d   :  { %v1045_v21 = vsel %vm1035_vm1, %v975_v17, %v909_v13  ;;  %v1077_v22 = vsel %vm1035_vm1, %v1007_v18, %v941_v14  ;;  %v839_v24 = vmul.f32 %v1706_v23, %v607_v19  ;;  %v871_v27 = vmul.f32 %v1706_v23, %v735_v20  ;;  %v609_v28 = vpop.f32.mrb[21].mxu0  ;;  %v737_v29 = vpop.f32.mrb[21].mxu1 }
 0x13e   :  { %1110 = vst.msk [vmem:[%s2233_s5 + $0x48] sm:$0xff] %vm1100_vm2, %v1045_v21  ;;  %1142 = vst.msk [vmem:[%s2233_s5 + $0x148] sm:$0xff] %vm1100_vm2, %v1077_v22  ;;  %v610_v30 = vpop.f32.mrb[22].mxu0  ;;  %v738_v0 = vpop.f32.mrb[22].mxu1 }
 0x13f   :  { %v910_v31 = vadd.f32 %v1711_v25, %v839_v24  ;;  %v942_v32 = vadd.f32 %v1711_v25, %v871_v27  ;;  %v840_v33 = vmul.f32 %v1706_v23, %v610_v30  ;;  %v872_v34 = vmul.f32 %v1706_v23, %v738_v0  ;;  %v612_v35 = vpop.f32.mrb[23].mxu0  ;;  %v740_v36 = vpop.f32.mrb[23].mxu1 }
 0x141   :  { %v976_v37 = vmax.f32 %v910_v31, 0.0  ;;  %v1008_v38 = vmax.f32 %v942_v32, 0.0  ;;  %v911_v39 = vadd.f32 %v1711_v25, %v840_v33  ;;  %v943_v40 = vadd.f32 %v1711_v25, %v872_v34 }
 0x143   :  { %v1046_v41 = vsel %vm1035_vm1, %v976_v37, %v910_v31  ;;  %v1078_v42 = vsel %vm1035_vm1, %v1008_v38, %v942_v32  ;;  %v977_v43 = vmax.f32 %v911_v39, 0.0  ;;  %v1009_v44 = vmax.f32 %v943_v40, 0.0 }
 0x144   :  { %1111 = vst.msk [vmem:[%s2233_s5 + $0x50] sm:$0xff] %vm1100_vm2, %v1046_v41  ;;  %1143 = vst.msk [vmem:[%s2233_s5 + $0x150] sm:$0xff] %vm1100_vm2, %v1078_v42  ;;  %v615_v45 = vpop.f32.mrb[24].mxu0  ;;  %v743_v46 = vpop.f32.mrb[24].mxu1 }
 0x145   :  { %v1047_v47 = vsel %vm1035_vm1, %v977_v43, %v911_v39  ;;  %v1079_v48 = vsel %vm1035_vm1, %v1009_v44, %v943_v40  ;;  %v841_v49 = vmul.f32 %v1706_v23, %v615_v45  ;;  %v873_v50 = vmul.f32 %v1706_v23, %v743_v46  ;;  %v617_v51 = vpop.f32.mrb[25].mxu0  ;;  %v745_v52 = vpop.f32.mrb[25].mxu1 }
 0x146   :  { %1112 = vst.msk [vmem:[%s2233_s5 + $0x58] sm:$0xff] %vm1100_vm2, %v1047_v47  ;;  %1144 = vst.msk [vmem:[%s2233_s5 + $0x158] sm:$0xff] %vm1100_vm2, %v1079_v48  ;;  %v618_v53 = vpop.f32.mrb[26].mxu0  ;;  %v746_v54 = vpop.f32.mrb[26].mxu1 }
 0x147   :  { %v912_v55 = vadd.f32 %v1711_v25, %v841_v49  ;;  %v944_v56 = vadd.f32 %v1711_v25, %v873_v50  ;;  %v842_v57 = vmul.f32 %v1706_v23, %v618_v53  ;;  %v874_v58 = vmul.f32 %v1706_v23, %v746_v54  ;;  %v620_v59 = vpop.f32.mrb[27].mxu0  ;;  %v748_v60 = vpop.f32.mrb[27].mxu1 }
 0x149   :  { %v978_v61 = vmax.f32 %v912_v55, 0.0  ;;  %v1010_v62 = vmax.f32 %v944_v56, 0.0  ;;  %v913_v63 = vadd.f32 %v1711_v25, %v842_v57  ;;  %v945_v1 = vadd.f32 %v1711_v25, %v874_v58 }
 0x14b   :  { %v1048_v2 = vsel %vm1035_vm1, %v978_v61, %v912_v55  ;;  %v1080_v3 = vsel %vm1035_vm1, %v1010_v62, %v944_v56  ;;  %v979_v4 = vmax.f32 %v913_v63, 0.0  ;;  %v1011_v5 = vmax.f32 %v945_v1, 0.0 }
 0x14c   :  { %1113 = vst.msk [vmem:[%s2233_s5 + $0x60] sm:$0xff] %vm1100_vm2, %v1048_v2  ;;  %1145 = vst.msk [vmem:[%s2233_s5 + $0x160] sm:$0xff] %vm1100_vm2, %v1080_v3  ;;  %v623_v6 = vpop.f32.mrb[28].mxu0  ;;  %v751_v7 = vpop.f32.mrb[28].mxu1 }
 0x14d   :  { %v1049_v8 = vsel %vm1035_vm1, %v979_v4, %v913_v63  ;;  %v1081_v9 = vsel %vm1035_vm1, %v1011_v5, %v945_v1  ;;  %v843_v10 = vmul.f32 %v1706_v23, %v623_v6  ;;  %v875_v11 = vmul.f32 %v1706_v23, %v751_v7  ;;  %v625_v12 = vpop.f32.mrb[29].mxu0  ;;  %v753_v13 = vpop.f32.mrb[29].mxu1 }
 0x14e   :  { %1114 = vst.msk [vmem:[%s2233_s5 + $0x68] sm:$0xff] %vm1100_vm2, %v1049_v8  ;;  %1146 = vst.msk [vmem:[%s2233_s5 + $0x168] sm:$0xff] %vm1100_vm2, %v1081_v9  ;;  %v626_v14 = vpop.f32.mrb[30].mxu0  ;;  %v754_v15 = vpop.f32.mrb[30].mxu1 }
 0x14f   :  { %v914_v16 = vadd.f32 %v1711_v25, %v843_v10  ;;  %v946_v17 = vadd.f32 %v1711_v25, %v875_v11  ;;  %v844_v18 = vmul.f32 %v1706_v23, %v626_v14  ;;  %v876_v19 = vmul.f32 %v1706_v23, %v754_v15  ;;  %v628_v20 = vpop.f32.mrb[31].mxu0  ;;  %v756_v21 = vpop.f32.mrb[31].mxu1 }
 0x151   :  { %v980_v22 = vmax.f32 %v914_v16, 0.0  ;;  %v1012_v24 = vmax.f32 %v946_v17, 0.0  ;;  %v915_v27 = vadd.f32 %v1711_v25, %v844_v18  ;;  %v947_v28 = vadd.f32 %v1711_v25, %v876_v19 }
 0x153   :  { %v1050_v29 = vsel %vm1035_vm1, %v980_v22, %v914_v16  ;;  %v1082_v30 = vsel %vm1035_vm1, %v1012_v24, %v946_v17  ;;  %v981_v0 = vmax.f32 %v915_v27, 0.0  ;;  %v1013_v31 = vmax.f32 %v947_v28, 0.0 }
 0x154   :  { %1115 = vst.msk [vmem:[%s2233_s5 + $0x70] sm:$0xff] %vm1100_vm2, %v1050_v29  ;;  %1147 = vst.msk [vmem:[%s2233_s5 + $0x170] sm:$0xff] %vm1100_vm2, %v1082_v30  ;;  %v631_v32 = vpop.f32.mrb[32].mxu0  ;;  %v759_v33 = vpop.f32.mrb[32].mxu1 }
 0x155   :  { %v1051_v34 = vsel %vm1035_vm1, %v981_v0, %v915_v27  ;;  %v1083_v35 = vsel %vm1035_vm1, %v1013_v31, %v947_v28  ;;  %v845_v36 = vmul.f32 %v1706_v23, %v631_v32  ;;  %v877_v37 = vmul.f32 %v1706_v23, %v759_v33  ;;  %v633_v38 = vpop.f32.mrb[33].mxu0  ;;  %v761_v39 = vpop.f32.mrb[33].mxu1 }
 0x156   :  { %1116 = vst.msk [vmem:[%s2233_s5 + $0x78] sm:$0xff] %vm1100_vm2, %v1051_v34  ;;  %1148 = vst.msk [vmem:[%s2233_s5 + $0x178] sm:$0xff] %vm1100_vm2, %v1083_v35  ;;  %v634_v40 = vpop.f32.mrb[34].mxu0  ;;  %v762_v41 = vpop.f32.mrb[34].mxu1 }
 0x157   :  { %v916_v42 = vadd.f32 %v1711_v25, %v845_v36  ;;  %v948_v43 = vadd.f32 %v1711_v25, %v877_v37  ;;  %v846_v44 = vmul.f32 %v1706_v23, %v634_v40  ;;  %v878_v45 = vmul.f32 %v1706_v23, %v762_v41  ;;  %v636_v46 = vpop.f32.mrb[35].mxu0  ;;  %v764_v47 = vpop.f32.mrb[35].mxu1 }
 0x159   :  { %v982_v48 = vmax.f32 %v916_v42, 0.0  ;;  %v1014_v49 = vmax.f32 %v948_v43, 0.0  ;;  %v917_v50 = vadd.f32 %v1711_v25, %v846_v44  ;;  %v949_v51 = vadd.f32 %v1711_v25, %v878_v45 }
 0x15b   :  { %v1052_v52 = vsel %vm1035_vm1, %v982_v48, %v916_v42  ;;  %v1084_v53 = vsel %vm1035_vm1, %v1014_v49, %v948_v43  ;;  %v983_v54 = vmax.f32 %v917_v50, 0.0  ;;  %v1015_v55 = vmax.f32 %v949_v51, 0.0 }
 0x15c   :  { %1117 = vst.msk [vmem:[%s2233_s5 + $0x80] sm:$0xff] %vm1100_vm2, %v1052_v52  ;;  %1149 = vst.msk [vmem:[%s2233_s5 + $0x180] sm:$0xff] %vm1100_vm2, %v1084_v53  ;;  %v639_v56 = vpop.f32.mrb[36].mxu0  ;;  %v767_v57 = vpop.f32.mrb[36].mxu1 }
 0x15d   :  { %v1053_v58 = vsel %vm1035_vm1, %v983_v54, %v917_v50  ;;  %v1085_v59 = vsel %vm1035_vm1, %v1015_v55, %v949_v51  ;;  %v847_v60 = vmul.f32 %v1706_v23, %v639_v56  ;;  %v879_v61 = vmul.f32 %v1706_v23, %v767_v57  ;;  %v641_v62 = vpop.f32.mrb[37].mxu0  ;;  %v769_v63 = vpop.f32.mrb[37].mxu1 }
 0x15e   :  { %1118 = vst.msk [vmem:[%s2233_s5 + $0x88] sm:$0xff] %vm1100_vm2, %v1053_v58  ;;  %1150 = vst.msk [vmem:[%s2233_s5 + $0x188] sm:$0xff] %vm1100_vm2, %v1085_v59  ;;  %v642_v1 = vpop.f32.mrb[38].mxu0  ;;  %v770_v2 = vpop.f32.mrb[38].mxu1 }
 0x15f   :  { %v918_v3 = vadd.f32 %v1711_v25, %v847_v60  ;;  %v950_v4 = vadd.f32 %v1711_v25, %v879_v61  ;;  %v848_v5 = vmul.f32 %v1706_v23, %v642_v1  ;;  %v880_v6 = vmul.f32 %v1706_v23, %v770_v2  ;;  %v644_v7 = vpop.f32.mrb[39].mxu0  ;;  %v772_v8 = vpop.f32.mrb[39].mxu1 }
 0x161   :  { %v984_v9 = vmax.f32 %v918_v3, 0.0  ;;  %v1016_v10 = vmax.f32 %v950_v4, 0.0  ;;  %v919_v11 = vadd.f32 %v1711_v25, %v848_v5  ;;  %v951_v12 = vadd.f32 %v1711_v25, %v880_v6 }
 0x163   :  { %v1054_v13 = vsel %vm1035_vm1, %v984_v9, %v918_v3  ;;  %v1086_v14 = vsel %vm1035_vm1, %v1016_v10, %v950_v4  ;;  %v985_v15 = vmax.f32 %v919_v11, 0.0  ;;  %v1017_v16 = vmax.f32 %v951_v12, 0.0 }
 0x164   :  { %1119 = vst.msk [vmem:[%s2233_s5 + $0x90] sm:$0xff] %vm1100_vm2, %v1054_v13  ;;  %1151 = vst.msk [vmem:[%s2233_s5 + $0x190] sm:$0xff] %vm1100_vm2, %v1086_v14  ;;  %v647_v17 = vpop.f32.mrb[40].mxu0  ;;  %v775_v18 = vpop.f32.mrb[40].mxu1 }
 0x165   :  { %v1055_v19 = vsel %vm1035_vm1, %v985_v15, %v919_v11  ;;  %v1087_v20 = vsel %vm1035_vm1, %v1017_v16, %v951_v12  ;;  %v849_v21 = vmul.f32 %v1706_v23, %v647_v17  ;;  %v881_v22 = vmul.f32 %v1706_v23, %v775_v18  ;;  %v649_v24 = vpop.f32.mrb[41].mxu0  ;;  %v777_v27 = vpop.f32.mrb[41].mxu1 }
 0x166   :  { %1120 = vst.msk [vmem:[%s2233_s5 + $0x98] sm:$0xff] %vm1100_vm2, %v1055_v19  ;;  %1152 = vst.msk [vmem:[%s2233_s5 + $0x198] sm:$0xff] %vm1100_vm2, %v1087_v20  ;;  %v650_v28 = vpop.f32.mrb[42].mxu0  ;;  %v778_v29 = vpop.f32.mrb[42].mxu1 }
 0x167   :  { %v920_v30 = vadd.f32 %v1711_v25, %v849_v21  ;;  %v952_v0 = vadd.f32 %v1711_v25, %v881_v22  ;;  %v850_v31 = vmul.f32 %v1706_v23, %v650_v28  ;;  %v882_v32 = vmul.f32 %v1706_v23, %v778_v29  ;;  %v652_v33 = vpop.f32.mrb[43].mxu0  ;;  %v780_v34 = vpop.f32.mrb[43].mxu1 }
 0x169   :  { %v986_v35 = vmax.f32 %v920_v30, 0.0  ;;  %v1018_v36 = vmax.f32 %v952_v0, 0.0  ;;  %v921_v37 = vadd.f32 %v1711_v25, %v850_v31  ;;  %v953_v38 = vadd.f32 %v1711_v25, %v882_v32 }
 0x16b   :  { %v1056_v39 = vsel %vm1035_vm1, %v986_v35, %v920_v30  ;;  %v1088_v40 = vsel %vm1035_vm1, %v1018_v36, %v952_v0  ;;  %v987_v41 = vmax.f32 %v921_v37, 0.0  ;;  %v1019_v42 = vmax.f32 %v953_v38, 0.0 }
 0x16c   :  { %1121 = vst.msk [vmem:[%s2233_s5 + $0xa0] sm:$0xff] %vm1100_vm2, %v1056_v39  ;;  %1153 = vst.msk [vmem:[%s2233_s5 + $0x1a0] sm:$0xff] %vm1100_vm2, %v1088_v40  ;;  %v655_v43 = vpop.f32.mrb[44].mxu0  ;;  %v783_v44 = vpop.f32.mrb[44].mxu1 }
 0x16d   :  { %v1057_v45 = vsel %vm1035_vm1, %v987_v41, %v921_v37  ;;  %v1089_v46 = vsel %vm1035_vm1, %v1019_v42, %v953_v38  ;;  %v851_v47 = vmul.f32 %v1706_v23, %v655_v43  ;;  %v883_v48 = vmul.f32 %v1706_v23, %v783_v44  ;;  %v657_v49 = vpop.f32.mrb[45].mxu0  ;;  %v785_v50 = vpop.f32.mrb[45].mxu1 }
 0x16e   :  { %1122 = vst.msk [vmem:[%s2233_s5 + $0xa8] sm:$0xff] %vm1100_vm2, %v1057_v45  ;;  %1154 = vst.msk [vmem:[%s2233_s5 + $0x1a8] sm:$0xff] %vm1100_vm2, %v1089_v46  ;;  %v658_v51 = vpop.f32.mrb[46].mxu0  ;;  %v786_v52 = vpop.f32.mrb[46].mxu1 }
 0x16f   :  { %v922_v53 = vadd.f32 %v1711_v25, %v851_v47  ;;  %v954_v54 = vadd.f32 %v1711_v25, %v883_v48  ;;  %v852_v55 = vmul.f32 %v1706_v23, %v658_v51  ;;  %v884_v56 = vmul.f32 %v1706_v23, %v786_v52  ;;  %v660_v57 = vpop.f32.mrb[47].mxu0  ;;  %v788_v58 = vpop.f32.mrb[47].mxu1 }
 0x171   :  { %v988_v59 = vmax.f32 %v922_v53, 0.0  ;;  %v1020_v60 = vmax.f32 %v954_v54, 0.0  ;;  %v923_v61 = vadd.f32 %v1711_v25, %v852_v55  ;;  %v955_v62 = vadd.f32 %v1711_v25, %v884_v56 }
 0x173   :  { %v1058_v63 = vsel %vm1035_vm1, %v988_v59, %v922_v53  ;;  %v1090_v1 = vsel %vm1035_vm1, %v1020_v60, %v954_v54  ;;  %v989_v2 = vmax.f32 %v923_v61, 0.0  ;;  %v1021_v3 = vmax.f32 %v955_v62, 0.0 }
 0x174   :  { %1123 = vst.msk [vmem:[%s2233_s5 + $0xb0] sm:$0xff] %vm1100_vm2, %v1058_v63  ;;  %1155 = vst.msk [vmem:[%s2233_s5 + $0x1b0] sm:$0xff] %vm1100_vm2, %v1090_v1  ;;  %v663_v4 = vpop.f32.mrb[48].mxu0  ;;  %v791_v5 = vpop.f32.mrb[48].mxu1 }
 0x175   :  { %v1059_v6 = vsel %vm1035_vm1, %v989_v2, %v923_v61  ;;  %v1091_v7 = vsel %vm1035_vm1, %v1021_v3, %v955_v62  ;;  %v853_v8 = vmul.f32 %v1706_v23, %v663_v4  ;;  %v885_v9 = vmul.f32 %v1706_v23, %v791_v5  ;;  %v665_v10 = vpop.f32.mrb[49].mxu0  ;;  %v793_v11 = vpop.f32.mrb[49].mxu1 }
 0x176   :  { %1124 = vst.msk [vmem:[%s2233_s5 + $0xb8] sm:$0xff] %vm1100_vm2, %v1059_v6  ;;  %1156 = vst.msk [vmem:[%s2233_s5 + $0x1b8] sm:$0xff] %vm1100_vm2, %v1091_v7  ;;  %v666_v12 = vpop.f32.mrb[50].mxu0  ;;  %v794_v13 = vpop.f32.mrb[50].mxu1 }
 0x177   :  { %v924_v14 = vadd.f32 %v1711_v25, %v853_v8  ;;  %v956_v15 = vadd.f32 %v1711_v25, %v885_v9  ;;  %v854_v16 = vmul.f32 %v1706_v23, %v666_v12  ;;  %v886_v17 = vmul.f32 %v1706_v23, %v794_v13  ;;  %v668_v18 = vpop.f32.mrb[51].mxu0  ;;  %v796_v19 = vpop.f32.mrb[51].mxu1 }
 0x179   :  { %v990_v20 = vmax.f32 %v924_v14, 0.0  ;;  %v1022_v21 = vmax.f32 %v956_v15, 0.0  ;;  %v925_v22 = vadd.f32 %v1711_v25, %v854_v16  ;;  %v957_v24 = vadd.f32 %v1711_v25, %v886_v17 }
 0x17b   :  { %v1060_v27 = vsel %vm1035_vm1, %v990_v20, %v924_v14  ;;  %v1092_v28 = vsel %vm1035_vm1, %v1022_v21, %v956_v15  ;;  %v991_v29 = vmax.f32 %v925_v22, 0.0  ;;  %v1023_v30 = vmax.f32 %v957_v24, 0.0 }
 0x17c   :  { %1125 = vst.msk [vmem:[%s2233_s5 + $0xc0] sm:$0xff] %vm1100_vm2, %v1060_v27  ;;  %1157 = vst.msk [vmem:[%s2233_s5 + $0x1c0] sm:$0xff] %vm1100_vm2, %v1092_v28  ;;  %v671_v0 = vpop.f32.mrb[52].mxu0  ;;  %v799_v31 = vpop.f32.mrb[52].mxu1 }
 0x17d   :  { %v1061_v32 = vsel %vm1035_vm1, %v991_v29, %v925_v22  ;;  %v1093_v33 = vsel %vm1035_vm1, %v1023_v30, %v957_v24  ;;  %v855_v34 = vmul.f32 %v1706_v23, %v671_v0  ;;  %v887_v35 = vmul.f32 %v1706_v23, %v799_v31  ;;  %v673_v36 = vpop.f32.mrb[53].mxu0  ;;  %v801_v37 = vpop.f32.mrb[53].mxu1 }
 0x17e   :  { %1126 = vst.msk [vmem:[%s2233_s5 + $0xc8] sm:$0xff] %vm1100_vm2, %v1061_v32  ;;  %1158 = vst.msk [vmem:[%s2233_s5 + $0x1c8] sm:$0xff] %vm1100_vm2, %v1093_v33  ;;  %v674_v38 = vpop.f32.mrb[54].mxu0  ;;  %v802_v39 = vpop.f32.mrb[54].mxu1 }
 0x17f   :  { %v926_v40 = vadd.f32 %v1711_v25, %v855_v34  ;;  %v958_v41 = vadd.f32 %v1711_v25, %v887_v35  ;;  %v856_v42 = vmul.f32 %v1706_v23, %v674_v38  ;;  %v888_v43 = vmul.f32 %v1706_v23, %v802_v39  ;;  %v676_v44 = vpop.f32.mrb[55].mxu0  ;;  %v804_v45 = vpop.f32.mrb[55].mxu1 }
 0x181   :  { %v992_v46 = vmax.f32 %v926_v40, 0.0  ;;  %v1024_v47 = vmax.f32 %v958_v41, 0.0  ;;  %v927_v48 = vadd.f32 %v1711_v25, %v856_v42  ;;  %v959_v49 = vadd.f32 %v1711_v25, %v888_v43 }
 0x183   :  { %v1062_v50 = vsel %vm1035_vm1, %v992_v46, %v926_v40  ;;  %v1094_v51 = vsel %vm1035_vm1, %v1024_v47, %v958_v41  ;;  %v993_v52 = vmax.f32 %v927_v48, 0.0  ;;  %v1025_v53 = vmax.f32 %v959_v49, 0.0 }
 0x184   :  { %1127 = vst.msk [vmem:[%s2233_s5 + $0xd0] sm:$0xff] %vm1100_vm2, %v1062_v50  ;;  %1159 = vst.msk [vmem:[%s2233_s5 + $0x1d0] sm:$0xff] %vm1100_vm2, %v1094_v51  ;;  %v679_v54 = vpop.f32.mrb[56].mxu0  ;;  %v807_v55 = vpop.f32.mrb[56].mxu1 }
 0x185   :  { %v1063_v56 = vsel %vm1035_vm1, %v993_v52, %v927_v48  ;;  %v1095_v57 = vsel %vm1035_vm1, %v1025_v53, %v959_v49  ;;  %v857_v58 = vmul.f32 %v1706_v23, %v679_v54  ;;  %v889_v59 = vmul.f32 %v1706_v23, %v807_v55  ;;  %v681_v60 = vpop.f32.mrb[57].mxu0  ;;  %v809_v61 = vpop.f32.mrb[57].mxu1 }
 0x186   :  { %1128 = vst.msk [vmem:[%s2233_s5 + $0xd8] sm:$0xff] %vm1100_vm2, %v1063_v56  ;;  %1160 = vst.msk [vmem:[%s2233_s5 + $0x1d8] sm:$0xff] %vm1100_vm2, %v1095_v57  ;;  %v682_v62 = vpop.f32.mrb[58].mxu0  ;;  %v810_v63 = vpop.f32.mrb[58].mxu1 }
 0x187   :  { %v928_v1 = vadd.f32 %v1711_v25, %v857_v58  ;;  %v960_v2 = vadd.f32 %v1711_v25, %v889_v59  ;;  %v858_v3 = vmul.f32 %v1706_v23, %v682_v62  ;;  %v890_v4 = vmul.f32 %v1706_v23, %v810_v63  ;;  %v684_v5 = vpop.f32.mrb[59].mxu0  ;;  %v812_v6 = vpop.f32.mrb[59].mxu1 }
 0x189   :  { %v994_v7 = vmax.f32 %v928_v1, 0.0  ;;  %v1026_v8 = vmax.f32 %v960_v2, 0.0  ;;  %v929_v9 = vadd.f32 %v1711_v25, %v858_v3  ;;  %v961_v10 = vadd.f32 %v1711_v25, %v890_v4 }
 0x18b   :  { %v1064_v11 = vsel %vm1035_vm1, %v994_v7, %v928_v1  ;;  %v1096_v12 = vsel %vm1035_vm1, %v1026_v8, %v960_v2  ;;  %v995_v13 = vmax.f32 %v929_v9, 0.0  ;;  %v1027_v14 = vmax.f32 %v961_v10, 0.0 }
 0x18c   :  { %1129 = vst.msk [vmem:[%s2233_s5 + $0xe0] sm:$0xff] %vm1100_vm2, %v1064_v11  ;;  %1161 = vst.msk [vmem:[%s2233_s5 + $0x1e0] sm:$0xff] %vm1100_vm2, %v1096_v12  ;;  %v687_v15 = vpop.f32.mrb[60].mxu0  ;;  %v815_v16 = vpop.f32.mrb[60].mxu1 }
 0x18d   :  { %v1065_v17 = vsel %vm1035_vm1, %v995_v13, %v929_v9  ;;  %v1097_v18 = vsel %vm1035_vm1, %v1027_v14, %v961_v10  ;;  %v859_v19 = vmul.f32 %v1706_v23, %v687_v15  ;;  %v891_v20 = vmul.f32 %v1706_v23, %v815_v16  ;;  %v689_v21 = vpop.f32.mrb[61].mxu0  ;;  %v817_v22 = vpop.f32.mrb[61].mxu1 }
 0x18e   :  { %1130 = vst.msk [vmem:[%s2233_s5 + $0xe8] sm:$0xff] %vm1100_vm2, %v1065_v17  ;;  %1162 = vst.msk [vmem:[%s2233_s5 + $0x1e8] sm:$0xff] %vm1100_vm2, %v1097_v18  ;;  %v690_v24 = vpop.f32.mrb[62].mxu0  ;;  %v818_v27 = vpop.f32.mrb[62].mxu1 }
 0x18f   :  { %v930_v28 = vadd.f32 %v1711_v25, %v859_v19  ;;  %v962_v29 = vadd.f32 %v1711_v25, %v891_v20  ;;  %v860_v30 = vmul.f32 %v1706_v23, %v690_v24  ;;  %v892_v0 = vmul.f32 %v1706_v23, %v818_v27  ;;  %v692_v31 = vpop.f32.mrb[63].mxu0  ;;  %v820_v32 = vpop.f32.mrb[63].mxu1 }
 0x191   :  { %v996_v33 = vmax.f32 %v930_v28, 0.0  ;;  %v1028_v34 = vmax.f32 %v962_v29, 0.0  ;;  %v931_v35 = vadd.f32 %v1711_v25, %v860_v30  ;;  %v963_v36 = vadd.f32 %v1711_v25, %v892_v0 }
 0x193   :  { %v1066_v37 = vsel %vm1035_vm1, %v996_v33, %v930_v28  ;;  %v1098_v38 = vsel %vm1035_vm1, %v1028_v34, %v962_v29  ;;  %v997_v39 = vmax.f32 %v931_v35, 0.0  ;;  %v1029_v40 = vmax.f32 %v963_v36, 0.0 }
 0x194   :  { %1131 = vst.msk [vmem:[%s2233_s5 + $0xf0] sm:$0xff] %vm1100_vm2, %v1066_v37  ;;  %1163 = vst.msk [vmem:[%s2233_s5 + $0x1f0] sm:$0xff] %vm1100_vm2, %v1098_v38 }
 0x195   :  { %v1067_v23 = vsel %vm1035_vm1, %v997_v39, %v931_v35  ;;  %v1099_v25 = vsel %vm1035_vm1, %v1029_v40, %v963_v36 }
 0x196   :  { %1132 = vst.msk [vmem:[%s2233_s5 + $0xf8] sm:$0xff] %vm1100_vm2, %v1067_v23  ;;  %1164 = vst.msk [vmem:[%s2233_s5 + $0x1f8] sm:$0xff] %vm1100_vm2, %v1099_v25 }

// kernel: _lambda_.19
= control target key start
LH: loop header
LB: loop body
LE: loop exit
PB: predicated region body
PF: predicated region fallthrough
CT: control target
= control target key end

     0   :  { %v477_v39 = vlaneseq  ;;  %v717_v44 = vmov 0   ;;  %vm503_vm2 = vcmask 130048   ;;  %vm524_vm3 = vcmask 123904   ;;  %s1042_s1 = inlined_call_operand.vmem [shape: bf16[256,16], index: 1, kind: input, shape index: {}]   ;;  %s1043_s0 = inlined_call_operand.vmem [shape: bf16[162,256], index: 0, kind: input, shape index: {}]   ;;  %s1044_s4 = inlined_call_operand.vmem [shape: f32[1,16], index: 4, kind: input, shape index: {}]   ;;  %s1045_s2 = inlined_call_operand.vmem [shape: f32[1,16], index: 2, kind: input, shape index: {}]   ;;  %s1046_s3 = inlined_call_operand.vmem [shape: f32[1,16], index: 3, kind: input, shape index: {}]   ;;  %s1047_s5 = inlined_call_operand.vmem [shape: f32[162,16], index: 5, kind: output, shape index: {}]  }
   0x1   :  { %v669_v0 = vld [vmem:[%s1042_s1 + $0x40] sm:$0xff]   ;;  %v671_v2 = vld [vmem:[%s1042_s1 + $0x48] sm:$0xff]   ;;  %v673_v4 = vld [vmem:[%s1042_s1 + $0x50] sm:$0xff]  }
   0x2   :  { %v670_v1 = vld [vmem:[%s1042_s1] sm:$0xff]   ;;  %570 = vmatprep.subr.bf16.mxu0 %v669_v0  ;;  %652 = vmatprep.subr.bf16.mxu1 %v669_v0  ;;  %v672_v3 = vld [vmem:[%s1042_s1 + $0x8] sm:$0xff]   ;;  %v674_v5 = vld [vmem:[%s1042_s1 + $0x10] sm:$0xff]   ;;  %v478_v41 = vshrl.u32 %v477_v39, 7 }
   0x3   :  { %571 = vmatpush3.bf16.msra.mxu0 %v670_v1  ;;  %660 = vmatpush3.bf16.msra.mxu1 %v670_v1  ;;  %v675_v6 = vld [vmem:[%s1042_s1 + $0x58] sm:$0xff]   ;;  %v677_v8 = vld [vmem:[%s1042_s1 + $0x60] sm:$0xff]   ;;  %v679_v10 = vld [vmem:[%s1042_s1 + $0x68] sm:$0xff]  }
   0x4   :  { %572 = vmatprep.subr.bf16.mxu0 %v671_v2  ;;  %653 = vmatprep.subr.bf16.mxu1 %v671_v2  ;;  %v676_v7 = vld [vmem:[%s1042_s1 + $0x18] sm:$0xff]   ;;  %v678_v9 = vld [vmem:[%s1042_s1 + $0x20] sm:$0xff]   ;;  %v680_v13 = vld [vmem:[%s1042_s1 + $0x28] sm:$0xff]   ;;  %v479_v42 = vsub.s32 0, %v478_v41 }
   0x5   :  { %v687_v11 = vld [vmem:[%s1043_s0 + $0x4] ss:$8 sps:$4 sm:$0xff]   ;;  %v681_v14 = vld [vmem:[%s1042_s1 + $0x70] sm:$0xff]   ;;  %v683_v16 = vld [vmem:[%s1042_s1 + $0x78] sm:$0xff]  }
   0x6   :  { %v690_v12 = vld [vmem:[%s1043_s0 + $0x64] ss:$8 sps:$4 sm:$0xff]   ;;  %309 = vmatprep.mubr.bf16.mxu0 %v687_v11  ;;  %v682_v15 = vld [vmem:[%s1042_s1 + $0x30] sm:$0xff]   ;;  %v684_v17 = vld [vmem:[%s1042_s1 + $0x38] sm:$0xff]  }
   0x7   :  { %573 = vmatpush3.bf16.msra.mxu0 %v672_v3  ;;  %661 = vmatpush3.bf16.msra.mxu1 %v672_v3  ;;  %v685_v18 = vld [vmem:[%s1043_s0] ss:$8 sps:$4 sm:$0xff]   ;;  %v691_v20 = vld [vmem:[%s1043_s0 + $0x14] ss:$8 sps:$4 sm:$0xff]   ;;  %v693_v22 = vld [vmem:[%s1043_s0 + $0x10] ss:$8 sps:$4 sm:$0xff]  }
   0x8   :  { %574 = vmatprep.subr.bf16.mxu0 %v673_v4  ;;  %654 = vmatprep.subr.bf16.mxu1 %v673_v4  ;;  %v688_v19 = vld [vmem:[%s1043_s0 + $0x60] ss:$8 sps:$4 sm:$0xff]   ;;  %v694_v21 = vld [vmem:[%s1043_s0 + $0x74] ss:$8 sps:$4 sm:$0xff]   ;;  %v696_v23 = vld [vmem:[%s1043_s0 + $0x70] ss:$8 sps:$4 sm:$0xff]  }
   0x9   :  { %357 = vmatprep.mubr.bf16.mxu1 %v690_v12  ;;  %v697_v24 = vld [vmem:[%s1043_s0 + $0x24] ss:$8 sps:$4 sm:$0xff]   ;;  %v699_v26 = vld [vmem:[%s1043_s0 + $0x20] ss:$8 sps:$4 sm:$0xff]   ;;  %v703_v28 = vld [vmem:[%s1043_s0 + $0x34] ss:$8 sps:$4 sm:$0xff]  }
   0xa   :  { %v700_v25 = vld [vmem:[%s1043_s0 + $0x84] ss:$8 sps:$4 sm:$0xff]   ;;  %v702_v27 = vld [vmem:[%s1043_s0 + $0x80] ss:$8 sps:$4 sm:$0xff]   ;;  %v706_v29 = vld [vmem:[%s1043_s0 + $0x94] ss:$8 sps:$4 sm:$0xff]  }
   0xb   :  { %575 = vmatpush3.bf16.msra.mxu0 %v674_v5  ;;  %662 = vmatpush3.bf16.msra.mxu1 %v674_v5  ;;  %v41_v30 = vld [vmem:[%s1043_s0 + $0xa0] sm:$0x11]  ;;  %v705_v31 = vld [vmem:[%s1043_s0 + $0x30] ss:$8 sps:$4 sm:$0xff]   ;;  %v713_v37 = vld [vmem:[%s1043_s0 + $0x54] ss:$8 sps:$4 sm:$0xff]  }
   0xc   :  { %576 = vmatprep.subr.bf16.mxu0 %v675_v6  ;;  %655 = vmatprep.subr.bf16.mxu1 %v675_v6  ;;  %v708_v32 = vld [vmem:[%s1043_s0 + $0x90] ss:$8 sps:$4 sm:$0xff]   ;;  %v709_v33 = vld [vmem:[%s1043_s0 + $0x44] ss:$8 sps:$4 sm:$0xff]   ;;  %v551_v34 = vcombine.high %v41_v30, %v41_v30  ;;  %v711_v35 = vld [vmem:[%s1043_s0 + $0x40] ss:$8 sps:$4 sm:$0xff]   ;;  %v550_v36 = vcombine.low %v41_v30, %v41_v30 }
   0xd   :  { %v716_v38 = vld [vmem:[%s1043_s0 + $0x50] ss:$8 sps:$4 sm:$0xff]   ;;  %v453_v40 = vld [vmem:[%s1044_s4] sm:$0x1] }
   0xe   :  { %vm454_vm0 = vcmp.gt.f32.partialorder %v453_v40, 0.0  ;;  %v865_v48 = vld [vmem:[%s1045_s2] ss:$0 sm:$0xff] }
   0xf   :  { %577 = vmatpush3.bf16.msra.mxu0 %v676_v7  ;;  %663 = vmatpush3.bf16.msra.mxu1 %v676_v7  ;;  %v476_v45 = vsel %vm454_vm0, 1, %v717_v44  ;;  %v870_v54 = vld [vmem:[%s1046_s3] ss:$0 sm:$0xff] }
  0x10   :  { %578 = vmatprep.subr.bf16.mxu0 %v677_v8  ;;  %656 = vmatprep.subr.bf16.mxu1 %v677_v8  ;;  %v872_v55 = vrot.slane %v476_v45, %v479_v42 }
  0x12   :  { %vm481_vm1 = vcmp.eq.s32.totalorder %v872_v55, 1 }
  0x13   :  { %579 = vmatpush3.bf16.msra.mxu0 %v678_v9  ;;  %664 = vmatpush3.bf16.msra.mxu1 %v678_v9 }
  0x14   :  { %580 = vmatprep.subr.bf16.mxu0 %v679_v10  ;;  %657 = vmatprep.subr.bf16.mxu1 %v679_v10 }
  0x17   :  { %581 = vmatpush3.bf16.msra.mxu0 %v680_v13  ;;  %665 = vmatpush3.bf16.msra.mxu1 %v680_v13 }
  0x18   :  { %582 = vmatprep.subr.bf16.mxu0 %v681_v14  ;;  %658 = vmatprep.subr.bf16.mxu1 %v681_v14 }
  0x1b   :  { %583 = vmatpush3.bf16.msra.mxu0 %v682_v15  ;;  %666 = vmatpush3.bf16.msra.mxu1 %v682_v15 }
  0x1c   :  { %584 = vmatprep.subr.bf16.mxu0 %v683_v16  ;;  %659 = vmatprep.subr.bf16.mxu1 %v683_v16 }
  0x1f   :  { %585 = vmatpush3.bf16.msra.mxu0 %v684_v17  ;;  %667 = vmatpush3.bf16.msra.mxu1 %v684_v17 }
  0x22   :  { %310 = vmatmul.mubr.bf16.vlgmr.msra.gmra.mrb[0].mxu0 %v685_v18  ;;  %358 = vmatmul.mubr.bf16.vlgmr.msra.gmra.mrb[0].mxu1 %v688_v19 }
  0x23   :  { %317 = vmatprep.mubr.bf16.mxu0 %v691_v20  ;;  %365 = vmatprep.mubr.bf16.mxu1 %v694_v21 }
  0x2a   :  { %318 = vmatmul.mubr.bf16.gmra.mrb[4].mxu0 %v693_v22  ;;  %366 = vmatmul.mubr.bf16.gmra.mrb[4].mxu1 %v696_v23 }
  0x2b   :  { %325 = vmatprep.mubr.bf16.mxu0 %v697_v24  ;;  %373 = vmatprep.mubr.bf16.mxu1 %v700_v25 }
  0x32   :  { %326 = vmatmul.mubr.bf16.gmra.mrb[8].mxu0 %v699_v26  ;;  %374 = vmatmul.mubr.bf16.gmra.mrb[8].mxu1 %v702_v27 }
  0x33   :  { %333 = vmatprep.mubr.bf16.mxu0 %v703_v28  ;;  %381 = vmatprep.mubr.bf16.mxu1 %v706_v29 }
  0x3a   :  { %334 = vmatmul.mubr.bf16.gmra.mrb[12].mxu0 %v705_v31  ;;  %382 = vmatmul.mubr.bf16.gmra.mrb[12].mxu1 %v708_v32 }
  0x3b   :  { %341 = vmatprep.mubr.bf16.mxu0 %v709_v33  ;;  %389 = vmatprep.mubr.bf16.mxu1 %v551_v34 }
  0x42   :  { %342 = vmatmul.mubr.bf16.gmra.mrb[16].mxu0 %v711_v35  ;;  %390 = vmatmul.mubr.bf16.gmra.mrb[16].mxu1 %v550_v36 }
  0x43   :  { %349 = vmatprep.mubr.bf16.mxu0 %v713_v37 }
  0x4a   :  { %350 = vmatmul.mubr.bf16.gmra.mrb[20].mxu0 %v716_v38 }
  0xf5   :  { %v586_v43 = vpop.f32.mrb[0].mxu0  ;;  %v622_v46 = vpop.f32.mrb[0].mxu1 }
  0xf6   :  { %v587_v47 = vpop.f32.mrb[1].mxu0  ;;  %v623_v49 = vpop.f32.mrb[1].mxu1 }
  0xf7   :  { %v588_v50 = vadd.f32 %v587_v47, %v586_v43  ;;  %v589_v51 = vpop.f32.mrb[2].mxu0  ;;  %v624_v52 = vadd.f32 %v623_v49, %v622_v46  ;;  %v625_v53 = vpop.f32.mrb[2].mxu1 }
  0xf8   :  { %v590_v56 = vpop.f32.mrb[3].mxu0  ;;  %v626_v57 = vpop.f32.mrb[3].mxu1 }
  0xf9   :  { %v404_v58 = vmul.f32 %v588_v50, %v865_v48  ;;  %v591_v59 = vadd.f32 %v590_v56, %v589_v51  ;;  %v416_v60 = vmul.f32 %v624_v52, %v865_v48  ;;  %v627_v61 = vadd.f32 %v626_v57, %v625_v53 }
  0xfb   :  { %v432_v62 = vadd.f32 %v870_v54, %v404_v58  ;;  %v405_v63 = vmul.f32 %v591_v59, %v865_v48  ;;  %v444_v0 = vadd.f32 %v870_v54, %v416_v60  ;;  %v417_v1 = vmul.f32 %v627_v61, %v865_v48 }
  0xfd   :  { %v455_v2 = vmax.f32 %v432_v62, 0.0  ;;  %v433_v3 = vadd.f32 %v870_v54, %v405_v63  ;;  %v467_v4 = vmax.f32 %v444_v0, 0.0  ;;  %v592_v5 = vpop.f32.mrb[4].mxu0  ;;  %v445_v6 = vadd.f32 %v870_v54, %v417_v1  ;;  %v628_v7 = vpop.f32.mrb[4].mxu1 }
  0xfe   :  { %v593_v8 = vpop.f32.mrb[5].mxu0  ;;  %v629_v9 = vpop.f32.mrb[5].mxu1 }
  0xff   :  { %v482_v10 = vsel %vm481_vm1, %v455_v2, %v432_v62  ;;  %v456_v11 = vmax.f32 %v433_v3, 0.0  ;;  %v494_v12 = vsel %vm481_vm1, %v467_v4, %v444_v0  ;;  %v468_v13 = vmax.f32 %v445_v6, 0.0  ;;  %v595_v14 = vpop.f32.mrb[6].mxu0  ;;  %v631_v15 = vpop.f32.mrb[6].mxu1 }
 0x100   :  { %504 = vst.msk [vmem:[%s1047_s5] sm:$0xff] %vm503_vm2, %v482_v10  ;;  %516 = vst.msk [vmem:[%s1047_s5 + $0x60] sm:$0xff] %vm503_vm2, %v494_v12  ;;  %v594_v16 = vadd.f32 %v593_v8, %v592_v5  ;;  %v596_v17 = vpop.f32.mrb[7].mxu0  ;;  %v630_v18 = vadd.f32 %v629_v9, %v628_v7  ;;  %v632_v19 = vpop.f32.mrb[7].mxu1 }
 0x101   :  { %v483_v20 = vsel %vm481_vm1, %v456_v11, %v433_v3  ;;  %v495_v21 = vsel %vm481_vm1, %v468_v13, %v445_v6  ;;  %v597_v22 = vadd.f32 %v596_v17, %v595_v14  ;;  %v633_v23 = vadd.f32 %v632_v19, %v631_v15 }
 0x102   :  { %505 = vst.msk [vmem:[%s1047_s5 + $0x8] sm:$0xff] %vm503_vm2, %v483_v20  ;;  %517 = vst.msk [vmem:[%s1047_s5 + $0x68] sm:$0xff] %vm503_vm2, %v495_v21  ;;  %v406_v24 = vmul.f32 %v594_v16, %v865_v48  ;;  %v418_v25 = vmul.f32 %v630_v18, %v865_v48 }
 0x103   :  { %v407_v26 = vmul.f32 %v597_v22, %v865_v48  ;;  %v419_v27 = vmul.f32 %v633_v23, %v865_v48 }
 0x104   :  { %v434_v28 = vadd.f32 %v870_v54, %v406_v24  ;;  %v446_v29 = vadd.f32 %v870_v54, %v418_v25 }
 0x105   :  { %v435_v30 = vadd.f32 %v870_v54, %v407_v26  ;;  %v598_v31 = vpop.f32.mrb[8].mxu0  ;;  %v447_v32 = vadd.f32 %v870_v54, %v419_v27  ;;  %v634_v33 = vpop.f32.mrb[8].mxu1 }
 0x106   :  { %v457_v34 = vmax.f32 %v434_v28, 0.0  ;;  %v469_v35 = vmax.f32 %v446_v29, 0.0  ;;  %v599_v36 = vpop.f32.mrb[9].mxu0  ;;  %v635_v37 = vpop.f32.mrb[9].mxu1 }
 0x107   :  { %v458_v38 = vmax.f32 %v435_v30, 0.0  ;;  %v470_v39 = vmax.f32 %v447_v32, 0.0  ;;  %v600_v40 = vadd.f32 %v599_v36, %v598_v31  ;;  %v601_v41 = vpop.f32.mrb[10].mxu0  ;;  %v636_v42 = vadd.f32 %v635_v37, %v634_v33  ;;  %v637_v43 = vpop.f32.mrb[10].mxu1 }
 0x108   :  { %v484_v44 = vsel %vm481_vm1, %v457_v34, %v434_v28  ;;  %v496_v45 = vsel %vm481_vm1, %v469_v35, %v446_v29  ;;  %v602_v46 = vpop.f32.mrb[11].mxu0  ;;  %v638_v47 = vpop.f32.mrb[11].mxu1 }
 0x109   :  { %506 = vst.msk [vmem:[%s1047_s5 + $0x10] sm:$0xff] %vm503_vm2, %v484_v44  ;;  %v485_v49 = vsel %vm481_vm1, %v458_v38, %v435_v30  ;;  %518 = vst.msk [vmem:[%s1047_s5 + $0x70] sm:$0xff] %vm503_vm2, %v496_v45  ;;  %v497_v50 = vsel %vm481_vm1, %v470_v39, %v447_v32  ;;  %v408_v51 = vmul.f32 %v600_v40, %v865_v48 }
 0x10a   :  { %v603_v52 = vadd.f32 %v602_v46, %v601_v41  ;;  %507 = vst.msk [vmem:[%s1047_s5 + $0x18] sm:$0xff] %vm503_vm2, %v485_v49  ;;  %519 = vst.msk [vmem:[%s1047_s5 + $0x78] sm:$0xff] %vm503_vm2, %v497_v50  ;;  %v420_v53 = vmul.f32 %v636_v42, %v865_v48  ;;  %v639_v56 = vadd.f32 %v638_v47, %v637_v43 }
 0x10b   :  { %v436_v57 = vadd.f32 %v870_v54, %v408_v51 }
 0x10c   :  { %v409_v58 = vmul.f32 %v603_v52, %v865_v48  ;;  %v448_v59 = vadd.f32 %v870_v54, %v420_v53  ;;  %v421_v60 = vmul.f32 %v639_v56, %v865_v48 }
 0x10d   :  { %v459_v61 = vmax.f32 %v436_v57, 0.0  ;;  %v604_v63 = vpop.f32.mrb[12].mxu0  ;;  %v640_v0 = vpop.f32.mrb[12].mxu1 }
 0x10e   :  { %v437_v62 = vadd.f32 %v870_v54, %v409_v58  ;;  %v471_v1 = vmax.f32 %v448_v59, 0.0  ;;  %v449_v2 = vadd.f32 %v870_v54, %v421_v60  ;;  %v605_v3 = vpop.f32.mrb[13].mxu0  ;;  %v641_v4 = vpop.f32.mrb[13].mxu1 }
 0x10f   :  { %v486_v5 = vsel %vm481_vm1, %v459_v61, %v436_v57  ;;  %v606_v7 = vadd.f32 %v605_v3, %v604_v63  ;;  %v607_v8 = vpop.f32.mrb[14].mxu0  ;;  %v642_v9 = vadd.f32 %v641_v4, %v640_v0  ;;  %v643_v10 = vpop.f32.mrb[14].mxu1 }
 0x110   :  { %v460_v6 = vmax.f32 %v437_v62, 0.0  ;;  %508 = vst.msk [vmem:[%s1047_s5 + $0x20] sm:$0xff] %vm503_vm2, %v486_v5  ;;  %v498_v11 = vsel %vm481_vm1, %v471_v1, %v448_v59  ;;  %v472_v12 = vmax.f32 %v449_v2, 0.0  ;;  %v608_v13 = vpop.f32.mrb[15].mxu0  ;;  %v644_v14 = vpop.f32.mrb[15].mxu1 }
 0x111   :  { %520 = vst.msk [vmem:[%s1047_s5 + $0x80] sm:$0xff] %vm503_vm2, %v498_v11  ;;  %v410_v16 = vmul.f32 %v606_v7, %v865_v48  ;;  %v609_v17 = vadd.f32 %v608_v13, %v607_v8  ;;  %v422_v18 = vmul.f32 %v642_v9, %v865_v48  ;;  %v645_v20 = vadd.f32 %v644_v14, %v643_v10 }
 0x112   :  { %v487_v15 = vsel %vm481_vm1, %v460_v6, %v437_v62  ;;  %v499_v19 = vsel %vm481_vm1, %v472_v12, %v449_v2 }
 0x113   :  { %509 = vst.msk [vmem:[%s1047_s5 + $0x28] sm:$0xff] %vm503_vm2, %v487_v15  ;;  %521 = vst.msk [vmem:[%s1047_s5 + $0x88] sm:$0xff] %vm503_vm2, %v499_v19  ;;  %v438_v21 = vadd.f32 %v870_v54, %v410_v16  ;;  %v411_v22 = vmul.f32 %v609_v17, %v865_v48  ;;  %v450_v23 = vadd.f32 %v870_v54, %v422_v18 }
 0x114   :  { %v423_v24 = vmul.f32 %v645_v20, %v865_v48 }
 0x115   :  { %v461_v25 = vmax.f32 %v438_v21, 0.0  ;;  %v439_v26 = vadd.f32 %v870_v54, %v411_v22  ;;  %v473_v27 = vmax.f32 %v450_v23, 0.0  ;;  %v610_v28 = vpop.f32.mrb[16].mxu0  ;;  %v646_v29 = vpop.f32.mrb[16].mxu1 }
 0x116   :  { %v451_v30 = vadd.f32 %v870_v54, %v423_v24  ;;  %v611_v31 = vpop.f32.mrb[17].mxu0  ;;  %v647_v32 = vpop.f32.mrb[17].mxu1 }
 0x117   :  { %v488_v33 = vsel %vm481_vm1, %v461_v25, %v438_v21  ;;  %v462_v34 = vmax.f32 %v439_v26, 0.0  ;;  %v500_v35 = vsel %vm481_vm1, %v473_v27, %v450_v23  ;;  %v612_v36 = vadd.f32 %v611_v31, %v610_v28  ;;  %v613_v37 = vpop.f32.mrb[18].mxu0  ;;  %v649_v38 = vpop.f32.mrb[18].mxu1 }
 0x118   :  { %510 = vst.msk [vmem:[%s1047_s5 + $0x30] sm:$0xff] %vm503_vm2, %v488_v33  ;;  %522 = vst.msk [vmem:[%s1047_s5 + $0x90] sm:$0xff] %vm503_vm2, %v500_v35  ;;  %v474_v39 = vmax.f32 %v451_v30, 0.0  ;;  %v614_v40 = vpop.f32.mrb[19].mxu0  ;;  %v648_v41 = vadd.f32 %v647_v32, %v646_v29  ;;  %v650_v42 = vpop.f32.mrb[19].mxu1 }
 0x119   :  { %v489_v43 = vsel %vm481_vm1, %v462_v34, %v439_v26  ;;  %v412_v44 = vmul.f32 %v612_v36, %v865_v48  ;;  %v615_v45 = vadd.f32 %v614_v40, %v613_v37 }
 0x11a   :  { %511 = vst.msk [vmem:[%s1047_s5 + $0x38] sm:$0xff] %vm503_vm2, %v489_v43  ;;  %v501_v46 = vsel %vm481_vm1, %v474_v39, %v451_v30  ;;  %v424_v47 = vmul.f32 %v648_v41, %v865_v48 }
 0x11b   :  { %523 = vst.msk [vmem:[%s1047_s5 + $0x98] sm:$0xff] %vm503_vm2, %v501_v46  ;;  %v440_v49 = vadd.f32 %v870_v54, %v412_v44  ;;  %v413_v50 = vmul.f32 %v615_v45, %v865_v48 }
 0x11c   :  { %v452_v51 = vadd.f32 %v870_v54, %v424_v47 }
 0x11d   :  { %v463_v52 = vmax.f32 %v440_v49, 0.0  ;;  %v441_v53 = vadd.f32 %v870_v54, %v413_v50  ;;  %v616_v56 = vpop.f32.mrb[20].mxu0 }
 0x11e   :  { %v475_v57 = vmax.f32 %v452_v51, 0.0  ;;  %v617_v58 = vpop.f32.mrb[21].mxu0 }
 0x11f   :  { %v490_v59 = vsel %vm481_vm1, %v463_v52, %v440_v49  ;;  %v464_v60 = vmax.f32 %v441_v53, 0.0  ;;  %v618_v61 = vadd.f32 %v617_v58, %v616_v56  ;;  %v619_v62 = vpop.f32.mrb[22].mxu0 }
 0x120   :  { %512 = vst.msk [vmem:[%s1047_s5 + $0x40] sm:$0xff] %vm503_vm2, %v490_v59  ;;  %v502_v63 = vsel %vm481_vm1, %v475_v57, %v452_v51  ;;  %v620_v0 = vpop.f32.mrb[23].mxu0 }
 0x121   :  { %v491_v1 = vsel %vm481_vm1, %v464_v60, %v441_v53  ;;  %525 = vst.msk [vmem:[%s1047_s5 + $0xa0] sm:$0x3] %vm524_vm3, %v502_v63  ;;  %v414_v2 = vmul.f32 %v618_v61, %v865_v48  ;;  %v621_v3 = vadd.f32 %v620_v0, %v619_v62 }
 0x122   :  { %513 = vst.msk [vmem:[%s1047_s5 + $0x48] sm:$0xff] %vm503_vm2, %v491_v1 }
 0x123   :  { %v442_v4 = vadd.f32 %v870_v54, %v414_v2  ;;  %v415_v5 = vmul.f32 %v621_v3, %v865_v48 }
 0x125   :  { %v465_v6 = vmax.f32 %v442_v4, 0.0  ;;  %v443_v7 = vadd.f32 %v870_v54, %v415_v5 }
 0x127   :  { %v492_v8 = vsel %vm481_vm1, %v465_v6, %v442_v4  ;;  %v466_v9 = vmax.f32 %v443_v7, 0.0 }
 0x128   :  { %514 = vst.msk [vmem:[%s1047_s5 + $0x50] sm:$0xff] %vm503_vm2, %v492_v8 }
 0x129   :  { %v493_v10 = vsel %vm481_vm1, %v466_v9, %v443_v7 }
 0x12a   :  { %515 = vst.msk [vmem:[%s1047_s5 + $0x58] sm:$0xff] %vm503_vm2, %v493_v10 }

// kernel: _lambda_.20
= control target key start
LH: loop header
LB: loop body
LE: loop exit
PB: predicated region body
PF: predicated region fallthrough
CT: control target
= control target key end

     0   :  { %vm516_vm0 = vcmask 130048   ;;  %vm537_vm1 = vcmask 123904   ;;  %s1068_s1 = inlined_call_operand.vmem [shape: bf16[256,16], index: 1, kind: input, shape index: {}]   ;;  %s1069_s0 = inlined_call_operand.vmem [shape: bf16[162,256], index: 0, kind: input, shape index: {}]   ;;  %s1070_s2 = inlined_call_operand.vmem [shape: f32[1,16], index: 2, kind: input, shape index: {}]   ;;  %s1071_s3 = inlined_call_operand.vmem [shape: f32[1,16], index: 3, kind: input, shape index: {}]   ;;  %s1072_s4 = inlined_call_operand.vmem [shape: f32[162,16], index: 4, kind: input, shape index: {}]   ;;  %s1073_s5 = inlined_call_operand.vmem [shape: f32[162,16], index: 5, kind: output, shape index: {}]  }
   0x1   :  { %v681_v0 = vld [vmem:[%s1068_s1 + $0x40] sm:$0xff]   ;;  %v683_v2 = vld [vmem:[%s1068_s1 + $0x48] sm:$0xff]   ;;  %v685_v4 = vld [vmem:[%s1068_s1 + $0x50] sm:$0xff]  }
   0x2   :  { %v682_v1 = vld [vmem:[%s1068_s1] sm:$0xff]   ;;  %583 = vmatprep.subr.bf16.mxu0 %v681_v0  ;;  %665 = vmatprep.subr.bf16.mxu1 %v681_v0  ;;  %v684_v3 = vld [vmem:[%s1068_s1 + $0x8] sm:$0xff]   ;;  %v686_v5 = vld [vmem:[%s1068_s1 + $0x10] sm:$0xff]  }
   0x3   :  { %584 = vmatpush3.bf16.msra.mxu0 %v682_v1  ;;  %673 = vmatpush3.bf16.msra.mxu1 %v682_v1  ;;  %v687_v6 = vld [vmem:[%s1068_s1 + $0x58] sm:$0xff]   ;;  %v689_v8 = vld [vmem:[%s1068_s1 + $0x60] sm:$0xff]   ;;  %v691_v10 = vld [vmem:[%s1068_s1 + $0x68] sm:$0xff]  }
   0x4   :  { %585 = vmatprep.subr.bf16.mxu0 %v683_v2  ;;  %666 = vmatprep.subr.bf16.mxu1 %v683_v2  ;;  %v688_v7 = vld [vmem:[%s1068_s1 + $0x18] sm:$0xff]   ;;  %v690_v9 = vld [vmem:[%s1068_s1 + $0x20] sm:$0xff]   ;;  %v692_v13 = vld [vmem:[%s1068_s1 + $0x28] sm:$0xff]  }
   0x5   :  { %v699_v11 = vld [vmem:[%s1069_s0 + $0x4] ss:$8 sps:$4 sm:$0xff]   ;;  %v693_v14 = vld [vmem:[%s1068_s1 + $0x70] sm:$0xff]   ;;  %v695_v16 = vld [vmem:[%s1068_s1 + $0x78] sm:$0xff]  }
   0x6   :  { %v702_v12 = vld [vmem:[%s1069_s0 + $0x64] ss:$8 sps:$4 sm:$0xff]   ;;  %309 = vmatprep.mubr.bf16.mxu0 %v699_v11  ;;  %v694_v15 = vld [vmem:[%s1068_s1 + $0x30] sm:$0xff]   ;;  %v696_v17 = vld [vmem:[%s1068_s1 + $0x38] sm:$0xff]  }
   0x7   :  { %586 = vmatpush3.bf16.msra.mxu0 %v684_v3  ;;  %674 = vmatpush3.bf16.msra.mxu1 %v684_v3  ;;  %v697_v18 = vld [vmem:[%s1069_s0] ss:$8 sps:$4 sm:$0xff]   ;;  %v703_v20 = vld [vmem:[%s1069_s0 + $0x14] ss:$8 sps:$4 sm:$0xff]   ;;  %v705_v22 = vld [vmem:[%s1069_s0 + $0x10] ss:$8 sps:$4 sm:$0xff]  }
   0x8   :  { %587 = vmatprep.subr.bf16.mxu0 %v685_v4  ;;  %667 = vmatprep.subr.bf16.mxu1 %v685_v4  ;;  %v700_v19 = vld [vmem:[%s1069_s0 + $0x60] ss:$8 sps:$4 sm:$0xff]   ;;  %v706_v21 = vld [vmem:[%s1069_s0 + $0x74] ss:$8 sps:$4 sm:$0xff]   ;;  %v710_v23 = vld [vmem:[%s1069_s0 + $0x70] ss:$8 sps:$4 sm:$0xff]  }
   0x9   :  { %357 = vmatprep.mubr.bf16.mxu1 %v702_v12  ;;  %v708_v24 = vld [vmem:[%s1069_s0 + $0x24] ss:$8 sps:$4 sm:$0xff]   ;;  %v711_v26 = vld [vmem:[%s1069_s0 + $0x20] ss:$8 sps:$4 sm:$0xff]   ;;  %v714_v28 = vld [vmem:[%s1069_s0 + $0x34] ss:$8 sps:$4 sm:$0xff]  }
   0xa   :  { %v712_v25 = vld [vmem:[%s1069_s0 + $0x84] ss:$8 sps:$4 sm:$0xff]   ;;  %v716_v27 = vld [vmem:[%s1069_s0 + $0x80] ss:$8 sps:$4 sm:$0xff]   ;;  %v718_v29 = vld [vmem:[%s1069_s0 + $0x94] ss:$8 sps:$4 sm:$0xff]  }
   0xb   :  { %588 = vmatpush3.bf16.msra.mxu0 %v686_v5  ;;  %675 = vmatpush3.bf16.msra.mxu1 %v686_v5  ;;  %v41_v30 = vld [vmem:[%s1069_s0 + $0xa0] sm:$0x11]  ;;  %v717_v31 = vld [vmem:[%s1069_s0 + $0x30] ss:$8 sps:$4 sm:$0xff]   ;;  %v725_v37 = vld [vmem:[%s1069_s0 + $0x54] ss:$8 sps:$4 sm:$0xff]  }
   0xc   :  { %589 = vmatprep.subr.bf16.mxu0 %v687_v6  ;;  %668 = vmatprep.subr.bf16.mxu1 %v687_v6  ;;  %v722_v32 = vld [vmem:[%s1069_s0 + $0x90] ss:$8 sps:$4 sm:$0xff]   ;;  %v720_v33 = vld [vmem:[%s1069_s0 + $0x44] ss:$8 sps:$4 sm:$0xff]   ;;  %v564_v34 = vcombine.high %v41_v30, %v41_v30  ;;  %v723_v35 = vld [vmem:[%s1069_s0 + $0x40] ss:$8 sps:$4 sm:$0xff]   ;;  %v563_v36 = vcombine.low %v41_v30, %v41_v30 }
   0xd   :  { %v728_v38 = vld [vmem:[%s1069_s0 + $0x50] ss:$8 sps:$4 sm:$0xff]   ;;  %v873_v42 = vld [vmem:[%s1070_s2] ss:$0 sm:$0xff]  ;;  %v454_v61 = vld [vmem:[%s1072_s4 + $0x8] sm:$0xff] }
   0xe   :  { %v878_v48 = vld [vmem:[%s1071_s3] ss:$0 sm:$0xff]  ;;  %v466_v3 = vld [vmem:[%s1072_s4 + $0x68] sm:$0xff]  ;;  %v468_v30 = vld [vmem:[%s1072_s4 + $0x78] sm:$0xff] }
   0xf   :  { %590 = vmatpush3.bf16.msra.mxu0 %v688_v7  ;;  %676 = vmatpush3.bf16.msra.mxu1 %v688_v7  ;;  %v453_v55 = vld [vmem:[%s1072_s4] sm:$0xff] }
  0x10   :  { %591 = vmatprep.subr.bf16.mxu0 %v689_v8  ;;  %669 = vmatprep.subr.bf16.mxu1 %v689_v8  ;;  %v465_v56 = vld [vmem:[%s1072_s4 + $0x60] sm:$0xff] }
  0x13   :  { %592 = vmatpush3.bf16.msra.mxu0 %v690_v9  ;;  %677 = vmatpush3.bf16.msra.mxu1 %v690_v9 }
  0x14   :  { %593 = vmatprep.subr.bf16.mxu0 %v691_v10  ;;  %670 = vmatprep.subr.bf16.mxu1 %v691_v10 }
  0x17   :  { %594 = vmatpush3.bf16.msra.mxu0 %v692_v13  ;;  %678 = vmatpush3.bf16.msra.mxu1 %v692_v13 }
  0x18   :  { %595 = vmatprep.subr.bf16.mxu0 %v693_v14  ;;  %671 = vmatprep.subr.bf16.mxu1 %v693_v14 }
  0x1b   :  { %596 = vmatpush3.bf16.msra.mxu0 %v694_v15  ;;  %679 = vmatpush3.bf16.msra.mxu1 %v694_v15 }
  0x1c   :  { %597 = vmatprep.subr.bf16.mxu0 %v695_v16  ;;  %672 = vmatprep.subr.bf16.mxu1 %v695_v16 }
  0x1f   :  { %598 = vmatpush3.bf16.msra.mxu0 %v696_v17  ;;  %680 = vmatpush3.bf16.msra.mxu1 %v696_v17 }
  0x22   :  { %310 = vmatmul.mubr.bf16.vlgmr.msra.gmra.mrb[0].mxu0 %v697_v18  ;;  %358 = vmatmul.mubr.bf16.vlgmr.msra.gmra.mrb[0].mxu1 %v700_v19 }
  0x23   :  { %317 = vmatprep.mubr.bf16.mxu0 %v703_v20  ;;  %365 = vmatprep.mubr.bf16.mxu1 %v706_v21  ;;  %v455_v21 = vld [vmem:[%s1072_s4 + $0x10] sm:$0xff] }
  0x2a   :  { %318 = vmatmul.mubr.bf16.gmra.mrb[4].mxu0 %v705_v22  ;;  %366 = vmatmul.mubr.bf16.gmra.mrb[4].mxu1 %v710_v23 }
  0x2b   :  { %325 = vmatprep.mubr.bf16.mxu0 %v708_v24  ;;  %373 = vmatprep.mubr.bf16.mxu1 %v712_v25 }
  0x32   :  { %326 = vmatmul.mubr.bf16.gmra.mrb[8].mxu0 %v711_v26  ;;  %374 = vmatmul.mubr.bf16.gmra.mrb[8].mxu1 %v716_v27  ;;  %v467_v26 = vld [vmem:[%s1072_s4 + $0x70] sm:$0xff] }
  0x33   :  { %333 = vmatprep.mubr.bf16.mxu0 %v714_v28  ;;  %381 = vmatprep.mubr.bf16.mxu1 %v718_v29  ;;  %v456_v28 = vld [vmem:[%s1072_s4 + $0x18] sm:$0xff] }
  0x3a   :  { %334 = vmatmul.mubr.bf16.gmra.mrb[12].mxu0 %v717_v31  ;;  %382 = vmatmul.mubr.bf16.gmra.mrb[12].mxu1 %v722_v32 }
  0x3b   :  { %341 = vmatprep.mubr.bf16.mxu0 %v720_v33  ;;  %389 = vmatprep.mubr.bf16.mxu1 %v564_v34 }
  0x42   :  { %342 = vmatmul.mubr.bf16.gmra.mrb[16].mxu0 %v723_v35  ;;  %390 = vmatmul.mubr.bf16.gmra.mrb[16].mxu1 %v563_v36 }
  0x43   :  { %349 = vmatprep.mubr.bf16.mxu0 %v725_v37 }
  0x4a   :  { %350 = vmatmul.mubr.bf16.gmra.mrb[20].mxu0 %v728_v38 }
  0xf5   :  { %v599_v39 = vpop.f32.mrb[0].mxu0  ;;  %v635_v40 = vpop.f32.mrb[0].mxu1 }
  0xf6   :  { %v600_v41 = vpop.f32.mrb[1].mxu0  ;;  %v636_v43 = vpop.f32.mrb[1].mxu1 }
  0xf7   :  { %v601_v44 = vadd.f32 %v600_v41, %v599_v39  ;;  %v602_v45 = vpop.f32.mrb[2].mxu0  ;;  %v637_v46 = vadd.f32 %v636_v43, %v635_v40  ;;  %v638_v47 = vpop.f32.mrb[2].mxu1 }
  0xf8   :  { %v603_v49 = vpop.f32.mrb[3].mxu0  ;;  %v639_v50 = vpop.f32.mrb[3].mxu1 }
  0xf9   :  { %v404_v51 = vmul.f32 %v601_v44, %v873_v42  ;;  %v604_v52 = vadd.f32 %v603_v49, %v602_v45  ;;  %v416_v53 = vmul.f32 %v637_v46, %v873_v42  ;;  %v640_v54 = vadd.f32 %v639_v50, %v638_v47 }
  0xfb   :  { %v432_v57 = vadd.f32 %v878_v48, %v404_v51  ;;  %v405_v58 = vmul.f32 %v604_v52, %v873_v42  ;;  %v444_v59 = vadd.f32 %v878_v48, %v416_v53  ;;  %v417_v60 = vmul.f32 %v640_v54, %v873_v42 }
  0xfd   :  { %v474_v62 = vadd.f32 %v453_v55, %v432_v57  ;;  %v433_v63 = vadd.f32 %v878_v48, %v405_v58  ;;  %v605_v0 = vpop.f32.mrb[4].mxu0  ;;  %v486_v1 = vadd.f32 %v465_v56, %v444_v59  ;;  %v445_v2 = vadd.f32 %v878_v48, %v417_v60  ;;  %v641_v4 = vpop.f32.mrb[4].mxu1  ;;  %v457_v55 = vld [vmem:[%s1072_s4 + $0x20] sm:$0xff] }
  0xfe   :  { %v606_v5 = vpop.f32.mrb[5].mxu0  ;;  %v642_v6 = vpop.f32.mrb[5].mxu1  ;;  %v469_v60 = vld [vmem:[%s1072_s4 + $0x80] sm:$0xff] }
  0xff   :  { %v495_v7 = vmax.f32 %v474_v62, 0.0  ;;  %v475_v8 = vadd.f32 %v454_v61, %v433_v63  ;;  %v507_v9 = vmax.f32 %v486_v1, 0.0  ;;  %v607_v10 = vadd.f32 %v606_v5, %v605_v0  ;;  %v608_v11 = vpop.f32.mrb[6].mxu0  ;;  %v644_v12 = vpop.f32.mrb[6].mxu1  ;;  %v458_v61 = vld [vmem:[%s1072_s4 + $0x28] sm:$0xff] }
 0x100   :  { %v487_v13 = vadd.f32 %v466_v3, %v445_v2  ;;  %v609_v14 = vpop.f32.mrb[7].mxu0  ;;  %v643_v15 = vadd.f32 %v642_v6, %v641_v4  ;;  %v645_v16 = vpop.f32.mrb[7].mxu1  ;;  %v470_v3 = vld [vmem:[%s1072_s4 + $0x88] sm:$0xff] }
 0x101   :  { %517 = vst.msk [vmem:[%s1073_s5] sm:$0xff] %vm516_vm0, %v495_v7  ;;  %v496_v17 = vmax.f32 %v475_v8, 0.0  ;;  %529 = vst.msk [vmem:[%s1073_s5 + $0x60] sm:$0xff] %vm516_vm0, %v507_v9  ;;  %v406_v18 = vmul.f32 %v607_v10, %v873_v42  ;;  %v610_v19 = vadd.f32 %v609_v14, %v608_v11  ;;  %v646_v20 = vadd.f32 %v645_v16, %v644_v12 }
 0x102   :  { %v508_v22 = vmax.f32 %v487_v13, 0.0  ;;  %v418_v23 = vmul.f32 %v643_v15, %v873_v42 }
 0x103   :  { %518 = vst.msk [vmem:[%s1073_s5 + $0x8] sm:$0xff] %vm516_vm0, %v496_v17  ;;  %v434_v24 = vadd.f32 %v878_v48, %v406_v18  ;;  %v407_v25 = vmul.f32 %v610_v19, %v873_v42  ;;  %v419_v27 = vmul.f32 %v646_v20, %v873_v42 }
 0x104   :  { %530 = vst.msk [vmem:[%s1073_s5 + $0x68] sm:$0xff] %vm516_vm0, %v508_v22  ;;  %v446_v29 = vadd.f32 %v878_v48, %v418_v23  ;;  %v459_v23 = vld [vmem:[%s1072_s4 + $0x30] sm:$0xff] }
 0x105   :  { %v476_v31 = vadd.f32 %v455_v21, %v434_v24  ;;  %v435_v32 = vadd.f32 %v878_v48, %v407_v25  ;;  %v611_v33 = vpop.f32.mrb[8].mxu0  ;;  %v447_v34 = vadd.f32 %v878_v48, %v419_v27  ;;  %v647_v35 = vpop.f32.mrb[8].mxu1  ;;  %v471_v25 = vld [vmem:[%s1072_s4 + $0x90] sm:$0xff] }
 0x106   :  { %v488_v36 = vadd.f32 %v467_v26, %v446_v29  ;;  %v612_v37 = vpop.f32.mrb[9].mxu0  ;;  %v648_v38 = vpop.f32.mrb[9].mxu1 }
 0x107   :  { %v497_v39 = vmax.f32 %v476_v31, 0.0  ;;  %v477_v40 = vadd.f32 %v456_v28, %v435_v32  ;;  %v613_v41 = vadd.f32 %v612_v37, %v611_v33  ;;  %v614_v43 = vpop.f32.mrb[10].mxu0  ;;  %v489_v44 = vadd.f32 %v468_v30, %v447_v34  ;;  %v650_v45 = vpop.f32.mrb[10].mxu1  ;;  %v460_v30 = vld [vmem:[%s1072_s4 + $0x38] sm:$0xff] }
 0x108   :  { %v509_v46 = vmax.f32 %v488_v36, 0.0  ;;  %v615_v47 = vpop.f32.mrb[11].mxu0  ;;  %v649_v49 = vadd.f32 %v648_v38, %v647_v35  ;;  %v651_v50 = vpop.f32.mrb[11].mxu1  ;;  %v472_v36 = vld [vmem:[%s1072_s4 + $0x98] sm:$0xff] }
 0x109   :  { %519 = vst.msk [vmem:[%s1073_s5 + $0x10] sm:$0xff] %vm516_vm0, %v497_v39  ;;  %v498_v51 = vmax.f32 %v477_v40, 0.0  ;;  %v408_v52 = vmul.f32 %v613_v41, %v873_v42  ;;  %v510_v53 = vmax.f32 %v489_v44, 0.0  ;;  %v616_v54 = vadd.f32 %v615_v47, %v614_v43 }
 0x10a   :  { %531 = vst.msk [vmem:[%s1073_s5 + $0x70] sm:$0xff] %vm516_vm0, %v509_v46  ;;  %v420_v56 = vmul.f32 %v649_v49, %v873_v42  ;;  %v652_v57 = vadd.f32 %v651_v50, %v650_v45 }
 0x10b   :  { %520 = vst.msk [vmem:[%s1073_s5 + $0x18] sm:$0xff] %vm516_vm0, %v498_v51  ;;  %v436_v58 = vadd.f32 %v878_v48, %v408_v52  ;;  %532 = vst.msk [vmem:[%s1073_s5 + $0x78] sm:$0xff] %vm516_vm0, %v510_v53  ;;  %v409_v59 = vmul.f32 %v616_v54, %v873_v42 }
 0x10c   :  { %v448_v62 = vadd.f32 %v878_v48, %v420_v56  ;;  %v421_v63 = vmul.f32 %v652_v57, %v873_v42  ;;  %v461_v56 = vld [vmem:[%s1072_s4 + $0x40] sm:$0xff] }
 0x10d   :  { %v478_v0 = vadd.f32 %v457_v55, %v436_v58  ;;  %v437_v1 = vadd.f32 %v878_v48, %v409_v59  ;;  %v617_v2 = vpop.f32.mrb[12].mxu0  ;;  %v653_v4 = vpop.f32.mrb[12].mxu1 }
 0x10e   :  { %v490_v5 = vadd.f32 %v469_v60, %v448_v62  ;;  %v618_v6 = vpop.f32.mrb[13].mxu0  ;;  %v449_v7 = vadd.f32 %v878_v48, %v421_v63  ;;  %v654_v8 = vpop.f32.mrb[13].mxu1  ;;  %v462_v62 = vld [vmem:[%s1072_s4 + $0x48] sm:$0xff] }
 0x10f   :  { %v499_v9 = vmax.f32 %v478_v0, 0.0  ;;  %v479_v10 = vadd.f32 %v458_v61, %v437_v1  ;;  %v619_v11 = vadd.f32 %v618_v6, %v617_v2  ;;  %v620_v12 = vpop.f32.mrb[14].mxu0  ;;  %v655_v13 = vadd.f32 %v654_v8, %v653_v4  ;;  %v656_v14 = vpop.f32.mrb[14].mxu1  ;;  %v473_v61 = vld [vmem:[%s1072_s4 + $0xa0] sm:$0x3] }
 0x110   :  { %v511_v15 = vmax.f32 %v490_v5, 0.0  ;;  %v491_v16 = vadd.f32 %v470_v3, %v449_v7  ;;  %v621_v17 = vpop.f32.mrb[15].mxu0  ;;  %v657_v18 = vpop.f32.mrb[15].mxu1 }
 0x111   :  { %521 = vst.msk [vmem:[%s1073_s5 + $0x20] sm:$0xff] %vm516_vm0, %v499_v9  ;;  %v500_v19 = vmax.f32 %v479_v10, 0.0  ;;  %v410_v20 = vmul.f32 %v619_v11, %v873_v42  ;;  %v622_v21 = vadd.f32 %v621_v17, %v620_v12  ;;  %v422_v22 = vmul.f32 %v655_v13, %v873_v42  ;;  %v464_v17 = vld [vmem:[%s1072_s4 + $0x58] sm:$0xff] }
 0x112   :  { %533 = vst.msk [vmem:[%s1073_s5 + $0x80] sm:$0xff] %vm516_vm0, %v511_v15  ;;  %v512_v24 = vmax.f32 %v491_v16, 0.0  ;;  %v658_v26 = vadd.f32 %v657_v18, %v656_v14  ;;  %v463_v14 = vld [vmem:[%s1072_s4 + $0x50] sm:$0xff] }
 0x113   :  { %522 = vst.msk [vmem:[%s1073_s5 + $0x28] sm:$0xff] %vm516_vm0, %v500_v19  ;;  %v438_v27 = vadd.f32 %v878_v48, %v410_v20  ;;  %v411_v28 = vmul.f32 %v622_v21, %v873_v42  ;;  %v450_v29 = vadd.f32 %v878_v48, %v422_v22 }
 0x114   :  { %534 = vst.msk [vmem:[%s1073_s5 + $0x88] sm:$0xff] %vm516_vm0, %v512_v24  ;;  %v423_v31 = vmul.f32 %v658_v26, %v873_v42 }
 0x115   :  { %v480_v32 = vadd.f32 %v459_v23, %v438_v27  ;;  %v439_v33 = vadd.f32 %v878_v48, %v411_v28  ;;  %v623_v34 = vpop.f32.mrb[16].mxu0  ;;  %v492_v35 = vadd.f32 %v471_v25, %v450_v29  ;;  %v659_v37 = vpop.f32.mrb[16].mxu1 }
 0x116   :  { %v624_v38 = vpop.f32.mrb[17].mxu0  ;;  %v451_v39 = vadd.f32 %v878_v48, %v423_v31  ;;  %v660_v40 = vpop.f32.mrb[17].mxu1 }
 0x117   :  { %v501_v41 = vmax.f32 %v480_v32, 0.0  ;;  %v481_v43 = vadd.f32 %v460_v30, %v439_v33  ;;  %v513_v44 = vmax.f32 %v492_v35, 0.0  ;;  %v625_v45 = vadd.f32 %v624_v38, %v623_v34  ;;  %v626_v46 = vpop.f32.mrb[18].mxu0  ;;  %v662_v47 = vpop.f32.mrb[18].mxu1 }
 0x118   :  { %v493_v49 = vadd.f32 %v472_v36, %v451_v39  ;;  %v627_v50 = vpop.f32.mrb[19].mxu0  ;;  %v661_v51 = vadd.f32 %v660_v40, %v659_v37  ;;  %v663_v52 = vpop.f32.mrb[19].mxu1 }
 0x119   :  { %523 = vst.msk [vmem:[%s1073_s5 + $0x30] sm:$0xff] %vm516_vm0, %v501_v41  ;;  %v502_v53 = vmax.f32 %v481_v43, 0.0  ;;  %535 = vst.msk [vmem:[%s1073_s5 + $0x90] sm:$0xff] %vm516_vm0, %v513_v44  ;;  %v412_v54 = vmul.f32 %v625_v45, %v873_v42  ;;  %v628_v55 = vadd.f32 %v627_v50, %v626_v46 }
 0x11a   :  { %v514_v57 = vmax.f32 %v493_v49, 0.0  ;;  %v424_v58 = vmul.f32 %v661_v51, %v873_v42 }
 0x11b   :  { %524 = vst.msk [vmem:[%s1073_s5 + $0x38] sm:$0xff] %vm516_vm0, %v502_v53  ;;  %v440_v59 = vadd.f32 %v878_v48, %v412_v54  ;;  %v413_v60 = vmul.f32 %v628_v55, %v873_v42 }
 0x11c   :  { %536 = vst.msk [vmem:[%s1073_s5 + $0x98] sm:$0xff] %vm516_vm0, %v514_v57  ;;  %v452_v63 = vadd.f32 %v878_v48, %v424_v58 }
 0x11d   :  { %v482_v0 = vadd.f32 %v461_v56, %v440_v59  ;;  %v441_v1 = vadd.f32 %v878_v48, %v413_v60  ;;  %v629_v2 = vpop.f32.mrb[20].mxu0 }
 0x11e   :  { %v494_v3 = vadd.f32 %v473_v61, %v452_v63  ;;  %v630_v4 = vpop.f32.mrb[21].mxu0 }
 0x11f   :  { %v503_v5 = vmax.f32 %v482_v0, 0.0  ;;  %v483_v6 = vadd.f32 %v462_v62, %v441_v1  ;;  %v631_v7 = vadd.f32 %v630_v4, %v629_v2  ;;  %v632_v8 = vpop.f32.mrb[22].mxu0 }
 0x120   :  { %v515_v9 = vmax.f32 %v494_v3, 0.0  ;;  %v633_v10 = vpop.f32.mrb[23].mxu0 }
 0x121   :  { %525 = vst.msk [vmem:[%s1073_s5 + $0x40] sm:$0xff] %vm516_vm0, %v503_v5  ;;  %v504_v11 = vmax.f32 %v483_v6, 0.0  ;;  %v414_v12 = vmul.f32 %v631_v7, %v873_v42  ;;  %v634_v13 = vadd.f32 %v633_v10, %v632_v8 }
 0x122   :  { %538 = vst.msk [vmem:[%s1073_s5 + $0xa0] sm:$0x3] %vm537_vm1, %v515_v9 }
 0x123   :  { %526 = vst.msk [vmem:[%s1073_s5 + $0x48] sm:$0xff] %vm516_vm0, %v504_v11  ;;  %v442_v15 = vadd.f32 %v878_v48, %v414_v12  ;;  %v415_v16 = vmul.f32 %v634_v13, %v873_v42 }
 0x125   :  { %v484_v18 = vadd.f32 %v463_v14, %v442_v15  ;;  %v443_v19 = vadd.f32 %v878_v48, %v415_v16 }
 0x127   :  { %v505_v20 = vmax.f32 %v484_v18, 0.0  ;;  %v485_v21 = vadd.f32 %v464_v17, %v443_v19 }
 0x129   :  { %527 = vst.msk [vmem:[%s1073_s5 + $0x50] sm:$0xff] %vm516_vm0, %v505_v20  ;;  %v506_v22 = vmax.f32 %v485_v21, 0.0 }
 0x12b   :  { %528 = vst.msk [vmem:[%s1073_s5 + $0x58] sm:$0xff] %vm516_vm0, %v506_v22 }

// kernel: _lambda_.25
= control target key start
LH: loop header
LB: loop body
LE: loop exit
PB: predicated region body
PF: predicated region fallthrough
CT: control target
= control target key end

     0   :  { %v295_v25 = vlaneseq  ;;  %v430_v31 = vmov 0   ;;  %vm307_vm2 = vcmask 523264   ;;  %vm314_vm3 = vcmask 517120   ;;  %s573_s1 = inlined_call_operand.vmem [shape: bf16[256,64], index: 1, kind: input, shape index: {}]   ;;  %s574_s0 = inlined_call_operand.vmem [shape: bf16[50,256], index: 0, kind: input, shape index: {}]   ;;  %s575_s4 = inlined_call_operand.vmem [shape: f32[1,64], index: 4, kind: input, shape index: {}]   ;;  %s576_s2 = inlined_call_operand.vmem [shape: f32[1,64], index: 2, kind: input, shape index: {}]   ;;  %s577_s3 = inlined_call_operand.vmem [shape: f32[1,64], index: 3, kind: input, shape index: {}]   ;;  %s578_s5 = inlined_call_operand.vmem [shape: f32[50,64], index: 5, kind: output, shape index: {}]  }
   0x1   :  { %v403_v0 = vld [vmem:[%s573_s1 + $0x40] sm:$0xff]   ;;  %v405_v2 = vld [vmem:[%s573_s1 + $0x48] sm:$0xff]   ;;  %v407_v4 = vld [vmem:[%s573_s1 + $0x50] sm:$0xff]  }
   0x2   :  { %v404_v1 = vld [vmem:[%s573_s1] sm:$0xff]   ;;  %346 = vmatprep.subr.bf16.mxu0 %v403_v0  ;;  %386 = vmatprep.subr.bf16.mxu1 %v403_v0  ;;  %v406_v3 = vld [vmem:[%s573_s1 + $0x8] sm:$0xff]   ;;  %v408_v5 = vld [vmem:[%s573_s1 + $0x10] sm:$0xff]   ;;  %v296_v27 = vshrl.u32 %v295_v25, 7 }
   0x3   :  { %347 = vmatpush3.bf16.msra.mxu0 %v404_v1  ;;  %394 = vmatpush3.bf16.msra.mxu1 %v404_v1  ;;  %v409_v6 = vld [vmem:[%s573_s1 + $0x58] sm:$0xff]   ;;  %v411_v8 = vld [vmem:[%s573_s1 + $0x60] sm:$0xff]   ;;  %v413_v10 = vld [vmem:[%s573_s1 + $0x68] sm:$0xff]  }
   0x4   :  { %348 = vmatprep.subr.bf16.mxu0 %v405_v2  ;;  %387 = vmatprep.subr.bf16.mxu1 %v405_v2  ;;  %v410_v7 = vld [vmem:[%s573_s1 + $0x18] sm:$0xff]   ;;  %v412_v9 = vld [vmem:[%s573_s1 + $0x20] sm:$0xff]   ;;  %v414_v13 = vld [vmem:[%s573_s1 + $0x28] sm:$0xff]   ;;  %v297_v28 = vsub.s32 0, %v296_v27 }
   0x5   :  { %v421_v11 = vld [vmem:[%s574_s0 + $0x4] ss:$8 sps:$4 sm:$0xff]   ;;  %v415_v14 = vld [vmem:[%s573_s1 + $0x70] sm:$0xff]   ;;  %v417_v16 = vld [vmem:[%s573_s1 + $0x78] sm:$0xff]  }
   0x6   :  { %v424_v12 = vld [vmem:[%s574_s0 + $0x24] ss:$8 sps:$4 sm:$0xff]   ;;  %225 = vmatprep.mubr.bf16.mxu0 %v421_v11  ;;  %v416_v15 = vld [vmem:[%s573_s1 + $0x30] sm:$0xff]   ;;  %v418_v17 = vld [vmem:[%s573_s1 + $0x38] sm:$0xff]  }
   0x7   :  { %349 = vmatpush3.bf16.msra.mxu0 %v406_v3  ;;  %395 = vmatpush3.bf16.msra.mxu1 %v406_v3  ;;  %v27_v18 = vld [vmem:[%s574_s0 + $0x30] sm:$0x11]  ;;  %v419_v19 = vld [vmem:[%s574_s0] ss:$8 sps:$4 sm:$0xff]  }
   0x8   :  { %350 = vmatprep.subr.bf16.mxu0 %v407_v4  ;;  %388 = vmatprep.subr.bf16.mxu1 %v407_v4  ;;  %v422_v20 = vld [vmem:[%s574_s0 + $0x20] ss:$8 sps:$4 sm:$0xff]   ;;  %v425_v21 = vld [vmem:[%s574_s0 + $0x14] ss:$8 sps:$4 sm:$0xff]   ;;  %v327_v22 = vcombine.high %v27_v18, %v27_v18  ;;  %v428_v23 = vld [vmem:[%s574_s0 + $0x10] ss:$8 sps:$4 sm:$0xff]   ;;  %v326_v24 = vcombine.low %v27_v18, %v27_v18 }
   0x9   :  { %241 = vmatprep.mubr.bf16.mxu1 %v424_v12  ;;  %v285_v26 = vld [vmem:[%s575_s4] sm:$0x1] }
   0xa   :  { %vm286_vm0 = vcmp.gt.f32.partialorder %v285_v26, 0.0  ;;  %v344_v34 = vld [vmem:[%s576_s2] ss:$0 sm:$0xff] }
   0xb   :  { %351 = vmatpush3.bf16.msra.mxu0 %v408_v5  ;;  %396 = vmatpush3.bf16.msra.mxu1 %v408_v5  ;;  %v294_v32 = vsel %vm286_vm0, 1, %v430_v31  ;;  %v345_v40 = vld [vmem:[%s577_s3] ss:$0 sm:$0xff] }
   0xc   :  { %352 = vmatprep.subr.bf16.mxu0 %v409_v6  ;;  %389 = vmatprep.subr.bf16.mxu1 %v409_v6  ;;  %v298_v41 = vrot.slane %v294_v32, %v297_v28 }
   0xe   :  { %vm299_vm1 = vcmp.eq.s32.totalorder %v298_v41, 1 }
   0xf   :  { %353 = vmatpush3.bf16.msra.mxu0 %v410_v7  ;;  %397 = vmatpush3.bf16.msra.mxu1 %v410_v7 }
  0x10   :  { %354 = vmatprep.subr.bf16.mxu0 %v411_v8  ;;  %390 = vmatprep.subr.bf16.mxu1 %v411_v8 }
  0x13   :  { %355 = vmatpush3.bf16.msra.mxu0 %v412_v9  ;;  %398 = vmatpush3.bf16.msra.mxu1 %v412_v9 }
  0x14   :  { %356 = vmatprep.subr.bf16.mxu0 %v413_v10  ;;  %391 = vmatprep.subr.bf16.mxu1 %v413_v10 }
  0x17   :  { %357 = vmatpush3.bf16.msra.mxu0 %v414_v13  ;;  %399 = vmatpush3.bf16.msra.mxu1 %v414_v13 }
  0x18   :  { %358 = vmatprep.subr.bf16.mxu0 %v415_v14  ;;  %392 = vmatprep.subr.bf16.mxu1 %v415_v14 }
  0x1b   :  { %359 = vmatpush3.bf16.msra.mxu0 %v416_v15  ;;  %400 = vmatpush3.bf16.msra.mxu1 %v416_v15 }
  0x1c   :  { %360 = vmatprep.subr.bf16.mxu0 %v417_v16  ;;  %393 = vmatprep.subr.bf16.mxu1 %v417_v16 }
  0x1f   :  { %361 = vmatpush3.bf16.msra.mxu0 %v418_v17  ;;  %401 = vmatpush3.bf16.msra.mxu1 %v418_v17 }
  0x22   :  { %226 = vmatmul.mubr.bf16.vlgmr.msra.gmra.mrb[0].mxu0 %v419_v19  ;;  %242 = vmatmul.mubr.bf16.vlgmr.msra.gmra.mrb[0].mxu1 %v422_v20 }
  0x23   :  { %233 = vmatprep.mubr.bf16.mxu0 %v425_v21  ;;  %249 = vmatprep.mubr.bf16.mxu1 %v327_v22 }
  0x2a   :  { %234 = vmatmul.mubr.bf16.gmra.mrb[4].mxu0 %v428_v23  ;;  %250 = vmatmul.mubr.bf16.gmra.mrb[4].mxu1 %v326_v24 }
  0xf5   :  { %v362_v29 = vpop.f32.mrb[0].mxu0  ;;  %v374_v30 = vpop.f32.mrb[0].mxu1 }
  0xf6   :  { %v363_v33 = vpop.f32.mrb[1].mxu0  ;;  %v375_v35 = vpop.f32.mrb[1].mxu1 }
  0xf7   :  { %v364_v36 = vadd.f32 %v363_v33, %v362_v29  ;;  %v376_v37 = vadd.f32 %v375_v35, %v374_v30  ;;  %v365_v38 = vpop.f32.mrb[2].mxu0  ;;  %v377_v39 = vpop.f32.mrb[2].mxu1 }
  0xf8   :  { %v366_v42 = vpop.f32.mrb[3].mxu0  ;;  %v378_v43 = vpop.f32.mrb[3].mxu1 }
  0xf9   :  { %v264_v44 = vmul.f32 %v364_v36, %v344_v34  ;;  %v268_v45 = vmul.f32 %v376_v37, %v344_v34  ;;  %v367_v46 = vadd.f32 %v366_v42, %v365_v38  ;;  %v379_v47 = vadd.f32 %v378_v43, %v377_v39 }
  0xfb   :  { %v278_v48 = vadd.f32 %v345_v40, %v264_v44  ;;  %v282_v49 = vadd.f32 %v345_v40, %v268_v45  ;;  %v265_v50 = vmul.f32 %v367_v46, %v344_v34  ;;  %v269_v51 = vmul.f32 %v379_v47, %v344_v34 }
  0xfd   :  { %v287_v52 = vmax.f32 %v278_v48, 0.0  ;;  %v291_v53 = vmax.f32 %v282_v49, 0.0  ;;  %v279_v54 = vadd.f32 %v345_v40, %v265_v50  ;;  %v283_v55 = vadd.f32 %v345_v40, %v269_v51  ;;  %v368_v56 = vpop.f32.mrb[4].mxu0  ;;  %v380_v57 = vpop.f32.mrb[4].mxu1 }
  0xfe   :  { %v369_v58 = vpop.f32.mrb[5].mxu0  ;;  %v381_v59 = vpop.f32.mrb[5].mxu1 }
  0xff   :  { %v300_v60 = vsel %vm299_vm1, %v287_v52, %v278_v48  ;;  %v304_v61 = vsel %vm299_vm1, %v291_v53, %v282_v49  ;;  %v288_v62 = vmax.f32 %v279_v54, 0.0  ;;  %v292_v63 = vmax.f32 %v283_v55, 0.0  ;;  %v371_v0 = vpop.f32.mrb[6].mxu0  ;;  %v383_v1 = vpop.f32.mrb[6].mxu1 }
 0x100   :  { %308 = vst.msk [vmem:[%s578_s5] sm:$0xff] %vm307_vm2, %v300_v60  ;;  %312 = vst.msk [vmem:[%s578_s5 + $0x20] sm:$0xff] %vm307_vm2, %v304_v61  ;;  %v370_v2 = vadd.f32 %v369_v58, %v368_v56  ;;  %v382_v3 = vadd.f32 %v381_v59, %v380_v57  ;;  %v372_v4 = vpop.f32.mrb[7].mxu0  ;;  %v384_v5 = vpop.f32.mrb[7].mxu1 }
 0x101   :  { %v301_v6 = vsel %vm299_vm1, %v288_v62, %v279_v54  ;;  %v305_v7 = vsel %vm299_vm1, %v292_v63, %v283_v55  ;;  %v373_v8 = vadd.f32 %v372_v4, %v371_v0 }
 0x102   :  { %309 = vst.msk [vmem:[%s578_s5 + $0x8] sm:$0xff] %vm307_vm2, %v301_v6  ;;  %313 = vst.msk [vmem:[%s578_s5 + $0x28] sm:$0xff] %vm307_vm2, %v305_v7  ;;  %v266_v9 = vmul.f32 %v370_v2, %v344_v34  ;;  %v270_v10 = vmul.f32 %v382_v3, %v344_v34 }
 0x103   :  { %v267_v11 = vmul.f32 %v373_v8, %v344_v34 }
 0x104   :  { %v280_v12 = vadd.f32 %v345_v40, %v266_v9  ;;  %v284_v13 = vadd.f32 %v345_v40, %v270_v10 }
 0x105   :  { %v281_v14 = vadd.f32 %v345_v40, %v267_v11 }
 0x106   :  { %v289_v15 = vmax.f32 %v280_v12, 0.0  ;;  %v293_v16 = vmax.f32 %v284_v13, 0.0 }
 0x107   :  { %v290_v17 = vmax.f32 %v281_v14, 0.0 }
 0x108   :  { %v302_v18 = vsel %vm299_vm1, %v289_v15, %v280_v12  ;;  %v306_v19 = vsel %vm299_vm1, %v293_v16, %v284_v13 }
 0x109   :  { %310 = vst.msk [vmem:[%s578_s5 + $0x10] sm:$0xff] %vm307_vm2, %v302_v18  ;;  %v303_v20 = vsel %vm299_vm1, %v290_v17, %v281_v14 }
 0x10a   :  { %315 = vst.msk [vmem:[%s578_s5 + $0x30] sm:$0x3] %vm314_vm3, %v306_v19 }
 0x10b   :  { %311 = vst.msk [vmem:[%s578_s5 + $0x18] sm:$0xff] %vm307_vm2, %v303_v20 }

// kernel: _lambda_.26
= control target key start
LH: loop header
LB: loop body
LE: loop exit
PB: predicated region body
PF: predicated region fallthrough
CT: control target
= control target key end

     0   :  { %vm463_vm0 = vcmask 261120   ;;  %vm470_vm1 = vcmask 254976   ;;  %s836_s1 = inlined_call_operand.vmem [shape: bf16[384,32], index: 1, kind: input, shape index: {}]   ;;  %s837_s0 = inlined_call_operand.vmem [shape: bf16[50,384], index: 0, kind: input, shape index: {}]   ;;  %s838_s2 = inlined_call_operand.vmem [shape: f32[1,32], index: 2, kind: input, shape index: {}]   ;;  %s839_s3 = inlined_call_operand.vmem [shape: f32[1,32], index: 3, kind: input, shape index: {}]   ;;  %s840_s4 = inlined_call_operand.vmem [shape: f32[50,32], index: 4, kind: input, shape index: {}]   ;;  %s841_s5 = inlined_call_operand.vmem [shape: f32[50,32], index: 5, kind: output, shape index: {}]  }
   0x1   :  { %v590_v0 = vld [vmem:[%s836_s1 + $0x40] sm:$0xff]   ;;  %v593_v3 = vld [vmem:[%s836_s1 + $0x48] sm:$0xff]   ;;  %v596_v6 = vld [vmem:[%s836_s1 + $0x50] sm:$0xff]  }
   0x2   :  { %v591_v1 = vld [vmem:[%s836_s1] sm:$0xff]   ;;  %514 = vmatprep.subr.bf16.mxu0 %v590_v0  ;;  %v594_v4 = vld [vmem:[%s836_s1 + $0x8] sm:$0xff]   ;;  %v597_v7 = vld [vmem:[%s836_s1 + $0x10] sm:$0xff]  }
   0x3   :  { %v592_v2 = vld [vmem:[%s836_s1 + $0x80] sm:$0xff]   ;;  %515 = vmatpush3.bf16.msra.mxu0 %v591_v1  ;;  %v595_v5 = vld [vmem:[%s836_s1 + $0x88] sm:$0xff]   ;;  %v598_v8 = vld [vmem:[%s836_s1 + $0x90] sm:$0xff]  }
   0x4   :  { %566 = vmatprep.subr.bf16.mxu1 %v592_v2  ;;  %516 = vmatprep.subr.bf16.mxu0 %v593_v3  ;;  %v599_v9 = vld [vmem:[%s836_s1 + $0x58] sm:$0xff]   ;;  %v602_v12 = vld [vmem:[%s836_s1 + $0x60] sm:$0xff]   ;;  %v605_v15 = vld [vmem:[%s836_s1 + $0x68] sm:$0xff]  }
   0x5   :  { %567 = vmatpush3.bf16.msra.mxu1 %v592_v2  ;;  %v600_v10 = vld [vmem:[%s836_s1 + $0x18] sm:$0xff]   ;;  %v604_v13 = vld [vmem:[%s836_s1 + $0xa0] sm:$0xff]   ;;  %v607_v16 = vld [vmem:[%s836_s1 + $0xa8] sm:$0xff]  }
   0x6   :  { %568 = vmatprep.subr.bf16.mxu1 %v595_v5  ;;  %v601_v11 = vld [vmem:[%s836_s1 + $0x98] sm:$0xff]   ;;  %v603_v14 = vld [vmem:[%s836_s1 + $0x20] sm:$0xff]   ;;  %v606_v17 = vld [vmem:[%s836_s1 + $0x28] sm:$0xff]  }
   0x7   :  { %517 = vmatpush3.bf16.msra.mxu0 %v594_v4  ;;  %v608_v18 = vld [vmem:[%s836_s1 + $0x70] sm:$0xff]   ;;  %v611_v21 = vld [vmem:[%s836_s1 + $0x78] sm:$0xff]   ;;  %v614_v26 = vld [vmem:[%s837_s0] ss:$12 sps:$4 sm:$0xff]  }
   0x8   :  { %518 = vmatprep.subr.bf16.mxu0 %v596_v6  ;;  %v609_v19 = vld [vmem:[%s836_s1 + $0x30] sm:$0xff]   ;;  %v613_v22 = vld [vmem:[%s836_s1 + $0xb8] sm:$0xff]   ;;  %v618_v28 = vld [vmem:[%s837_s0 + $0x20] ss:$12 sps:$4 sm:$0xff]  }
   0x9   :  { %569 = vmatpush3.bf16.msra.mxu1 %v595_v5  ;;  %v610_v20 = vld [vmem:[%s836_s1 + $0xb0] sm:$0xff]   ;;  %v612_v25 = vld [vmem:[%s836_s1 + $0x38] sm:$0xff]   ;;  %v33_v33 = vld [vmem:[%s837_s0 + $0x48] sm:$0x11] }
   0xa   :  { %570 = vmatprep.subr.bf16.mxu1 %v598_v8  ;;  %v616_v23 = vld [vmem:[%s837_s0 + $0x4] ss:$12 sps:$4 sm:$0xff]   ;;  %v617_v24 = vld [vmem:[%s837_s0 + $0x8] ss:$12 sps:$4 sm:$0xff]   ;;  %v486_v35 = vcombine.high %v33_v33, %v33_v33  ;;  %v485_v36 = vcombine.low %v33_v33, %v33_v33  ;;  %v767_v44 = vld [vmem:[%s838_s2] ss:$0 sm:$0xff] }
   0xb   :  { %519 = vmatpush3.bf16.msra.mxu0 %v597_v7  ;;  %318 = vmatprep.mubr.bf16.mxu0 %v616_v23  ;;  %v619_v27 = vld [vmem:[%s837_s0 + $0x1c] ss:$12 sps:$4 sm:$0xff]   ;;  %v625_v29 = vld [vmem:[%s837_s0 + $0x38] ss:$12 sps:$4 sm:$0xff]   ;;  %v622_v31 = vld [vmem:[%s837_s0 + $0x34] ss:$12 sps:$4 sm:$0xff]  }
   0xc   :  { %520 = vmatprep.subr.bf16.mxu0 %v599_v9  ;;  %582 = vmatprep.mubr.bf16.mxu1 %v617_v24  ;;  %v621_v30 = vld [vmem:[%s837_s0 + $0x18] ss:$12 sps:$4 sm:$0xff]   ;;  %v626_v32 = vld [vmem:[%s837_s0 + $0x50] ss:$0 sps:$4 sm:$0x11]   ;;  %v443_v56 = vld [vmem:[%s840_s4 + $0x8] sm:$0xff] }
   0xd   :  { %571 = vmatpush3.bf16.msra.mxu1 %v598_v8  ;;  %v624_v34 = vld [vmem:[%s837_s0 + $0x30] ss:$12 sps:$4 sm:$0xff]   ;;  %v772_v48 = vld [vmem:[%s839_s3] ss:$0 sm:$0xff] }
   0xe   :  { %572 = vmatprep.subr.bf16.mxu1 %v601_v11  ;;  %v442_v52 = vld [vmem:[%s840_s4] sm:$0xff] }
   0xf   :  { %521 = vmatpush3.bf16.msra.mxu0 %v600_v10  ;;  %v444_v10 = vld [vmem:[%s840_s4 + $0x10] sm:$0xff] }
  0x10   :  { %522 = vmatprep.subr.bf16.mxu0 %v602_v12 }
  0x11   :  { %573 = vmatpush3.bf16.msra.mxu1 %v601_v11 }
  0x12   :  { %574 = vmatprep.subr.bf16.mxu1 %v604_v13 }
  0x13   :  { %523 = vmatpush3.bf16.msra.mxu0 %v603_v14  ;;  %v445_v14 = vld [vmem:[%s840_s4 + $0x18] sm:$0xff] }
  0x14   :  { %524 = vmatprep.subr.bf16.mxu0 %v605_v15 }
  0x15   :  { %575 = vmatpush3.bf16.msra.mxu1 %v604_v13 }
  0x16   :  { %576 = vmatprep.subr.bf16.mxu1 %v607_v16 }
  0x17   :  { %525 = vmatpush3.bf16.msra.mxu0 %v606_v17 }
  0x18   :  { %526 = vmatprep.subr.bf16.mxu0 %v608_v18 }
  0x19   :  { %577 = vmatpush3.bf16.msra.mxu1 %v607_v16 }
  0x1a   :  { %578 = vmatprep.subr.bf16.mxu1 %v610_v20 }
  0x1b   :  { %527 = vmatpush3.bf16.msra.mxu0 %v609_v19 }
  0x1c   :  { %528 = vmatprep.subr.bf16.mxu0 %v611_v21 }
  0x1d   :  { %579 = vmatpush3.bf16.msra.mxu1 %v610_v20 }
  0x1e   :  { %580 = vmatprep.subr.bf16.mxu1 %v613_v22 }
  0x1f   :  { %529 = vmatpush3.bf16.msra.mxu0 %v612_v25 }
  0x21   :  { %581 = vmatpush3.bf16.msra.mxu1 %v613_v22 }
  0x22   :  { %319 = vmatmul.mubr.bf16.vlgmr.msra.gmra.mrb[0].mxu0 %v614_v26 }
  0x23   :  { %326 = vmatprep.mubr.bf16.mxu0 %v619_v27 }
  0x24   :  { %583 = vmatmul.mubr.bf16.vlgmr.msra.gmra.mrb[0].mxu1 %v618_v28  ;;  %v446_v28 = vld [vmem:[%s840_s4 + $0x20] sm:$0xff] }
  0x25   :  { %586 = vmatprep.mubr.bf16.mxu1 %v625_v29 }
  0x2a   :  { %327 = vmatmul.mubr.bf16.gmra.mrb[4].mxu0 %v621_v30 }
  0x2b   :  { %334 = vmatprep.mubr.bf16.mxu0 %v622_v31 }
  0x2c   :  { %587 = vmatmul.mubr.bf16.gmra.mrb[4].mxu1 %v626_v32  ;;  %v447_v32 = vld [vmem:[%s840_s4 + $0x28] sm:$0xff] }
  0x32   :  { %335 = vmatmul.mubr.bf16.gmra.mrb[8].mxu0 %v624_v34 }
  0x33   :  { %342 = vmatprep.mubr.bf16.mxu0 %v486_v35 }
  0x3a   :  { %343 = vmatmul.mubr.bf16.gmra.mrb[12].mxu0 %v485_v36 }
  0xf5   :  { %v530_v37 = vpop.f32.mrb[0].mxu0 }
  0xf6   :  { %v531_v38 = vpop.f32.mrb[1].mxu0 }
  0xf7   :  { %v532_v39 = vadd.f32 %v531_v38, %v530_v37  ;;  %v533_v40 = vpop.f32.mrb[2].mxu0  ;;  %v584_v41 = vpop.f32.mrb[0].mxu1 }
  0xf8   :  { %v534_v42 = vpop.f32.mrb[3].mxu0  ;;  %v384_v43 = vpop.f32.mrb[1].mxu1 }
  0xf9   :  { %v535_v45 = vadd.f32 %v534_v42, %v533_v40  ;;  %v385_v46 = vadd.f32 %v532_v39, %v384_v43  ;;  %v585_v47 = vpop.f32.mrb[2].mxu1 }
  0xfa   :  { %v387_v49 = vpop.f32.mrb[3].mxu1 }
  0xfb   :  { %v421_v50 = vmul.f32 %v767_v44, %v385_v46  ;;  %v388_v51 = vadd.f32 %v535_v45, %v387_v49  ;;  %v448_v45 = vld [vmem:[%s840_s4 + $0x30] sm:$0x3] }
  0xfd   :  { %v435_v53 = vadd.f32 %v772_v48, %v421_v50  ;;  %v422_v54 = vmul.f32 %v767_v44, %v388_v51  ;;  %v536_v55 = vpop.f32.mrb[4].mxu0 }
  0xfe   :  { %v537_v57 = vpop.f32.mrb[5].mxu0 }
  0xff   :  { %v449_v58 = vadd.f32 %v442_v52, %v435_v53  ;;  %v436_v59 = vadd.f32 %v772_v48, %v422_v54  ;;  %v538_v60 = vadd.f32 %v537_v57, %v536_v55  ;;  %v539_v61 = vpop.f32.mrb[6].mxu0  ;;  %v588_v62 = vpop.f32.mrb[4].mxu1 }
 0x100   :  { %v540_v63 = vpop.f32.mrb[7].mxu0  ;;  %v400_v0 = vpop.f32.mrb[5].mxu1 }
 0x101   :  { %v456_v1 = vmax.f32 %v449_v58, 0.0  ;;  %v450_v2 = vadd.f32 %v443_v56, %v436_v59  ;;  %v393_v3 = vadd.f32 %v584_v41, %v538_v60  ;;  %v541_v4 = vadd.f32 %v540_v63, %v539_v61  ;;  %v589_v5 = vpop.f32.mrb[6].mxu1 }
 0x102   :  { %v403_v6 = vpop.f32.mrb[7].mxu1 }
 0x103   :  { %464 = vst.msk [vmem:[%s841_s5] sm:$0xff] %vm463_vm0, %v456_v1  ;;  %v457_v7 = vmax.f32 %v450_v2, 0.0  ;;  %v423_v8 = vmul.f32 %v767_v44, %v393_v3  ;;  %v396_v9 = vadd.f32 %v585_v47, %v541_v4 }
 0x105   :  { %465 = vst.msk [vmem:[%s841_s5 + $0x8] sm:$0xff] %vm463_vm0, %v457_v7  ;;  %v437_v11 = vadd.f32 %v772_v48, %v423_v8  ;;  %v424_v12 = vmul.f32 %v767_v44, %v396_v9  ;;  %v542_v13 = vpop.f32.mrb[8].mxu0 }
 0x106   :  { %v543_v15 = vpop.f32.mrb[9].mxu0 }
 0x107   :  { %v451_v16 = vadd.f32 %v444_v10, %v437_v11  ;;  %v438_v17 = vadd.f32 %v772_v48, %v424_v12  ;;  %v544_v18 = vadd.f32 %v543_v15, %v542_v13  ;;  %v545_v19 = vpop.f32.mrb[10].mxu0 }
 0x108   :  { %v546_v20 = vpop.f32.mrb[11].mxu0 }
 0x109   :  { %v458_v21 = vmax.f32 %v451_v16, 0.0  ;;  %v452_v22 = vadd.f32 %v445_v14, %v438_v17  ;;  %v547_v23 = vadd.f32 %v546_v20, %v545_v19  ;;  %v401_v24 = vadd.f32 %v544_v18, %v400_v0 }
 0x10b   :  { %466 = vst.msk [vmem:[%s841_s5 + $0x10] sm:$0xff] %vm463_vm0, %v458_v21  ;;  %v459_v25 = vmax.f32 %v452_v22, 0.0  ;;  %v425_v26 = vmul.f32 %v767_v44, %v401_v24  ;;  %v404_v27 = vadd.f32 %v547_v23, %v403_v6 }
 0x10d   :  { %467 = vst.msk [vmem:[%s841_s5 + $0x18] sm:$0xff] %vm463_vm0, %v459_v25  ;;  %v439_v29 = vadd.f32 %v772_v48, %v425_v26  ;;  %v426_v30 = vmul.f32 %v767_v44, %v404_v27  ;;  %v548_v31 = vpop.f32.mrb[12].mxu0 }
 0x10e   :  { %v549_v33 = vpop.f32.mrb[13].mxu0 }
 0x10f   :  { %v453_v34 = vadd.f32 %v446_v28, %v439_v29  ;;  %v440_v35 = vadd.f32 %v772_v48, %v426_v30  ;;  %v550_v36 = vadd.f32 %v549_v33, %v548_v31  ;;  %v551_v37 = vpop.f32.mrb[14].mxu0 }
 0x110   :  { %v552_v38 = vpop.f32.mrb[15].mxu0 }
 0x111   :  { %v460_v39 = vmax.f32 %v453_v34, 0.0  ;;  %v454_v40 = vadd.f32 %v447_v32, %v440_v35  ;;  %v409_v41 = vadd.f32 %v588_v62, %v550_v36 }
 0x113   :  { %468 = vst.msk [vmem:[%s841_s5 + $0x20] sm:$0xff] %vm463_vm0, %v460_v39  ;;  %v461_v42 = vmax.f32 %v454_v40, 0.0  ;;  %v427_v43 = vmul.f32 %v767_v44, %v409_v41 }
 0x115   :  { %469 = vst.msk [vmem:[%s841_s5 + $0x28] sm:$0xff] %vm463_vm0, %v461_v42  ;;  %v441_v46 = vadd.f32 %v772_v48, %v427_v43 }
 0x117   :  { %v455_v47 = vadd.f32 %v448_v45, %v441_v46 }
 0x119   :  { %v462_v49 = vmax.f32 %v455_v47, 0.0 }
 0x11b   :  { %471 = vst.msk [vmem:[%s841_s5 + $0x30] sm:$0x3] %vm470_vm1, %v462_v49 }

// kernel: _lambda_.27
= control target key start
LH: loop header
LB: loop body
LE: loop exit
PB: predicated region body
PF: predicated region fallthrough
CT: control target
= control target key end

     0   :  { %v368_v31 = vlaneseq  ;;  %v505_v40 = vmov 0   ;;  %s644_s1 = inlined_call_operand.vmem [shape: bf16[384,128], index: 1, kind: input, shape index: {}]   ;;  %s645_s0 = inlined_call_operand.vmem [shape: bf16[18,384], index: 0, kind: input, shape index: {}]   ;;  %s646_s4 = inlined_call_operand.vmem [shape: f32[1,128], index: 4, kind: input, shape index: {}]   ;;  %s647_s2 = inlined_call_operand.vmem [shape: f32[1,128], index: 2, kind: input, shape index: {}]   ;;  %s648_s3 = inlined_call_operand.vmem [shape: f32[1,128], index: 3, kind: input, shape index: {}]   ;;  %s649_s5 = inlined_call_operand.vmem [shape: f32[18,128], index: 5, kind: output, shape index: {}]  }
   0x1   :  { %v474_v0 = vld [vmem:[%s644_s1 + $0x40] sm:$0xff]   ;;  %v477_v3 = vld [vmem:[%s644_s1 + $0x48] sm:$0xff]   ;;  %v480_v6 = vld [vmem:[%s644_s1 + $0x50] sm:$0xff]  }
   0x2   :  { %v475_v1 = vld [vmem:[%s644_s1] sm:$0xff]   ;;  %415 = vmatprep.subr.bf16.mxu0 %v474_v0  ;;  %v478_v4 = vld [vmem:[%s644_s1 + $0x8] sm:$0xff]   ;;  %v481_v7 = vld [vmem:[%s644_s1 + $0x10] sm:$0xff]   ;;  %v369_v33 = vshrl.u32 %v368_v31, 7 }
   0x3   :  { %v476_v2 = vld [vmem:[%s644_s1 + $0x80] sm:$0xff]   ;;  %416 = vmatpush3.bf16.msra.mxu0 %v475_v1  ;;  %v479_v5 = vld [vmem:[%s644_s1 + $0x88] sm:$0xff]   ;;  %v482_v8 = vld [vmem:[%s644_s1 + $0x90] sm:$0xff]  }
   0x4   :  { %453 = vmatprep.subr.bf16.mxu1 %v476_v2  ;;  %417 = vmatprep.subr.bf16.mxu0 %v477_v3  ;;  %v483_v9 = vld [vmem:[%s644_s1 + $0x58] sm:$0xff]   ;;  %v486_v12 = vld [vmem:[%s644_s1 + $0x60] sm:$0xff]   ;;  %v489_v15 = vld [vmem:[%s644_s1 + $0x68] sm:$0xff]   ;;  %v370_v36 = vsub.s32 0, %v369_v33 }
   0x5   :  { %454 = vmatpush3.bf16.msra.mxu1 %v476_v2  ;;  %v484_v10 = vld [vmem:[%s644_s1 + $0x18] sm:$0xff]   ;;  %v488_v13 = vld [vmem:[%s644_s1 + $0xa0] sm:$0xff]   ;;  %v491_v16 = vld [vmem:[%s644_s1 + $0xa8] sm:$0xff]  }
   0x6   :  { %455 = vmatprep.subr.bf16.mxu1 %v479_v5  ;;  %v485_v11 = vld [vmem:[%s644_s1 + $0x98] sm:$0xff]   ;;  %v487_v14 = vld [vmem:[%s644_s1 + $0x20] sm:$0xff]   ;;  %v490_v17 = vld [vmem:[%s644_s1 + $0x28] sm:$0xff]  }
   0x7   :  { %418 = vmatpush3.bf16.msra.mxu0 %v478_v4  ;;  %v492_v18 = vld [vmem:[%s644_s1 + $0x70] sm:$0xff]   ;;  %v495_v21 = vld [vmem:[%s644_s1 + $0x78] sm:$0xff]   ;;  %v498_v27 = vld [vmem:[%s645_s0] ss:$12 sps:$4 sm:$0xff]  }
   0x8   :  { %419 = vmatprep.subr.bf16.mxu0 %v480_v6  ;;  %v494_v19 = vld [vmem:[%s644_s1 + $0xb0] sm:$0xff]   ;;  %v497_v23 = vld [vmem:[%s644_s1 + $0xb8] sm:$0xff]   ;;  %v502_v29 = vld [vmem:[%s645_s0 + $0x20] ss:$0 sps:$4 sm:$0x11]  }
   0x9   :  { %456 = vmatpush3.bf16.msra.mxu1 %v479_v5  ;;  %v493_v20 = vld [vmem:[%s644_s1 + $0x30] sm:$0xff]   ;;  %v496_v25 = vld [vmem:[%s644_s1 + $0x38] sm:$0xff]   ;;  %v362_v32 = vld [vmem:[%s646_s4] sm:$0x1] }
   0xa   :  { %457 = vmatprep.subr.bf16.mxu1 %v482_v8  ;;  %v500_v22 = vld [vmem:[%s645_s0 + $0x4] ss:$12 sps:$4 sm:$0xff]   ;;  %v501_v24 = vld [vmem:[%s645_s0 + $0x8] ss:$12 sps:$4 sm:$0xff]   ;;  %v25_v26 = vld [vmem:[%s645_s0 + $0x18] sm:$0x11] }
   0xb   :  { %420 = vmatpush3.bf16.msra.mxu0 %v481_v7  ;;  %278 = vmatprep.mubr.bf16.mxu0 %v500_v22  ;;  %v387_v28 = vcombine.high %v25_v26, %v25_v26  ;;  %v386_v30 = vcombine.low %v25_v26, %v25_v26  ;;  %vm363_vm0 = vcmp.gt.f32.partialorder %v362_v32, 0.0  ;;  %v413_v44 = vld [vmem:[%s647_s2] ss:$0 sm:$0xff] }
   0xc   :  { %421 = vmatprep.subr.bf16.mxu0 %v483_v9  ;;  %469 = vmatprep.mubr.bf16.mxu1 %v501_v24  ;;  %v367_v41 = vsel %vm363_vm0, 1, %v505_v40  ;;  %v414_v48 = vld [vmem:[%s648_s3] ss:$0 sm:$0xff] }
   0xd   :  { %458 = vmatpush3.bf16.msra.mxu1 %v482_v8  ;;  %v371_v49 = vrot.slane %v367_v41, %v370_v36 }
   0xe   :  { %459 = vmatprep.subr.bf16.mxu1 %v485_v11 }
   0xf   :  { %422 = vmatpush3.bf16.msra.mxu0 %v484_v10  ;;  %vm372_vm1 = vcmp.eq.s32.totalorder %v371_v49, 1 }
  0x10   :  { %423 = vmatprep.subr.bf16.mxu0 %v486_v12 }
  0x11   :  { %460 = vmatpush3.bf16.msra.mxu1 %v485_v11 }
  0x12   :  { %461 = vmatprep.subr.bf16.mxu1 %v488_v13 }
  0x13   :  { %424 = vmatpush3.bf16.msra.mxu0 %v487_v14 }
  0x14   :  { %425 = vmatprep.subr.bf16.mxu0 %v489_v15 }
  0x15   :  { %462 = vmatpush3.bf16.msra.mxu1 %v488_v13 }
  0x16   :  { %463 = vmatprep.subr.bf16.mxu1 %v491_v16 }
  0x17   :  { %426 = vmatpush3.bf16.msra.mxu0 %v490_v17 }
  0x18   :  { %427 = vmatprep.subr.bf16.mxu0 %v492_v18 }
  0x19   :  { %464 = vmatpush3.bf16.msra.mxu1 %v491_v16 }
  0x1a   :  { %465 = vmatprep.subr.bf16.mxu1 %v494_v19 }
  0x1b   :  { %428 = vmatpush3.bf16.msra.mxu0 %v493_v20 }
  0x1c   :  { %429 = vmatprep.subr.bf16.mxu0 %v495_v21 }
  0x1d   :  { %466 = vmatpush3.bf16.msra.mxu1 %v494_v19 }
  0x1e   :  { %467 = vmatprep.subr.bf16.mxu1 %v497_v23 }
  0x1f   :  { %430 = vmatpush3.bf16.msra.mxu0 %v496_v25 }
  0x21   :  { %468 = vmatpush3.bf16.msra.mxu1 %v497_v23 }
  0x22   :  { %279 = vmatmul.mubr.bf16.vlgmr.msra.gmra.mrb[0].mxu0 %v498_v27 }
  0x23   :  { %286 = vmatprep.mubr.bf16.mxu0 %v387_v28 }
  0x24   :  { %470 = vmatmul.mubr.bf16.vlgmr.msra.gmra.mrb[0].mxu1 %v502_v29 }
  0x2a   :  { %287 = vmatmul.mubr.bf16.gmra.mrb[4].mxu0 %v386_v30 }
  0xf5   :  { %v431_v34 = vpop.f32.mrb[0].mxu0 }
  0xf6   :  { %v432_v35 = vpop.f32.mrb[1].mxu0 }
  0xf7   :  { %v433_v37 = vadd.f32 %v432_v35, %v431_v34  ;;  %v434_v38 = vpop.f32.mrb[2].mxu0  ;;  %v471_v39 = vpop.f32.mrb[0].mxu1 }
  0xf8   :  { %v435_v42 = vpop.f32.mrb[3].mxu0  ;;  %v328_v43 = vpop.f32.mrb[1].mxu1 }
  0xf9   :  { %v436_v45 = vadd.f32 %v435_v42, %v434_v38  ;;  %v329_v46 = vadd.f32 %v433_v37, %v328_v43  ;;  %v472_v47 = vpop.f32.mrb[2].mxu1 }
  0xfa   :  { %v331_v50 = vpop.f32.mrb[3].mxu1 }
  0xfb   :  { %v349_v51 = vmul.f32 %v413_v44, %v329_v46  ;;  %v332_v52 = vadd.f32 %v436_v45, %v331_v50 }
  0xfd   :  { %v359_v53 = vadd.f32 %v414_v48, %v349_v51  ;;  %v350_v54 = vmul.f32 %v413_v44, %v332_v52  ;;  %v437_v55 = vpop.f32.mrb[4].mxu0 }
  0xfe   :  { %v438_v56 = vpop.f32.mrb[5].mxu0 }
  0xff   :  { %v364_v57 = vmax.f32 %v359_v53, 0.0  ;;  %v360_v58 = vadd.f32 %v414_v48, %v350_v54  ;;  %v439_v59 = vadd.f32 %v438_v56, %v437_v55  ;;  %v440_v60 = vpop.f32.mrb[6].mxu0 }
 0x100   :  { %v441_v61 = vpop.f32.mrb[7].mxu0 }
 0x101   :  { %v373_v62 = vsel %vm372_vm1, %v364_v57, %v359_v53  ;;  %v365_v63 = vmax.f32 %v360_v58, 0.0  ;;  %v337_v0 = vadd.f32 %v471_v39, %v439_v59 }
 0x102   :  { %376 = vst [vmem:[%s649_s5] sm:$0xff] %v373_v62 }
 0x103   :  { %v374_v1 = vsel %vm372_vm1, %v365_v63, %v360_v58  ;;  %v351_v2 = vmul.f32 %v413_v44, %v337_v0 }
 0x104   :  { %377 = vst [vmem:[%s649_s5 + $0x8] sm:$0xff] %v374_v1 }
 0x105   :  { %v361_v3 = vadd.f32 %v414_v48, %v351_v2 }
 0x107   :  { %v366_v4 = vmax.f32 %v361_v3, 0.0 }
 0x109   :  { %v375_v5 = vsel %vm372_vm1, %v366_v4, %v361_v3 }
 0x10a   :  { %378 = vst [vmem:[%s649_s5 + $0x10] sm:$0x3] %v375_v5 }

// kernel: _lambda_.28
= control target key start
LH: loop header
LB: loop body
LE: loop exit
PB: predicated region body
PF: predicated region fallthrough
CT: control target
= control target key end

     0   :  { %vm570_vm0 = vcmask 517120   ;;  %vm567_vm1 = vcmask 523264   ;;  %s964_s1 = inlined_call_operand.vmem [shape: bf16[640,64], index: 1, kind: input, shape index: {}]   ;;  %s965_s0 = inlined_call_operand.vmem [shape: bf16[18,640], index: 0, kind: input, shape index: {}]   ;;  %s966_s2 = inlined_call_operand.vmem [shape: f32[1,64], index: 2, kind: input, shape index: {}]   ;;  %s967_s3 = inlined_call_operand.vmem [shape: f32[1,64], index: 3, kind: input, shape index: {}]   ;;  %s968_s4 = inlined_call_operand.vmem [shape: f32[18,64], index: 4, kind: input, shape index: {}]   ;;  %s969_s5 = inlined_call_operand.vmem [shape: f32[18,64], index: 5, kind: output, shape index: {}]  }
   0x1   :  { %v714_v0 = vld [vmem:[%s964_s1 + $0x40] sm:$0xff]   ;;  %v718_v4 = vld [vmem:[%s964_s1 + $0x48] sm:$0xff]   ;;  %v722_v8 = vld [vmem:[%s964_s1 + $0x50] sm:$0xff]  }
   0x2   :  { %v715_v1 = vld [vmem:[%s964_s1 + $0xc0] sm:$0xff]   ;;  %628 = vmatprep.subr.bf16.mxu0 %v714_v0  ;;  %v719_v5 = vld [vmem:[%s964_s1 + $0xc8] sm:$0xff]   ;;  %v723_v9 = vld [vmem:[%s964_s1 + $0xd0] sm:$0xff]  }
   0x3   :  { %v716_v2 = vld [vmem:[%s964_s1] sm:$0xff]   ;;  %656 = vmatprep.subr.bf16.mxu1 %v715_v1  ;;  %v720_v6 = vld [vmem:[%s964_s1 + $0x8] sm:$0xff]   ;;  %v724_v10 = vld [vmem:[%s964_s1 + $0x10] sm:$0xff]  }
   0x4   :  { %v717_v3 = vld [vmem:[%s964_s1 + $0x80] sm:$0xff]   ;;  %629 = vmatpush3.bf16.msra.mxu0 %v716_v2  ;;  %v721_v7 = vld [vmem:[%s964_s1 + $0x88] sm:$0xff]   ;;  %v725_v11 = vld [vmem:[%s964_s1 + $0x90] sm:$0xff]  }
   0x5   :  { %657 = vmatpush3.bf16.msra.mxu1 %v717_v3  ;;  %630 = vmatprep.subr.bf16.mxu0 %v718_v4  ;;  %v726_v12 = vld [vmem:[%s964_s1 + $0x58] sm:$0xff]   ;;  %v730_v16 = vld [vmem:[%s964_s1 + $0x60] sm:$0xff]   ;;  %v734_v20 = vld [vmem:[%s964_s1 + $0x68] sm:$0xff]  }
   0x6   :  { %658 = vmatprep.subr.bf16.mxu1 %v719_v5  ;;  %v727_v13 = vld [vmem:[%s964_s1 + $0xd8] sm:$0xff]   ;;  %v731_v17 = vld [vmem:[%s964_s1 + $0xe0] sm:$0xff]   ;;  %v735_v21 = vld [vmem:[%s964_s1 + $0xe8] sm:$0xff]  }
   0x7   :  { %v728_v14 = vld [vmem:[%s964_s1 + $0x18] sm:$0xff]   ;;  %v732_v18 = vld [vmem:[%s964_s1 + $0x20] sm:$0xff]   ;;  %v736_v22 = vld [vmem:[%s964_s1 + $0x28] sm:$0xff]  }
   0x8   :  { %631 = vmatpush3.bf16.msra.mxu0 %v720_v6  ;;  %v729_v15 = vld [vmem:[%s964_s1 + $0x98] sm:$0xff]   ;;  %v733_v19 = vld [vmem:[%s964_s1 + $0xa0] sm:$0xff]   ;;  %v737_v23 = vld [vmem:[%s964_s1 + $0xa8] sm:$0xff]  }
   0x9   :  { %659 = vmatpush3.bf16.msra.mxu1 %v721_v7  ;;  %632 = vmatprep.subr.bf16.mxu0 %v722_v8  ;;  %v738_v24 = vld [vmem:[%s964_s1 + $0x70] sm:$0xff]   ;;  %v742_v28 = vld [vmem:[%s964_s1 + $0x78] sm:$0xff]   ;;  %v751_v35 = vld [vmem:[%s965_s0 + $0xc] ss:$20 sps:$4 sm:$0xff]  }
   0xa   :  { %660 = vmatprep.subr.bf16.mxu1 %v723_v9  ;;  %v739_v25 = vld [vmem:[%s964_s1 + $0xf0] sm:$0xff]   ;;  %v743_v29 = vld [vmem:[%s964_s1 + $0xf8] sm:$0xff]   ;;  %v752_v36 = vld [vmem:[%s964_s1 + $0x100] sm:$0xff]   ;;  %474 = vmatprep.mubr.bf16.mxu1 %v751_v35 }
   0xb   :  { %v740_v26 = vld [vmem:[%s964_s1 + $0x30] sm:$0xff]   ;;  %v744_v30 = vld [vmem:[%s964_s1 + $0x38] sm:$0xff]   ;;  %v753_v37 = vld [vmem:[%s964_s1 + $0x108] sm:$0xff]  }
   0xc   :  { %633 = vmatpush3.bf16.msra.mxu0 %v724_v10  ;;  %v741_v27 = vld [vmem:[%s964_s1 + $0xb0] sm:$0xff]   ;;  %v745_v31 = vld [vmem:[%s964_s1 + $0xb8] sm:$0xff]   ;;  %v27_v39 = vld [vmem:[%s965_s0 + $0x28] sm:$0x11] }
   0xd   :  { %661 = vmatpush3.bf16.msra.mxu1 %v725_v11  ;;  %634 = vmatprep.subr.bf16.mxu0 %v726_v12  ;;  %v746_v32 = vld [vmem:[%s965_s0] ss:$20 sps:$4 sm:$0xff]   ;;  %v748_v33 = vld [vmem:[%s965_s0 + $0x4] ss:$20 sps:$4 sm:$0xff]   ;;  %v749_v34 = vld [vmem:[%s965_s0 + $0x8] ss:$20 sps:$4 sm:$0xff]   ;;  %v582_v40 = vcombine.high %v27_v39, %v27_v39  ;;  %v581_v41 = vcombine.low %v27_v39, %v27_v39 }
   0xe   :  { %662 = vmatprep.subr.bf16.mxu1 %v727_v13  ;;  %426 = vmatprep.mubr.bf16.mxu0 %v748_v33  ;;  %v754_v38 = vld [vmem:[%s964_s1 + $0x110] sm:$0xff]   ;;  %v755_v45 = vld [vmem:[%s964_s1 + $0x118] sm:$0xff]   ;;  %v756_v47 = vld [vmem:[%s964_s1 + $0x120] sm:$0xff]  }
   0xf   :  { %v28_v42 = vld [vmem:[%s965_s0 + $0x30] sm:$0x11]  ;;  %v758_v48 = vld [vmem:[%s964_s1 + $0x128] sm:$0xff]   ;;  %v763_v50 = vld [vmem:[%s964_s1 + $0x138] sm:$0xff]  }
  0x10   :  { %635 = vmatpush3.bf16.msra.mxu0 %v728_v14  ;;  %v584_v43 = vcombine.high %v28_v42, %v28_v42  ;;  %v583_v44 = vcombine.low %v28_v42, %v28_v42  ;;  %v764_v46 = vld [vmem:[%s965_s0 + $0x10] ss:$20 sps:$4 sm:$0xff]   ;;  %v765_v51 = vld [vmem:[%s965_s0 + $0x38] ss:$0 sps:$4 sm:$0x11]  }
  0x11   :  { %663 = vmatpush3.bf16.msra.mxu1 %v729_v15  ;;  %636 = vmatprep.subr.bf16.mxu0 %v730_v16  ;;  %v762_v49 = vld [vmem:[%s964_s1 + $0x130] sm:$0xff]   ;;  %v626_v14 = vld [vmem:[%s966_s2] ss:$0 sm:$0xff] }
  0x12   :  { %664 = vmatprep.subr.bf16.mxu1 %v731_v17  ;;  %v627_v17 = vld [vmem:[%s967_s3] ss:$0 sm:$0xff] }
  0x14   :  { %637 = vmatpush3.bf16.msra.mxu0 %v732_v18 }
  0x15   :  { %665 = vmatpush3.bf16.msra.mxu1 %v733_v19  ;;  %638 = vmatprep.subr.bf16.mxu0 %v734_v20 }
  0x16   :  { %666 = vmatprep.subr.bf16.mxu1 %v735_v21 }
  0x18   :  { %639 = vmatpush3.bf16.msra.mxu0 %v736_v22  ;;  %v560_v22 = vld [vmem:[%s968_s4 + $0x10] sm:$0x3] }
  0x19   :  { %667 = vmatpush3.bf16.msra.mxu1 %v737_v23  ;;  %640 = vmatprep.subr.bf16.mxu0 %v738_v24 }
  0x1a   :  { %668 = vmatprep.subr.bf16.mxu1 %v739_v25 }
  0x1c   :  { %641 = vmatpush3.bf16.msra.mxu0 %v740_v26  ;;  %v558_v26 = vld [vmem:[%s968_s4] sm:$0xff] }
  0x1d   :  { %669 = vmatpush3.bf16.msra.mxu1 %v741_v27  ;;  %642 = vmatprep.subr.bf16.mxu0 %v742_v28 }
  0x1e   :  { %670 = vmatprep.subr.bf16.mxu1 %v743_v29 }
  0x20   :  { %643 = vmatpush3.bf16.msra.mxu0 %v744_v30  ;;  %v559_v30 = vld [vmem:[%s968_s4 + $0x8] sm:$0xff] }
  0x21   :  { %671 = vmatpush3.bf16.msra.mxu1 %v745_v31  ;;  %694 = vmatprep.subr.bf16.mxu0 %v752_v36 }
  0x23   :  { %427 = vmatmul.mubr.bf16.vlgmr.msra.gmra.mrb[0].mxu0 %v746_v32 }
  0x24   :  { %475 = vmatmul.mubr.bf16.vlgmr.msra.gmra.mrb[0].mxu1 %v749_v34  ;;  %695 = vmatpush3.bf16.msra.mxu0 %v752_v36 }
  0x25   :  { %696 = vmatprep.subr.bf16.mxu0 %v753_v37  ;;  %434 = vmatprep.mubr.bf16.mxu0 %v582_v40 }
  0x26   :  { %482 = vmatprep.mubr.bf16.mxu1 %v584_v43 }
  0x28   :  { %697 = vmatpush3.bf16.msra.mxu0 %v753_v37 }
  0x29   :  { %698 = vmatprep.subr.bf16.mxu0 %v754_v38 }
  0x2b   :  { %435 = vmatmul.mubr.bf16.gmra.mrb[4].mxu0 %v581_v41 }
  0x2c   :  { %483 = vmatmul.mubr.bf16.gmra.mrb[4].mxu1 %v583_v44  ;;  %699 = vmatpush3.bf16.msra.mxu0 %v754_v38 }
  0x2d   :  { %710 = vmatprep.mubr.bf16.mxu0 %v764_v46  ;;  %700 = vmatprep.subr.bf16.mxu0 %v755_v45 }
  0x30   :  { %701 = vmatpush3.bf16.msra.mxu0 %v755_v45 }
  0x31   :  { %702 = vmatprep.subr.bf16.mxu0 %v756_v47 }
  0x34   :  { %703 = vmatpush3.bf16.msra.mxu0 %v756_v47 }
  0x35   :  { %704 = vmatprep.subr.bf16.mxu0 %v758_v48 }
  0x38   :  { %705 = vmatpush3.bf16.msra.mxu0 %v758_v48 }
  0x39   :  { %706 = vmatprep.subr.bf16.mxu0 %v762_v49 }
  0x3c   :  { %707 = vmatpush3.bf16.msra.mxu0 %v762_v49 }
  0x3d   :  { %708 = vmatprep.subr.bf16.mxu0 %v763_v50 }
  0x40   :  { %709 = vmatpush3.bf16.msra.mxu0 %v763_v50 }
  0x43   :  { %711 = vmatmul.mubr.bf16.vlgmr.msra.gmra.mrb[8].mxu0 %v765_v51 }
  0xf6   :  { %v644_v52 = vpop.f32.mrb[0].mxu0 }
  0xf7   :  { %v672_v53 = vpop.f32.mrb[0].mxu1  ;;  %v645_v54 = vpop.f32.mrb[1].mxu0 }
  0xf8   :  { %v646_v55 = vadd.f32 %v645_v54, %v644_v52  ;;  %v673_v56 = vpop.f32.mrb[1].mxu1  ;;  %v647_v57 = vpop.f32.mrb[2].mxu0 }
  0xf9   :  { %v674_v58 = vadd.f32 %v673_v56, %v672_v53  ;;  %v675_v59 = vpop.f32.mrb[2].mxu1  ;;  %v648_v60 = vpop.f32.mrb[3].mxu0 }
  0xfa   :  { %v649_v61 = vadd.f32 %v648_v60, %v647_v57  ;;  %v676_v62 = vpop.f32.mrb[3].mxu1 }
  0xfb   :  { %v677_v63 = vadd.f32 %v676_v62, %v675_v59  ;;  %v477_v0 = vadd.f32 %v674_v58, %v646_v55 }
  0xfd   :  { %v480_v1 = vadd.f32 %v677_v63, %v649_v61 }
  0xfe   :  { %v650_v2 = vpop.f32.mrb[4].mxu0 }
  0xff   :  { %v651_v3 = vpop.f32.mrb[5].mxu0  ;;  %v678_v4 = vpop.f32.mrb[4].mxu1 }
 0x100   :  { %v652_v5 = vadd.f32 %v651_v3, %v650_v2  ;;  %v653_v6 = vpop.f32.mrb[6].mxu0  ;;  %v679_v7 = vpop.f32.mrb[5].mxu1 }
 0x101   :  { %v654_v8 = vpop.f32.mrb[7].mxu0  ;;  %v680_v9 = vadd.f32 %v679_v7, %v678_v4  ;;  %v681_v10 = vpop.f32.mrb[6].mxu1 }
 0x102   :  { %v682_v11 = vpop.f32.mrb[7].mxu1 }
 0x103   :  { %v485_v12 = vadd.f32 %v680_v9, %v652_v5 }
 0x116   :  { %v712_v13 = vpop.f32.mrb[8].mxu0 }
 0x117   :  { %v533_v15 = vadd.f32 %v712_v13, %v485_v12  ;;  %v524_v16 = vpop.f32.mrb[9].mxu0 }
 0x118   :  { %v525_v18 = vadd.f32 %v524_v16, %v477_v0  ;;  %v713_v19 = vpop.f32.mrb[10].mxu0 }
 0x119   :  { %v547_v20 = vmul.f32 %v626_v14, %v533_v15  ;;  %v527_v21 = vpop.f32.mrb[11].mxu0 }
 0x11a   :  { %v545_v23 = vmul.f32 %v626_v14, %v525_v18  ;;  %v528_v24 = vadd.f32 %v527_v21, %v480_v1 }
 0x11b   :  { %v557_v25 = vadd.f32 %v627_v17, %v547_v20 }
 0x11c   :  { %v555_v27 = vadd.f32 %v627_v17, %v545_v23  ;;  %v546_v28 = vmul.f32 %v626_v14, %v528_v24 }
 0x11d   :  { %v563_v29 = vadd.f32 %v560_v22, %v557_v25 }
 0x11e   :  { %v561_v31 = vadd.f32 %v558_v26, %v555_v27  ;;  %v556_v32 = vadd.f32 %v627_v17, %v546_v28 }
 0x11f   :  { %v566_v33 = vmax.f32 %v563_v29, 0.0 }
 0x120   :  { %v564_v34 = vmax.f32 %v561_v31, 0.0  ;;  %v562_v35 = vadd.f32 %v559_v30, %v556_v32 }
 0x121   :  { %571 = vst.msk [vmem:[%s969_s5 + $0x10] sm:$0x3] %vm570_vm0, %v566_v33 }
 0x122   :  { %568 = vst.msk [vmem:[%s969_s5] sm:$0xff] %vm567_vm1, %v564_v34  ;;  %v565_v36 = vmax.f32 %v562_v35, 0.0 }
 0x124   :  { %569 = vst.msk [vmem:[%s969_s5 + $0x8] sm:$0xff] %vm567_vm1, %v565_v36 }

// kernel: _lambda_.29
= control target key start
LH: loop header
LB: loop body
LE: loop exit
PB: predicated region body
PF: predicated region fallthrough
CT: control target
= control target key end

     0   :  { %vm575_vm2 = vcmask 517120   ;;  %vm572_vm3 = vcmask 523264   ;;  %s965_s1 = inlined_call_operand.vmem [shape: bf16[640,64], index: 1, kind: input, shape index: {}]   ;;  %s966_s0 = inlined_call_operand.vmem [shape: bf16[18,640], index: 0, kind: input, shape index: {}]   ;;  %s967_s4 = inlined_call_operand.vmem [shape: f32[1,64], index: 4, kind: input, shape index: {}]   ;;  %s968_s2 = inlined_call_operand.vmem [shape: f32[1,64], index: 2, kind: input, shape index: {}]   ;;  %s969_s3 = inlined_call_operand.vmem [shape: f32[1,64], index: 3, kind: input, shape index: {}]   ;;  %s970_s5 = inlined_call_operand.vmem [shape: f32[18,64], index: 5, kind: output, shape index: {}]  }
   0x1   :  { %v720_v0 = vld [vmem:[%s965_s1 + $0x40] sm:$0xff]   ;;  %v724_v4 = vld [vmem:[%s965_s1 + $0x48] sm:$0xff]   ;;  %v728_v8 = vld [vmem:[%s965_s1 + $0x50] sm:$0xff]  }
   0x2   :  { %v721_v1 = vld [vmem:[%s965_s1 + $0xc0] sm:$0xff]   ;;  %633 = vmatprep.subr.bf16.mxu0 %v720_v0  ;;  %v725_v5 = vld [vmem:[%s965_s1 + $0xc8] sm:$0xff]   ;;  %v729_v9 = vld [vmem:[%s965_s1 + $0xd0] sm:$0xff]  }
   0x3   :  { %v722_v2 = vld [vmem:[%s965_s1] sm:$0xff]   ;;  %661 = vmatprep.subr.bf16.mxu1 %v721_v1  ;;  %v726_v6 = vld [vmem:[%s965_s1 + $0x8] sm:$0xff]   ;;  %v730_v10 = vld [vmem:[%s965_s1 + $0x10] sm:$0xff]  }
   0x4   :  { %v723_v3 = vld [vmem:[%s965_s1 + $0x80] sm:$0xff]   ;;  %634 = vmatpush3.bf16.msra.mxu0 %v722_v2  ;;  %v727_v7 = vld [vmem:[%s965_s1 + $0x88] sm:$0xff]   ;;  %v731_v11 = vld [vmem:[%s965_s1 + $0x90] sm:$0xff]  }
   0x5   :  { %662 = vmatpush3.bf16.msra.mxu1 %v723_v3  ;;  %635 = vmatprep.subr.bf16.mxu0 %v724_v4  ;;  %v732_v12 = vld [vmem:[%s965_s1 + $0x58] sm:$0xff]   ;;  %v736_v16 = vld [vmem:[%s965_s1 + $0x60] sm:$0xff]   ;;  %v740_v20 = vld [vmem:[%s965_s1 + $0x68] sm:$0xff]  }
   0x6   :  { %663 = vmatprep.subr.bf16.mxu1 %v725_v5  ;;  %v733_v13 = vld [vmem:[%s965_s1 + $0xd8] sm:$0xff]   ;;  %v737_v17 = vld [vmem:[%s965_s1 + $0xe0] sm:$0xff]   ;;  %v741_v21 = vld [vmem:[%s965_s1 + $0xe8] sm:$0xff]  }
   0x7   :  { %v734_v14 = vld [vmem:[%s965_s1 + $0x18] sm:$0xff]   ;;  %v738_v18 = vld [vmem:[%s965_s1 + $0x20] sm:$0xff]   ;;  %v742_v22 = vld [vmem:[%s965_s1 + $0x28] sm:$0xff]  }
   0x8   :  { %636 = vmatpush3.bf16.msra.mxu0 %v726_v6  ;;  %v735_v15 = vld [vmem:[%s965_s1 + $0x98] sm:$0xff]   ;;  %v739_v19 = vld [vmem:[%s965_s1 + $0xa0] sm:$0xff]   ;;  %v743_v23 = vld [vmem:[%s965_s1 + $0xa8] sm:$0xff]  }
   0x9   :  { %664 = vmatpush3.bf16.msra.mxu1 %v727_v7  ;;  %637 = vmatprep.subr.bf16.mxu0 %v728_v8  ;;  %v744_v24 = vld [vmem:[%s965_s1 + $0x70] sm:$0xff]   ;;  %v748_v28 = vld [vmem:[%s965_s1 + $0x78] sm:$0xff]   ;;  %v757_v35 = vld [vmem:[%s966_s0 + $0xc] ss:$20 sps:$4 sm:$0xff]  }
   0xa   :  { %665 = vmatprep.subr.bf16.mxu1 %v729_v9  ;;  %v745_v25 = vld [vmem:[%s965_s1 + $0xf0] sm:$0xff]   ;;  %v749_v29 = vld [vmem:[%s965_s1 + $0xf8] sm:$0xff]   ;;  %v758_v36 = vld [vmem:[%s965_s1 + $0x100] sm:$0xff]   ;;  %474 = vmatprep.mubr.bf16.mxu1 %v757_v35 }
   0xb   :  { %v746_v26 = vld [vmem:[%s965_s1 + $0x30] sm:$0xff]   ;;  %v750_v30 = vld [vmem:[%s965_s1 + $0x38] sm:$0xff]   ;;  %v759_v37 = vld [vmem:[%s965_s1 + $0x108] sm:$0xff]  }
   0xc   :  { %638 = vmatpush3.bf16.msra.mxu0 %v730_v10  ;;  %v747_v27 = vld [vmem:[%s965_s1 + $0xb0] sm:$0xff]   ;;  %v751_v31 = vld [vmem:[%s965_s1 + $0xb8] sm:$0xff]   ;;  %v27_v39 = vld [vmem:[%s966_s0 + $0x28] sm:$0x11] }
   0xd   :  { %666 = vmatpush3.bf16.msra.mxu1 %v731_v11  ;;  %639 = vmatprep.subr.bf16.mxu0 %v732_v12  ;;  %v752_v32 = vld [vmem:[%s966_s0] ss:$20 sps:$4 sm:$0xff]   ;;  %v754_v33 = vld [vmem:[%s966_s0 + $0x4] ss:$20 sps:$4 sm:$0xff]   ;;  %v755_v34 = vld [vmem:[%s966_s0 + $0x8] ss:$20 sps:$4 sm:$0xff]   ;;  %v587_v40 = vcombine.high %v27_v39, %v27_v39  ;;  %v586_v41 = vcombine.low %v27_v39, %v27_v39 }
   0xe   :  { %667 = vmatprep.subr.bf16.mxu1 %v733_v13  ;;  %426 = vmatprep.mubr.bf16.mxu0 %v754_v33  ;;  %v760_v38 = vld [vmem:[%s965_s1 + $0x110] sm:$0xff]   ;;  %v761_v45 = vld [vmem:[%s965_s1 + $0x118] sm:$0xff]   ;;  %v762_v47 = vld [vmem:[%s965_s1 + $0x120] sm:$0xff]   ;;  %v564_v13 = vlaneseq }
   0xf   :  { %v28_v42 = vld [vmem:[%s966_s0 + $0x30] sm:$0x11]  ;;  %v764_v48 = vld [vmem:[%s965_s1 + $0x128] sm:$0xff]   ;;  %v769_v50 = vld [vmem:[%s965_s1 + $0x138] sm:$0xff]  }
  0x10   :  { %640 = vmatpush3.bf16.msra.mxu0 %v734_v14  ;;  %v589_v43 = vcombine.high %v28_v42, %v28_v42  ;;  %v588_v44 = vcombine.low %v28_v42, %v28_v42  ;;  %v770_v46 = vld [vmem:[%s966_s0 + $0x10] ss:$20 sps:$4 sm:$0xff]   ;;  %v771_v51 = vld [vmem:[%s966_s0 + $0x38] ss:$0 sps:$4 sm:$0x11]  }
  0x11   :  { %668 = vmatpush3.bf16.msra.mxu1 %v735_v15  ;;  %641 = vmatprep.subr.bf16.mxu0 %v736_v16  ;;  %v768_v49 = vld [vmem:[%s965_s1 + $0x130] sm:$0xff]   ;;  %v558_v14 = vld [vmem:[%s967_s4] sm:$0x1]  ;;  %v565_v15 = vshrl.u32 %v564_v13, 7 }
  0x12   :  { %669 = vmatprep.subr.bf16.mxu1 %v737_v17  ;;  %vm559_vm0 = vcmp.gt.f32.partialorder %v558_v14, 0.0  ;;  %v772_v17 = vmov 0  }
  0x13   :  { %v566_v16 = vsub.s32 0, %v565_v15 }
  0x14   :  { %642 = vmatpush3.bf16.msra.mxu0 %v738_v18  ;;  %v563_v18 = vsel %vm559_vm0, 1, %v772_v17 }
  0x15   :  { %670 = vmatpush3.bf16.msra.mxu1 %v739_v19  ;;  %643 = vmatprep.subr.bf16.mxu0 %v740_v20  ;;  %v631_v20 = vld [vmem:[%s968_s2] ss:$0 sm:$0xff] }
  0x16   :  { %671 = vmatprep.subr.bf16.mxu1 %v741_v21 }
  0x18   :  { %644 = vmatpush3.bf16.msra.mxu0 %v742_v22 }
  0x19   :  { %672 = vmatpush3.bf16.msra.mxu1 %v743_v23  ;;  %645 = vmatprep.subr.bf16.mxu0 %v744_v24  ;;  %v632_v23 = vld [vmem:[%s969_s3] ss:$0 sm:$0xff]  ;;  %v567_v24 = vrot.slane %v563_v18, %v566_v16 }
  0x1a   :  { %673 = vmatprep.subr.bf16.mxu1 %v745_v25 }
  0x1b   :  { %vm568_vm1 = vcmp.eq.s32.totalorder %v567_v24, 1 }
  0x1c   :  { %646 = vmatpush3.bf16.msra.mxu0 %v746_v26 }
  0x1d   :  { %674 = vmatpush3.bf16.msra.mxu1 %v747_v27  ;;  %647 = vmatprep.subr.bf16.mxu0 %v748_v28 }
  0x1e   :  { %675 = vmatprep.subr.bf16.mxu1 %v749_v29 }
  0x20   :  { %648 = vmatpush3.bf16.msra.mxu0 %v750_v30 }
  0x21   :  { %676 = vmatpush3.bf16.msra.mxu1 %v751_v31  ;;  %699 = vmatprep.subr.bf16.mxu0 %v758_v36 }
  0x23   :  { %427 = vmatmul.mubr.bf16.vlgmr.msra.gmra.mrb[0].mxu0 %v752_v32 }
  0x24   :  { %475 = vmatmul.mubr.bf16.vlgmr.msra.gmra.mrb[0].mxu1 %v755_v34  ;;  %700 = vmatpush3.bf16.msra.mxu0 %v758_v36 }
  0x25   :  { %701 = vmatprep.subr.bf16.mxu0 %v759_v37  ;;  %434 = vmatprep.mubr.bf16.mxu0 %v587_v40 }
  0x26   :  { %482 = vmatprep.mubr.bf16.mxu1 %v589_v43 }
  0x28   :  { %702 = vmatpush3.bf16.msra.mxu0 %v759_v37 }
  0x29   :  { %703 = vmatprep.subr.bf16.mxu0 %v760_v38 }
  0x2b   :  { %435 = vmatmul.mubr.bf16.gmra.mrb[4].mxu0 %v586_v41 }
  0x2c   :  { %483 = vmatmul.mubr.bf16.gmra.mrb[4].mxu1 %v588_v44  ;;  %704 = vmatpush3.bf16.msra.mxu0 %v760_v38 }
  0x2d   :  { %715 = vmatprep.mubr.bf16.mxu0 %v770_v46  ;;  %705 = vmatprep.subr.bf16.mxu0 %v761_v45 }
  0x30   :  { %706 = vmatpush3.bf16.msra.mxu0 %v761_v45 }
  0x31   :  { %707 = vmatprep.subr.bf16.mxu0 %v762_v47 }
  0x34   :  { %708 = vmatpush3.bf16.msra.mxu0 %v762_v47 }
  0x35   :  { %709 = vmatprep.subr.bf16.mxu0 %v764_v48 }
  0x38   :  { %710 = vmatpush3.bf16.msra.mxu0 %v764_v48 }
  0x39   :  { %711 = vmatprep.subr.bf16.mxu0 %v768_v49 }
  0x3c   :  { %712 = vmatpush3.bf16.msra.mxu0 %v768_v49 }
  0x3d   :  { %713 = vmatprep.subr.bf16.mxu0 %v769_v50 }
  0x40   :  { %714 = vmatpush3.bf16.msra.mxu0 %v769_v50 }
  0x43   :  { %716 = vmatmul.mubr.bf16.vlgmr.msra.gmra.mrb[8].mxu0 %v771_v51 }
  0xf6   :  { %v649_v52 = vpop.f32.mrb[0].mxu0 }
  0xf7   :  { %v677_v53 = vpop.f32.mrb[0].mxu1  ;;  %v650_v54 = vpop.f32.mrb[1].mxu0 }
  0xf8   :  { %v651_v55 = vadd.f32 %v650_v54, %v649_v52  ;;  %v678_v56 = vpop.f32.mrb[1].mxu1  ;;  %v652_v57 = vpop.f32.mrb[2].mxu0 }
  0xf9   :  { %v679_v58 = vadd.f32 %v678_v56, %v677_v53  ;;  %v680_v59 = vpop.f32.mrb[2].mxu1  ;;  %v653_v60 = vpop.f32.mrb[3].mxu0 }
  0xfa   :  { %v654_v61 = vadd.f32 %v653_v60, %v652_v57  ;;  %v681_v62 = vpop.f32.mrb[3].mxu1 }
  0xfb   :  { %v682_v63 = vadd.f32 %v681_v62, %v680_v59  ;;  %v477_v0 = vadd.f32 %v679_v58, %v651_v55 }
  0xfd   :  { %v480_v1 = vadd.f32 %v682_v63, %v654_v61 }
  0xfe   :  { %v655_v2 = vpop.f32.mrb[4].mxu0 }
  0xff   :  { %v656_v3 = vpop.f32.mrb[5].mxu0  ;;  %v683_v4 = vpop.f32.mrb[4].mxu1 }
 0x100   :  { %v657_v5 = vadd.f32 %v656_v3, %v655_v2  ;;  %v658_v6 = vpop.f32.mrb[6].mxu0  ;;  %v684_v7 = vpop.f32.mrb[5].mxu1 }
 0x101   :  { %v659_v8 = vpop.f32.mrb[7].mxu0  ;;  %v685_v9 = vadd.f32 %v684_v7, %v683_v4  ;;  %v686_v10 = vpop.f32.mrb[6].mxu1 }
 0x102   :  { %v687_v11 = vpop.f32.mrb[7].mxu1 }
 0x103   :  { %v485_v12 = vadd.f32 %v685_v9, %v657_v5 }
 0x116   :  { %v717_v19 = vpop.f32.mrb[8].mxu0 }
 0x117   :  { %v533_v21 = vadd.f32 %v717_v19, %v485_v12  ;;  %v524_v22 = vpop.f32.mrb[9].mxu0 }
 0x118   :  { %v525_v25 = vadd.f32 %v524_v22, %v477_v0  ;;  %v718_v26 = vpop.f32.mrb[10].mxu0 }
 0x119   :  { %v547_v27 = vmul.f32 %v631_v20, %v533_v21  ;;  %v527_v28 = vpop.f32.mrb[11].mxu0 }
 0x11a   :  { %v545_v29 = vmul.f32 %v631_v20, %v525_v25  ;;  %v528_v30 = vadd.f32 %v527_v28, %v480_v1 }
 0x11b   :  { %v557_v31 = vadd.f32 %v632_v23, %v547_v27 }
 0x11c   :  { %v555_v32 = vadd.f32 %v632_v23, %v545_v29  ;;  %v546_v33 = vmul.f32 %v631_v20, %v528_v30 }
 0x11d   :  { %v562_v34 = vmax.f32 %v557_v31, 0.0 }
 0x11e   :  { %v560_v35 = vmax.f32 %v555_v32, 0.0  ;;  %v556_v36 = vadd.f32 %v632_v23, %v546_v33 }
 0x11f   :  { %v571_v37 = vsel %vm568_vm1, %v562_v34, %v557_v31 }
 0x120   :  { %576 = vst.msk [vmem:[%s970_s5 + $0x10] sm:$0x3] %vm575_vm2, %v571_v37  ;;  %v569_v38 = vsel %vm568_vm1, %v560_v35, %v555_v32  ;;  %v561_v39 = vmax.f32 %v556_v36, 0.0 }
 0x121   :  { %573 = vst.msk [vmem:[%s970_s5] sm:$0xff] %vm572_vm3, %v569_v38 }
 0x122   :  { %v570_v40 = vsel %vm568_vm1, %v561_v39, %v556_v36 }
 0x123   :  { %574 = vst.msk [vmem:[%s970_s5 + $0x8] sm:$0xff] %vm572_vm3, %v570_v40 }

// kernel: _lambda_.33
= control target key start
LH: loop header
LB: loop body
LE: loop exit
PB: predicated region body
PF: predicated region fallthrough
CT: control target
= control target key end

     0   :  { %v200_v1 = vmov 0.0   ;;  %vm201_vm0 = vmmov 0   ;;  %vm20_vm1 = vcmask 523264   ;;  %vm22_vm2 = vcmask 516096   ;;  %s265_s0 = inlined_call_operand.vmem [shape: f32[2,9,64], index: 0, kind: input, shape index: {}]   ;;  %s266_s1 = inlined_call_operand.vmem [shape: bf16[64,128], index: 1, kind: input, shape index: {}]   ;;  %s267_s2 = inlined_call_operand.vmem [shape: f32[1,128], index: 2, kind: input, shape index: {}]   ;;  %s268_s3 = inlined_call_operand.hbm [shape: f32[2,128], index: 3, kind: output, shape index: {}]  }
   0x1   :  { %v172_v0 = vld [vmem:[%s266_s1] sm:$0xff]   ;;  %157 = vmatprep.subr.bf16.mxu0 %v200_v1  ;;  %v173_v2 = vld [vmem:[%s266_s1 + $0x8] sm:$0xff]   ;;  %165 = vmatprep.mubr.msk.bf16.mxu0 %vm201_vm0, %v200_v1  ;;  %v18_v5 = vld [vmem:[%s265_s0 + $0x10] sm:$0xff] }
   0x2   :  { %158 = vmatpush3.bf16.msra.mxu0 %v172_v0  ;;  %v16_v3 = vld [vmem:[%s265_s0] sm:$0xff]  ;;  %v17_v4 = vld [vmem:[%s265_s0 + $0x8] sm:$0x1]  ;;  %v19_v6 = vld [vmem:[%s265_s0 + $0x18] sm:$0x1]  ;;  %v31_v9 = vsel %vm20_vm1, %v18_v5, -inf }
   0x3   :  { %159 = vmatprep.subr.bf16.mxu0 %v200_v1  ;;  %v21_v7 = vsel %vm20_vm1, %v16_v3, -inf  ;;  %v23_v8 = vsel %vm22_vm2, %v17_v4, -inf  ;;  %v174_v10 = vld [vmem:[%s266_s1 + $0x10] sm:$0xff]   ;;  %v32_v12 = vsel %vm22_vm2, %v19_v6, -inf }
   0x4   :  { %v24_v11 = vmax.f32 %v21_v7, %v23_v8 }
   0x6   :  { %160 = vmatpush3.bf16.msra.mxu0 %v173_v2 }
   0x7   :  { %8 = vsyncpa [#allocation3], 0  ;;  %161 = vmatprep.subr.bf16.mxu0 %v200_v1  ;;  %v33_v13 = vmax.f32 %v31_v9, %v32_v12  ;;  %v25_v14 = vrot.slane %v24_v11, 4  ;;  %v175_v16 = vld [vmem:[%s266_s1 + $0x18] sm:$0xff]   ;;  %vm61_vm3 = vcmask 1041409   ;;  %s202_s28 = smov [#allocation2]  }
   0x8   :  { %v146_v33 = vld [vmem:[%s267_s2] ss:$0 sm:$0xff]  ;;  %s138_s29 = sshll.u32 %s202_s28, 4  ;;  %s139_s29 = int_to_ptr.vmem [resolvable:$true] %s138_s29 }
   0x9   :  { %v34_v15 = vrot.slane %v33_v13, 4  ;;  %v26_v17 = vmax.f32 %v24_v11, %v25_v14  ;;  %s176_s30 = scalar_lea.vmem %s139_s29, 32  ;;  %p181_p1 = scmp.lt.s32.totalorder %s139_s29, %s139_s29 }
   0xa   :  { %162 = vmatpush3.bf16.msra.mxu0 %v174_v10  ;;  %p177_p0 = scmp.ne.s32.totalorder %s139_s29, %s176_s30  ;;  %p182_p2 = scmp.lt.s32.totalorder %s176_s30, %s176_s30 }
   0xb   :  { %163 = vmatprep.subr.bf16.mxu0 %v200_v1  ;;  %v35_v18 = vmax.f32 %v33_v13, %v34_v15  ;;  %v27_v19 = vrot.slane %v26_v17, 2 }
   0xc   :  { %p183_p3 = por %p182_p2, %p181_p1 }
   0xd   :  { %v36_v20 = vrot.slane %v35_v18, 2  ;;  %v28_v21 = vmax.f32 %v26_v17, %v27_v19 }
   0xe   :  { %164 = vmatpush3.bf16.msra.mxu0 %v175_v16  ;;  %p184_p4 = pnand %p183_p3, %p177_p0 }
   0xf   :  { %v37_v22 = vmax.f32 %v35_v18, %v36_v20  ;;  %v29_v23 = vrot.slane %v28_v21, 1 }
  0x11   :  { %v38_v24 = vrot.slane %v37_v22, 1  ;;  %v30_v25 = vmax.f32 %v28_v21, %v29_v23 }
  0x13   :  { %v39_v26 = vmax.f32 %v37_v22, %v38_v24  ;;  %v40_v27 = vpack.c.bf16 %v30_v25, %v30_v25 }
  0x15   :  { %v41_v28 = vpack.c.bf16 %v39_v26, %v39_v26  ;;  %v59_v29 = vunpack.c.l.b16 %v40_v27 }
  0x17   :  { %v60_v30 = vunpack.c.l.b16 %v41_v28 }
  0x19   :  { %v62_v31 = vsel %vm61_vm3, %v60_v30, %v59_v29 }
  0x1a   :  { %v63_v32 = vpack.c.b16 %v62_v31, %v62_v31 }
  0x1c   :  { %166 = vmatmul.mubr.msk.bf16.vlgmr.msra.gmra.mrb[0].mxu0 %vm20_vm1, %v63_v32 }
  0xef   :  { %v125_v34 = vpop.f32.mrb[0].mxu0 }
  0xf0   :  { %v126_v35 = vadd.f32 %v146_v33, %v125_v34  ;;  %v167_v36 = vpop.f32.mrb[1].mxu0 }
  0xf1   :  { %v128_v37 = vpop.f32.mrb[2].mxu0 }
  0xf2   :  { %131 = vst [vmem:[#allocation2] sm:$0x3] %v126_v35  ;;  %v168_v38 = vpop.f32.mrb[3].mxu0 }
  0xf3   :  { %187 = shalt.err (!%p184_p4)
}
  0xf4   :  { %s188_s2 = scalar_lea.hbm %s268_s3, 32 }
  0xf5   :  { %p189_p5 = scmp.ne.s32.totalorder %s268_s3, %s188_s2  ;;  %p192_p6 = scmp.lt.u32.totalorder %s188_s2, %s268_s3 }
  0xf7   :  { %p194_p7 = pnand %p192_p6, %p189_p5 }
  0xf9   :  { %197 = shalt.err (!%p194_p7)
}
  0xfa   :  { %141 = dma.vmem_to_hbm [thread:$0]  %s139_s29, 32, %s268_s3, [#allocation3]  }
  0xfb   :  { %198 = dma.done.wait [#allocation3], 32  }
  0xfc   :  { %199 = vsyncadd [#allocation3], 4294967264 }
  0xfd   :  { %145 = vsyncpa [#allocation3], 1 }

</bundles_post_ra>
